<compile_context>
chip_gen: v7x
topology: tpu7x:2x2x1
jax: 0.10.0
libtpu: 0.0.40
codegen_flags: <defaults>
</compile_context>

<pallas_src>
import jax
import jax.numpy as jnp
from jax.experimental import pallas as pl
from jax.experimental.pallas import tpu as pltpu

HEADS = 4
DIM_HEAD = 32
HIDDEN = HEADS * DIM_HEAD  # 128


def _vpu_project(w, x):
    """(O, C) @ (C, N) as a C-term VPU outer-product accumulation (C is tiny)."""
    acc = w[:, 0:1] * x[0:1, :]
    for c in range(1, x.shape[0]):
        acc = acc + w[:, c:c + 1] * x[c:c + 1, :]
    return acc


def _context_kernel(x_ref, wk_ref, wv_ref, wq_ref, wout_ref, mask_ref,
                    mix_ref, mmax_sc, lsum_sc, ctx_sc):
    # x_ref:    (C, TN)            one N tile; channels on sublanes, spatial on lanes
    # wk/wv/wq: (HIDDEN, C)        1x1-conv weight slices
    # wout_ref: (C, HIDDEN)
    # mask_ref: (HIDDEN, HIDDEN)   constant block-diagonal head mask
    # mix_ref:  (C, C)             folded per-batch channel-mixing matrix (output)
    n = pl.program_id(1)

    @pl.when(n == 0)
    def _():
        mmax_sc[...] = jnp.full_like(mmax_sc, -jnp.inf)
        lsum_sc[...] = jnp.zeros_like(lsum_sc)
        ctx_sc[...] = jnp.zeros_like(ctx_sc)

    x = x_ref[...]                                              # (C, TN) f32
    k = _vpu_project(wk_ref[...], x)                            # (HIDDEN, TN) f32, VPU
    v = _vpu_project(wv_ref[...], x).astype(jnp.bfloat16)       # bf16 MXU operand

    # Online softmax over the spatial axis (running max / running sum).
    m_prev = mmax_sc[...]                                       # (HIDDEN, 1)
    m_new = jnp.maximum(m_prev, jnp.max(k, axis=1, keepdims=True))
    alpha = jnp.exp(m_prev - m_new)                             # rescale old stats
    p = jnp.exp(k - m_new)                                      # (HIDDEN, TN), unnormalised
    lsum_sc[...] = alpha * lsum_sc[...] + jnp.sum(p, axis=1, keepdims=True)

    # ctx[d, e] += sum_n p[d, n] * v[e, n] — the single big MXU matmul per tile,
    # bf16 operands / f32 accumulation, fused over all 4 heads.
    ctx_sc[...] = alpha * ctx_sc[...] + jax.lax.dot_general(
        p.astype(jnp.bfloat16), v, (((1,), (1,)), ((), ())),
        preferred_element_type=jnp.float32)                     # (HIDDEN, HIDDEN)
    mmax_sc[...] = m_new

    @pl.when(n == pl.num_programs(1) - 1)
    def _():
        # Fold the softmax denominator and the head mask into ctx, then fold the
        # two 1x1 convs through it:  mix = Wout @ (mask * ctx / l)^T @ Wq  (C, C).
        inv_l = pl.reciprocal(lsum_sc[...], approx=True)        # (HIDDEN, 1), EUP
        ctx = ctx_sc[...] * inv_l * mask_ref[...]               # (HIDDEN, HIDDEN)
        a = jax.lax.dot_general(                                # a[c,d] = sum_e Wout[c,e]*ctx[d,e]
            wout_ref[...], ctx, (((1,), (1,)), ((), ())),
            preferred_element_type=jnp.float32)                 # (C, HIDDEN)
        mix_ref[...] = jnp.dot(a, wq_ref[...],
                               preferred_element_type=jnp.float32)  # (C, C)


def _apply_kernel(mix_ref, x_ref, bias_ref, o_ref):
    # y = mix @ x + bias per N tile, entirely on the VPU (C = 4 terms).
    x = x_ref[...]                                              # (C, TN) f32
    mix = mix_ref[...]                                          # (C, C)  f32
    y = _vpu_project(mix, x)                                    # (C, TN) f32
    for c in range(y.shape[0]):
        # bias scalars come from SMEM; lane-dense row stores.
        o_ref[c:c + 1, :] = (y[c:c + 1, :] + bias_ref[c]).astype(o_ref.dtype)


def _choose_n_tile(n):
    """Largest lane-dense tile keeping the per-step VMEM footprint to a few MB."""
    if n <= 4096:
        return n
    for t in (4096, 2048, 1024, 512, 256, 128):
        if n % t == 0:
            return t
    return n  # fallback: single full-N block


def _vmem_limit_bytes():
    """Generation-conditional scoped-VMEM limit (v5e/v6e: 128 MiB physical; v7x: 64)."""
    try:
        kind = jax.devices()[0].device_kind.lower()
    except Exception:
        kind = ""
    return (40 if "v7" in kind else 64) * 1024 * 1024


def linear_attention_pallas(x_nchw, w_qkv, w_out, b_out, *, n_tile=None):
    """x_nchw: (B, C, H, W); w_qkv: (3*HIDDEN, C); w_out: (C, HIDDEN); b_out: (C,)."""
    B, C, H, W = x_nchw.shape
    N = H * W
    assert w_qkv.shape == (3 * HIDDEN, C)
    assert w_out.shape == (C, HIDDEN)
    assert b_out.shape == (C,)

    tn = int(n_tile) if n_tile is not None else _choose_n_tile(N)
    assert N % tn == 0 and (tn % 128 == 0 or tn == N), "bad N tile"
    nt = N // tn

    # NCHW -> (B, C, N): pure reshape, no HBM transpose.
    x_bcn = x_nchw.reshape(B, C, N).astype(jnp.float32)
    w_q = w_qkv[0 * HIDDEN:1 * HIDDEN].astype(jnp.float32)
    w_k = w_qkv[1 * HIDDEN:2 * HIDDEN].astype(jnp.float32)
    w_v = w_qkv[2 * HIDDEN:3 * HIDDEN].astype(jnp.float32)
    w_o = w_out.astype(jnp.float32)
    bias = b_out.astype(jnp.float32)

    # Constant block-diagonal head mask (no per-step iota/div/compare/select).
    head_id = jnp.arange(HIDDEN, dtype=jnp.int32) // DIM_HEAD
    head_mask = (head_id[:, None] == head_id[None, :]).astype(jnp.float32)

    vmem_limit = _vmem_limit_bytes()
    wspec = pl.BlockSpec((HIDDEN, C), lambda b, n: (0, 0))

    # Pass 1: per-batch folded channel-mixing matrix mix = Wout (mask*ctx)^T Wq.
    mix = pl.pallas_call(
        _context_kernel,
        out_shape=jax.ShapeDtypeStruct((B, C, C), jnp.float32),
        grid=(B, nt),
        in_specs=[
            pl.BlockSpec((None, C, tn), lambda b, n: (b, 0, n)),
            wspec, wspec, wspec,
            pl.BlockSpec((C, HIDDEN), lambda b, n: (0, 0)),
            pl.BlockSpec((HIDDEN, HIDDEN), lambda b, n: (0, 0)),
        ],
        out_specs=pl.BlockSpec((None, C, C), lambda b, n: (b, 0, 0)),
        scratch_shapes=[
            pltpu.VMEM((HIDDEN, 1), jnp.float32),       # running max
            pltpu.VMEM((HIDDEN, 1), jnp.float32),       # running sum
            pltpu.VMEM((HIDDEN, HIDDEN), jnp.float32),  # ctx accumulator
        ],
        compiler_params=pltpu.CompilerParams(
            dimension_semantics=("parallel", "arbitrary"),
            vmem_limit_bytes=vmem_limit,
        ),
    )(x_bcn, w_k, w_v, w_q, w_o, head_mask)

    # Pass 2: y = mix @ x + bias, streamed over lane-dense N tiles, fully parallel.
    out_bcn = pl.pallas_call(
        _apply_kernel,
        out_shape=jax.ShapeDtypeStruct((B, C, N), x_nchw.dtype),
        grid=(B, nt),
        in_specs=[
            pl.BlockSpec((None, C, C), lambda b, n: (b, 0, 0)),
            pl.BlockSpec((None, C, tn), lambda b, n: (b, 0, n)),
            pl.BlockSpec(memory_space=pltpu.MemorySpace.SMEM),  # 4-scalar bias
        ],
        out_specs=pl.BlockSpec((None, C, tn), lambda b, n: (b, 0, n)),
        compiler_params=pltpu.CompilerParams(
            dimension_semantics=("parallel", "parallel"),
            vmem_limit_bytes=vmem_limit,
        ),
    )(mix, x_bcn, bias)

    # (B, C, N) -> NCHW: pure reshape again.
    return out_bcn.reshape(B, C, H, W)


def linear_attention_ref(x_nchw, w_qkv, w_out, b_out):
    """Pure-JAX f32 reference mirroring the PyTorch module exactly."""
    B, C, H, W = x_nchw.shape
    N = H * W
    x_flat = x_nchw.reshape(B, C, N)                                  # (B, C, N)
    qkv = jnp.einsum('oc,bcn->bon', w_qkv, x_flat)                    # (B, 3*HIDDEN, N)
    qkv = qkv.reshape(B, 3, HEADS, DIM_HEAD, N)
    q, k, v = qkv[:, 0], qkv[:, 1], qkv[:, 2]                         # (B, h, d, N)
    k = jax.nn.softmax(k, axis=-1)
    ctx = jnp.einsum('bhdn,bhen->bhde', k, v)
    out = jnp.einsum('bhde,bhdn->bhen', ctx, q)                       # (B, h, d, N)
    out = out.reshape(B, HIDDEN, N)
    y = jnp.einsum('oc,bcn->bon', w_out, out) + b_out[None, :, None]
    return y.reshape(B, C, H, W)


if __name__ == "__main__":
    key = jax.random.PRNGKey(0)
    k_x, k_wqkv, k_wout, k_bout, k_x2 = jax.random.split(key, 5)

    B, C, H, W = 2, 4, 16, 16  # dim=4, heads=4, dim_head=32 -> hidden=128
    x = jax.random.normal(k_x, (B, C, H, W), dtype=jnp.float32)

    # Deterministic synthetic parameters (1x1 Conv2d weights, flattened kernels).
    w_qkv = 0.05 * jax.random.normal(k_wqkv, (3 * HIDDEN, C), dtype=jnp.float32)
    w_out = 0.05 * jax.random.normal(k_wout, (C, HIDDEN), dtype=jnp.float32)
    b_out = 0.05 * jax.random.normal(k_bout, (C,), dtype=jnp.float32)

    out = jax.block_until_ready(linear_attention_pallas(x, w_qkv, w_out, b_out))
    ref = jax.block_until_ready(linear_attention_ref(x, w_qkv, w_out, b_out))
    assert out.shape == (B, C, H, W)
    # bf16 MXU operands + approx reciprocal vs the pure-f32 reference.
    assert jnp.allclose(out, ref, rtol=2e-2, atol=2e-3), "mismatch (single tile)"

    # Also exercise the online-softmax N-tiled path (4 tiles) and B=1.
    x2 = jax.random.normal(k_x2, (1, C, 32, 32), dtype=jnp.float32)
    out2 = jax.block_until_ready(
        linear_attention_pallas(x2, w_qkv, w_out, b_out, n_tile=256))
    ref2 = jax.block_until_ready(linear_attention_ref(x2, w_qkv, w_out, b_out))
    assert jnp.allclose(out2, ref2, rtol=2e-2, atol=2e-3), "mismatch (tiled)"

    print("KERNEL_OK")
</pallas_src>

<mosaic_0001>
module attributes {stable_mosaic.version = 11 : i64} {
  func.func @_context_kernel(%arg0: i32, %arg1: i32, %arg2: memref<1x4x256xf32, #tpu.memory_space<vmem>>, %arg3: memref<128x4xf32, #tpu.memory_space<vmem>>, %arg4: memref<128x4xf32, #tpu.memory_space<vmem>>, %arg5: memref<128x4xf32, #tpu.memory_space<vmem>>, %arg6: memref<4x128xf32, #tpu.memory_space<vmem>>, %arg7: memref<128x128xf32, #tpu.memory_space<vmem>>, %arg8: memref<1x4x4xf32, #tpu.memory_space<vmem>>, %arg9: memref<128x1xf32, #tpu.memory_space<vmem>>, %arg10: memref<128x1xf32, #tpu.memory_space<vmem>>, %arg11: memref<128x128xf32, #tpu.memory_space<vmem>>) attributes {dimension_semantics = [#tpu.dimension_semantics<parallel>, #tpu.dimension_semantics<arbitrary>], iteration_bounds = array<i64: 2, 1>, scalar_prefetch = 0 : i64, scratch_operands = 3 : i64, tpu.core_type = #tpu.core_type<tc>, window_params = [{transform_indices = @transform_0, window_bounds = array<i64: 1, 4, 256>}, {pipeline_mode = #tpu.pipeline_mode<synchronous>, transform_indices = @transform_1, window_bounds = array<i64: 128, 4>}, {pipeline_mode = #tpu.pipeline_mode<synchronous>, transform_indices = @transform_2, window_bounds = array<i64: 128, 4>}, {pipeline_mode = #tpu.pipeline_mode<synchronous>, transform_indices = @transform_3, window_bounds = array<i64: 128, 4>}, {pipeline_mode = #tpu.pipeline_mode<synchronous>, transform_indices = @transform_4, window_bounds = array<i64: 4, 128>}, {pipeline_mode = #tpu.pipeline_mode<synchronous>, transform_indices = @transform_5, window_bounds = array<i64: 128, 128>}, {transform_indices = @transform_6, window_bounds = array<i64: 1, 4, 4>}]} {
    %c0_i32 = arith.constant 0 : i32
    %0 = arith.cmpi eq, %arg1, %c0_i32 : i32
    %1 = arith.extui %0 : i1 to i32
    %c0_i32_0 = arith.constant 0 : i32
    %2 = arith.cmpi ne, %1, %c0_i32_0 : i32
    scf.if %2 {
      %cst_23 = arith.constant 0xFF800000 : f32
      %80 = vector.broadcast %cst_23 : f32 to vector<128x1xf32>
      %c0_24 = arith.constant 0 : index
      %c0_25 = arith.constant 0 : index
      %81 = vector.load %arg9[%c0_24, %c0_25] : memref<128x1xf32, #tpu.memory_space<vmem>>, vector<128x1xf32>
      tpu.vector_store %arg9[%c0_24, %c0_25], %80 {strides = array<i32>} : memref<128x1xf32, #tpu.memory_space<vmem>>, vector<128x1xf32>,
      %cst_26 = arith.constant 0.000000e+00 : f32
      %82 = vector.broadcast %cst_26 : f32 to vector<128x1xf32>
      %c0_27 = arith.constant 0 : index
      %c0_28 = arith.constant 0 : index
      %83 = vector.load %arg10[%c0_27, %c0_28] : memref<128x1xf32, #tpu.memory_space<vmem>>, vector<128x1xf32>
      tpu.vector_store %arg10[%c0_27, %c0_28], %82 {strides = array<i32>} : memref<128x1xf32, #tpu.memory_space<vmem>>, vector<128x1xf32>,
      %cst_29 = arith.constant 0.000000e+00 : f32
      %84 = vector.broadcast %cst_29 : f32 to vector<128x128xf32>
      %c0_30 = arith.constant 0 : index
      %c0_31 = arith.constant 0 : index
      %85 = vector.load %arg11[%c0_30, %c0_31] : memref<128x128xf32, #tpu.memory_space<vmem>>, vector<128x128xf32>
      tpu.vector_store %arg11[%c0_30, %c0_31], %84 {strides = array<i32>} : memref<128x128xf32, #tpu.memory_space<vmem>>, vector<128x128xf32>,
    } else {
    }
    %c0 = arith.constant 0 : index
    %c0_1 = arith.constant 0 : index
    %c0_2 = arith.constant 0 : index
    %3 = vector.load %arg2[%c0, %c0_1, %c0_2] : memref<1x4x256xf32, #tpu.memory_space<vmem>>, vector<1x4x256xf32>
    %4 = vector.shape_cast %3 : vector<1x4x256xf32> to vector<4x256xf32>
    %c0_3 = arith.constant 0 : index
    %c0_4 = arith.constant 0 : index
    %5 = vector.load %arg3[%c0_3, %c0_4] : memref<128x4xf32, #tpu.memory_space<vmem>>, vector<128x4xf32>
    %6 = vector.extract_strided_slice %5 {offsets = [0, 0], sizes = [128, 1], strides = [1, 1]} : vector<128x4xf32> to vector<128x1xf32>
    %7 = vector.extract_strided_slice %4 {offsets = [0, 0], sizes = [1, 256], strides = [1, 1]} : vector<4x256xf32> to vector<1x256xf32>
    %8 = vector.broadcast %6 : vector<128x1xf32> to vector<128x256xf32>
    %9 = vector.broadcast %7 : vector<1x256xf32> to vector<128x256xf32>
    %10 = arith.mulf %8, %9 : vector<128x256xf32>
    %11 = vector.extract_strided_slice %5 {offsets = [0, 1], sizes = [128, 1], strides = [1, 1]} : vector<128x4xf32> to vector<128x1xf32>
    %12 = vector.extract_strided_slice %4 {offsets = [1, 0], sizes = [1, 256], strides = [1, 1]} : vector<4x256xf32> to vector<1x256xf32>
    %13 = vector.broadcast %11 : vector<128x1xf32> to vector<128x256xf32>
    %14 = vector.broadcast %12 : vector<1x256xf32> to vector<128x256xf32>
    %15 = arith.mulf %13, %14 : vector<128x256xf32>
    %16 = arith.addf %10, %15 : vector<128x256xf32>
    %17 = vector.extract_strided_slice %5 {offsets = [0, 2], sizes = [128, 1], strides = [1, 1]} : vector<128x4xf32> to vector<128x1xf32>
    %18 = vector.extract_strided_slice %4 {offsets = [2, 0], sizes = [1, 256], strides = [1, 1]} : vector<4x256xf32> to vector<1x256xf32>
    %19 = vector.broadcast %17 : vector<128x1xf32> to vector<128x256xf32>
    %20 = vector.broadcast %18 : vector<1x256xf32> to vector<128x256xf32>
    %21 = arith.mulf %19, %20 : vector<128x256xf32>
    %22 = arith.addf %16, %21 : vector<128x256xf32>
    %23 = vector.extract_strided_slice %5 {offsets = [0, 3], sizes = [128, 1], strides = [1, 1]} : vector<128x4xf32> to vector<128x1xf32>
    %24 = vector.extract_strided_slice %4 {offsets = [3, 0], sizes = [1, 256], strides = [1, 1]} : vector<4x256xf32> to vector<1x256xf32>
    %25 = vector.broadcast %23 : vector<128x1xf32> to vector<128x256xf32>
    %26 = vector.broadcast %24 : vector<1x256xf32> to vector<128x256xf32>
    %27 = arith.mulf %25, %26 : vector<128x256xf32>
    %28 = arith.addf %22, %27 : vector<128x256xf32>
    %c0_5 = arith.constant 0 : index
    %c0_6 = arith.constant 0 : index
    %29 = vector.load %arg4[%c0_5, %c0_6] : memref<128x4xf32, #tpu.memory_space<vmem>>, vector<128x4xf32>
    %30 = vector.extract_strided_slice %29 {offsets = [0, 0], sizes = [128, 1], strides = [1, 1]} : vector<128x4xf32> to vector<128x1xf32>
    %31 = vector.extract_strided_slice %4 {offsets = [0, 0], sizes = [1, 256], strides = [1, 1]} : vector<4x256xf32> to vector<1x256xf32>
    %32 = vector.broadcast %30 : vector<128x1xf32> to vector<128x256xf32>
    %33 = vector.broadcast %31 : vector<1x256xf32> to vector<128x256xf32>
    %34 = arith.mulf %32, %33 : vector<128x256xf32>
    %35 = vector.extract_strided_slice %29 {offsets = [0, 1], sizes = [128, 1], strides = [1, 1]} : vector<128x4xf32> to vector<128x1xf32>
    %36 = vector.extract_strided_slice %4 {offsets = [1, 0], sizes = [1, 256], strides = [1, 1]} : vector<4x256xf32> to vector<1x256xf32>
    %37 = vector.broadcast %35 : vector<128x1xf32> to vector<128x256xf32>
    %38 = vector.broadcast %36 : vector<1x256xf32> to vector<128x256xf32>
    %39 = arith.mulf %37, %38 : vector<128x256xf32>
    %40 = arith.addf %34, %39 : vector<128x256xf32>
    %41 = vector.extract_strided_slice %29 {offsets = [0, 2], sizes = [128, 1], strides = [1, 1]} : vector<128x4xf32> to vector<128x1xf32>
    %42 = vector.extract_strided_slice %4 {offsets = [2, 0], sizes = [1, 256], strides = [1, 1]} : vector<4x256xf32> to vector<1x256xf32>
    %43 = vector.broadcast %41 : vector<128x1xf32> to vector<128x256xf32>
    %44 = vector.broadcast %42 : vector<1x256xf32> to vector<128x256xf32>
    %45 = arith.mulf %43, %44 : vector<128x256xf32>
    %46 = arith.addf %40, %45 : vector<128x256xf32>
    %47 = vector.extract_strided_slice %29 {offsets = [0, 3], sizes = [128, 1], strides = [1, 1]} : vector<128x4xf32> to vector<128x1xf32>
    %48 = vector.extract_strided_slice %4 {offsets = [3, 0], sizes = [1, 256], strides = [1, 1]} : vector<4x256xf32> to vector<1x256xf32>
    %49 = vector.broadcast %47 : vector<128x1xf32> to vector<128x256xf32>
    %50 = vector.broadcast %48 : vector<1x256xf32> to vector<128x256xf32>
    %51 = arith.mulf %49, %50 : vector<128x256xf32>
    %52 = arith.addf %46, %51 : vector<128x256xf32>
    %53 = arith.truncf %52 : vector<128x256xf32> to vector<128x256xbf16>
    %c0_7 = arith.constant 0 : index
    %c0_8 = arith.constant 0 : index
    %54 = vector.load %arg9[%c0_7, %c0_8] : memref<128x1xf32, #tpu.memory_space<vmem>>, vector<128x1xf32>
    %cst = arith.constant dense<0xFF800000> : vector<128xf32>
    %55 = vector.multi_reduction <maximumf>, %28, %cst [1] : vector<128x256xf32> to vector<128xf32>
    %56 = vector.shape_cast %55 : vector<128xf32> to vector<128x1xf32>
    %57 = arith.maximumf %54, %56 : vector<128x1xf32>
    %58 = arith.subf %54, %57 : vector<128x1xf32>
    %59 = math.exp %58 : vector<128x1xf32>
    %60 = vector.broadcast %57 : vector<128x1xf32> to vector<128x256xf32>
    %61 = arith.subf %28, %60 : vector<128x256xf32>
    %62 = math.exp %61 : vector<128x256xf32>
    %c0_9 = arith.constant 0 : index
    %c0_10 = arith.constant 0 : index
    %63 = vector.load %arg10[%c0_9, %c0_10] : memref<128x1xf32, #tpu.memory_space<vmem>>, vector<128x1xf32>
    %64 = arith.mulf %59, %63 : vector<128x1xf32>
    %cst_11 = arith.constant dense<0.000000e+00> : vector<128xf32>
    %65 = vector.multi_reduction <add>, %62, %cst_11 [1] : vector<128x256xf32> to vector<128xf32>
    %66 = vector.shape_cast %65 : vector<128xf32> to vector<128x1xf32>
    %67 = arith.addf %64, %66 : vector<128x1xf32>
    %c0_12 = arith.constant 0 : index
    %c0_13 = arith.constant 0 : index
    %68 = vector.load %arg10[%c0_12, %c0_13] : memref<128x1xf32, #tpu.memory_space<vmem>>, vector<128x1xf32>
    tpu.vector_store %arg10[%c0_12, %c0_13], %67 {strides = array<i32>} : memref<128x1xf32, #tpu.memory_space<vmem>>, vector<128x1xf32>,
    %c0_14 = arith.constant 0 : index
    %c0_15 = arith.constant 0 : index
    %69 = vector.load %arg11[%c0_14, %c0_15] : memref<128x128xf32, #tpu.memory_space<vmem>>, vector<128x128xf32>
    %70 = vector.broadcast %59 : vector<128x1xf32> to vector<128x128xf32>
    %71 = arith.mulf %70, %69 : vector<128x128xf32>
    %72 = arith.truncf %62 : vector<128x256xf32> to vector<128x256xbf16>
    %cst_16 = arith.constant dense<0.000000e+00> : vector<128x128xf32>
    %73 = tpu.matmul %72, %53, %cst_16 {dimension_numbers = #tpu.dot_dimension_numbers<[1], [1], [0], [0], [0, 0, 1, 0], [], []>} : vector<128x256xbf16>, vector<128x256xbf16>, vector<128x128xf32> -> vector<128x128xf32>
    %74 = arith.addf %71, %73 : vector<128x128xf32>
    %c0_17 = arith.constant 0 : index
    %c0_18 = arith.constant 0 : index
    %75 = vector.load %arg11[%c0_17, %c0_18] : memref<128x128xf32, #tpu.memory_space<vmem>>, vector<128x128xf32>
    tpu.vector_store %arg11[%c0_17, %c0_18], %74 {strides = array<i32>} : memref<128x128xf32, #tpu.memory_space<vmem>>, vector<128x128xf32>,
    %c0_19 = arith.constant 0 : index
    %c0_20 = arith.constant 0 : index
    %76 = vector.load %arg9[%c0_19, %c0_20] : memref<128x1xf32, #tpu.memory_space<vmem>>, vector<128x1xf32>
    tpu.vector_store %arg9[%c0_19, %c0_20], %57 {strides = array<i32>} : memref<128x1xf32, #tpu.memory_space<vmem>>, vector<128x1xf32>,
    %c0_i32_21 = arith.constant 0 : i32
    %77 = arith.cmpi eq, %arg1, %c0_i32_21 : i32
    %78 = arith.extui %77 : i1 to i32
    %c0_i32_22 = arith.constant 0 : i32
    %79 = arith.cmpi ne, %78, %c0_i32_22 : i32
    scf.if %79 {
      %c0_23 = arith.constant 0 : index
      %c0_24 = arith.constant 0 : index
      %80 = vector.load %arg10[%c0_23, %c0_24] : memref<128x1xf32, #tpu.memory_space<vmem>>, vector<128x1xf32>
      %81 = tpu.reciprocal %80 {approx = true} : vector<128x1xf32> -> vector<128x1xf32>
      %c0_25 = arith.constant 0 : index
      %c0_26 = arith.constant 0 : index
      %82 = vector.load %arg11[%c0_25, %c0_26] : memref<128x128xf32, #tpu.memory_space<vmem>>, vector<128x128xf32>
      %83 = vector.broadcast %81 : vector<128x1xf32> to vector<128x128xf32>
      %84 = arith.mulf %82, %83 : vector<128x128xf32>
      %c0_27 = arith.constant 0 : index
      %c0_28 = arith.constant 0 : index
      %85 = vector.load %arg7[%c0_27, %c0_28] : memref<128x128xf32, #tpu.memory_space<vmem>>, vector<128x128xf32>
      %86 = arith.mulf %84, %85 : vector<128x128xf32>
      %c0_29 = arith.constant 0 : index
      %c0_30 = arith.constant 0 : index
      %87 = vector.load %arg6[%c0_29, %c0_30] : memref<4x128xf32, #tpu.memory_space<vmem>>, vector<4x128xf32>
      %cst_31 = arith.constant dense<0.000000e+00> : vector<4x128xf32>
      %88 = tpu.matmul %87, %86, %cst_31 {dimension_numbers = #tpu.dot_dimension_numbers<[1], [1], [0], [0], [0, 0, 1, 0], [], []>} : vector<4x128xf32>, vector<128x128xf32>, vector<4x128xf32> -> vector<4x128xf32>
      %c0_32 = arith.constant 0 : index
      %c0_33 = arith.constant 0 : index
      %89 = vector.load %arg5[%c0_32, %c0_33] : memref<128x4xf32, #tpu.memory_space<vmem>>, vector<128x4xf32>
      %cst_34 = arith.constant dense<0.000000e+00> : vector<4x4xf32>
      %90 = tpu.matmul %88, %89, %cst_34 {dimension_numbers = #tpu.dot_dimension_numbers<[1], [0], [0], [1], [0, 0, 1, 1], [], []>} : vector<4x128xf32>, vector<128x4xf32>, vector<4x4xf32> -> vector<4x4xf32>
      %c0_35 = arith.constant 0 : index
      %c0_36 = arith.constant 0 : index
      %c0_37 = arith.constant 0 : index
      %91 = vector.load %arg8[%c0_35, %c0_36, %c0_37] : memref<1x4x4xf32, #tpu.memory_space<vmem>>, vector<1x4x4xf32>
      %92 = vector.shape_cast %91 : vector<1x4x4xf32> to vector<4x4xf32>
      %93 = vector.shape_cast %90 : vector<4x4xf32> to vector<1x4x4xf32>
      tpu.vector_store %arg8[%c0_35, %c0_36, %c0_37], %93 {strides = array<i32>} : memref<1x4x4xf32, #tpu.memory_space<vmem>>, vector<1x4x4xf32>,
    } else {
    }
    return
  }
  func.func @transform_0(%arg0: i32, %arg1: i32) -> (i32, i32, i32) {
    %c0_i32 = arith.constant 0 : i32
    %c0_i32_0 = arith.constant 0 : i32
    return %arg0, %c0_i32, %arg1 : i32, i32, i32
  }
  func.func @transform_1(%arg0: i32, %arg1: i32) -> (i32, i32) {
    %c0_i32 = arith.constant 0 : i32
    %c0_i32_0 = arith.constant 0 : i32
    %c0_i32_1 = arith.constant 0 : i32
    return %c0_i32, %c0_i32_0 : i32, i32
  }
  func.func @transform_2(%arg0: i32, %arg1: i32) -> (i32, i32) {
    %c0_i32 = arith.constant 0 : i32
    %c0_i32_0 = arith.constant 0 : i32
    %c0_i32_1 = arith.constant 0 : i32
    return %c0_i32, %c0_i32_0 : i32, i32
  }
  func.func @transform_3(%arg0: i32, %arg1: i32) -> (i32, i32) {
    %c0_i32 = arith.constant 0 : i32
    %c0_i32_0 = arith.constant 0 : i32
    %c0_i32_1 = arith.constant 0 : i32
    return %c0_i32, %c0_i32_0 : i32, i32
  }
  func.func @transform_4(%arg0: i32, %arg1: i32) -> (i32, i32) {
    %c0_i32 = arith.constant 0 : i32
    %c0_i32_0 = arith.constant 0 : i32
    %c0_i32_1 = arith.constant 0 : i32
    return %c0_i32, %c0_i32_0 : i32, i32
  }
  func.func @transform_5(%arg0: i32, %arg1: i32) -> (i32, i32) {
    %c0_i32 = arith.constant 0 : i32
    %c0_i32_0 = arith.constant 0 : i32
    %c0_i32_1 = arith.constant 0 : i32
    return %c0_i32, %c0_i32_0 : i32, i32
  }
  func.func @transform_6(%arg0: i32, %arg1: i32) -> (i32, i32, i32) {
    %c0_i32 = arith.constant 0 : i32
    %c0_i32_0 = arith.constant 0 : i32
    %c0_i32_1 = arith.constant 0 : i32
    return %arg0, %c0_i32, %c0_i32_0 : i32, i32, i32
  }
}

</mosaic_0001>

<bundles_post_ra>
// kernel: tpu_custom_call.1
= control target key start
LH: loop header
LB: loop body
LE: loop exit
PB: predicated region body
PF: predicated region fallthrough
CT: control target
= control target key end

     0   :  { %s5180_s0 = inlined_call_operand.hbm [shape: f32[2,4,256], index: 0, kind: input, shape index: {}]   ;;  %s5181_s1 = inlined_call_operand.hbm [shape: f32[128,4], index: 1, kind: input, shape index: {}]   ;;  %s5182_s2 = inlined_call_operand.hbm [shape: f32[128,4], index: 2, kind: input, shape index: {}]   ;;  %s5183_s3 = inlined_call_operand.hbm [shape: f32[128,4], index: 3, kind: input, shape index: {}]   ;;  %s5184_s4 = inlined_call_operand.hbm [shape: f32[4,128], index: 4, kind: input, shape index: {}]   ;;  %s5185_s5 = inlined_call_operand.hbm [shape: f32[128,128], index: 5, kind: input, shape index: {}]   ;;  %s5186_s6 = inlined_call_operand.hbm [shape: f32[2,4,4], index: 6, kind: output, shape index: {}]  }
   0x1   :  { %5302 = sst [smem:[#allocation115_spill]] %s5181_s1 }
   0x2   :  { %11 = vsyncpa [#allocation6], 0 }
   0x3   :  { %13 = vsyncpa [#allocation6 + $0x1], 0 }
   0x4   :  { %14 = vsyncpa [#allocation9], 0 }
   0x5   :  { %15 = vsyncpa [#allocation12], 0 }
   0x6   :  { %16 = vsyncpa [#allocation15], 0 }
   0x7   :  { %17 = vsyncpa [#allocation7], 0 }
   0x8   :  { %19 = vsyncpa [#allocation7 + $0x1], 0  ;;  %s3496_s21 = smov 0   ;;  %s3498_s22 = smov 0  }
   0x9   :  { %s3500_s23 = smov 0   ;;  %s3502_s24 = smov 0  }
   0xa   :  { %s3504_s25 = smov 0   ;;  %s3506_s26 = smov 0  }
   0xb LB: > { %s5187_s27 = sadd.s32 4294967295, %s3442_s26   ;;  %p2697_p0 = scmp.ge.s32.totalorder %s3442_s26, 1  ;;  %s3442_s26 = sphi %s3506_s26, %s25_s26   ;;  %s3438_s25 = sphi %s3504_s25, %s5540_s25   ;;  %s3434_s24 = sphi %s3502_s24, %s5539_s24   ;;  %s3430_s23 = sphi %s3500_s23, %s5538_s23   ;;  %s3426_s22 = sphi %s3498_s22, %s5537_s22   ;;  %s3422_s21 = sphi %s3496_s21, %s5536_s21  }
   0xc   : > { %p3530_p1 = scmp.eq.s32.totalorder %s5187_s27, 0  ;;  %p201_p2 = scmp.lt.s32.totalorder %s3442_s26, 3 }
   0xd   : > { %s3444_s30 = smov [#allocation8]   ;;  %s3445_s9 = smov [#allocation11]  }
   0xe   : > { %s5303_s28 = scalar_select %p3530_p1, 1, 0 }
   0xf   : > { %p3535_p3 = pnand %p2697_p0, %p201_p2  ;;  %s213_s7 = sshll.u32 %s3444_s30, 4  ;;  %s3539_s7 = int_to_ptr.vmem [resolvable:$true] %s213_s7 }
  0x10   : > { %s239_s10 = sshll.u32 %s3445_s9, 4  ;;  %s3446_s11 = smov [#allocation10]   ;;  %s3550_s10 = int_to_ptr.vmem [resolvable:$true] %s239_s10 }
  0x11   : > { %s5304_s29 = scalar_select %p3535_p3, 1, 0 }
  0x12   : > { %p2896_p4 = pneg %p3535_p3  ;;  %s3552_s12 = sshll.u32 %s3446_s11, 4  ;;  %s227_s12 = int_to_ptr.vmem [resolvable:$true] %s3552_s12 }
  0x13   : > { %s5306_s1 = sld [smem:[#allocation115_spill]] }
  0x14   : > { %p3546_p6 = pnand %p2896_p4, %p3530_p1 }
  0x16   : > { %p3562_p8 = pneg %p3546_p6 }
  0x19   : > { %s3178_s15 = scalar_lea.hbm %s5306_s1, 2048 }
  0x1a   : > { %p3179_p7 = scmp.ne.s32.totalorder %s5306_s1, %s3178_s15  ;;  %p3185_p11 = scmp.lt.u32.totalorder %s3178_s15, %s5306_s1 }
  0x1c   : > { %p3181_p9 = pnand %p3562_p8, %p3179_p7 }
  0x1e   : > { %p3182_p10 = pneg %p3181_p9 }
  0x20   : > { %p3187_p12 = pnand %p3185_p11, %p3182_p10 }
  0x22   : > { %3190 = shalt.err (!%p3187_p12)
}
  0x23   : > { %s3191_s30 = scalar_lea.vmem %s3539_s7, 2048  ;;  %p3199_p4 = scmp.lt.s32.totalorder %s3539_s7, %s3539_s7 }
  0x24   : > { %p3192_p13 = scmp.ne.s32.totalorder %s3539_s7, %s3191_s30  ;;  %p3200_p5 = scmp.lt.s32.totalorder %s3191_s30, %s3191_s30 }
  0x26   : > { %p3194_p0 = pnand %p3192_p13, %p3562_p8  ;;  %p3201_p7 = por %p3200_p5, %p3199_p4 }
  0x28   : > { %p3195_p2 = pneg %p3194_p0 }
  0x2a   : > { %p3202_p9 = pnand %p3201_p7, %p3195_p2 }
  0x2c   : > { %3205 = shalt.err (!%p3202_p9)
}
  0x2d   : > { %s3447_s9 = smov 128   ;;  %s3448_s11 = smov 8  }
  0x2e   : > { %2899 = dma.hbm_to_vmem [thread:$0]  (!%p3546_p6), %s5306_s1, 2048, %s3539_s7, [#allocation9], %s3447_s9, %s3447_s9, %s3448_s11  }
  0x2f   : > { %s3206_s17 = scalar_lea.hbm %s5183_s3, 2048 }
  0x30   : > { %p3207_p5 = scmp.ne.s32.totalorder %s5183_s3, %s3206_s17  ;;  %p3213_p12 = scmp.lt.u32.totalorder %s3206_s17, %s5183_s3 }
  0x32   : > { %p3209_p10 = pnand %p3207_p5, %p3562_p8 }
  0x34   : > { %p3210_p11 = pneg %p3209_p10 }
  0x36   : > { %p3215_p13 = pnand %p3213_p12, %p3210_p11 }
  0x38   : > { %3218 = shalt.err (!%p3215_p13)
}
  0x39   : > { %s3219_s7 = scalar_lea.vmem %s3550_s10, 2048  ;;  %p3227_p7 = scmp.lt.s32.totalorder %s3550_s10, %s3550_s10 }
  0x3a   : > { %p3220_p0 = scmp.ne.s32.totalorder %s3550_s10, %s3219_s7  ;;  %p3228_p9 = scmp.lt.s32.totalorder %s3219_s7, %s3219_s7 }
  0x3c   : > { %p3222_p2 = pnand %p3220_p0, %p3562_p8  ;;  %p3229_p5 = por %p3228_p9, %p3227_p7 }
  0x3e   : > { %p3223_p4 = pneg %p3222_p2 }
  0x40   : > { %p3230_p10 = pnand %p3229_p5, %p3223_p4 }
  0x42   : > { %3233 = shalt.err (!%p3230_p10)
}
  0x43   : > { %2905 = dma.hbm_to_vmem [thread:$0]  (!%p3546_p6), %s5183_s3, 2048, %s3550_s10, [#allocation12], %s3447_s9, %s3447_s9, %s3448_s11  }
  0x44   : > { %s3234_s16 = scalar_lea.hbm %s5182_s2, 2048 }
  0x45   : > { %p3235_p11 = scmp.ne.s32.totalorder %s5182_s2, %s3234_s16  ;;  %p3241_p0 = scmp.lt.u32.totalorder %s3234_s16, %s5182_s2 }
  0x47   : > { %p3237_p12 = pnand %p3235_p11, %p3562_p8 }
  0x49   : > { %p3238_p13 = pneg %p3237_p12 }
  0x4b   : > { %p3243_p2 = pnand %p3241_p0, %p3238_p13 }
  0x4d   : > { %3246 = shalt.err (!%p3243_p2)
}
  0x4e   : > { %s3247_s7 = scalar_lea.vmem %s227_s12, 2048  ;;  %p3255_p5 = scmp.lt.s32.totalorder %s227_s12, %s227_s12 }
  0x4f   : > { %p3248_p4 = scmp.ne.s32.totalorder %s227_s12, %s3247_s7  ;;  %p3256_p10 = scmp.lt.s32.totalorder %s3247_s7, %s3247_s7 }
  0x51   : > { %p3250_p7 = pnand %p3248_p4, %p3562_p8  ;;  %p3257_p3 = por %p3256_p10, %p3255_p5 }
  0x53   : > { %p3251_p9 = pneg %p3250_p7 }
  0x55   : > { %p3258_p1 = pnand %p3257_p3, %p3251_p9 }
  0x57   : > { %3261 = shalt.err (!%p3258_p1)
}
  0x58   : > { %2902 = dma.hbm_to_vmem [thread:$0]  (!%p3546_p6), %s5182_s2, 2048, %s227_s12, [#allocation9], %s3447_s9, %s3447_s9, %s3448_s11  }
  0x59   : > { %s3449_s13 = smov [#allocation13]   ;;  %s3450_s15 = smov [#allocation14]  }
  0x5a   : > { %s253_s14 = sshll.u32 %s3449_s13, 4  ;;  %s263_s16 = sshll.u32 %s3450_s15, 4  ;;  %s254_s14 = int_to_ptr.vmem [resolvable:$true] %s253_s14  ;;  %s264_s16 = int_to_ptr.vmem [resolvable:$true] %s263_s16 }
  0x5b   : > { %s3262_s20 = scalar_lea.hbm %s5184_s4, 64 }
  0x5c   : > { %p3263_p1 = scmp.ne.s32.totalorder %s5184_s4, %s3262_s20  ;;  %p3269_p12 = scmp.lt.u32.totalorder %s3262_s20, %s5184_s4 }
  0x5e   : > { %p3265_p3 = pnand %p3263_p1, %p3562_p8 }
  0x60   : > { %p3266_p11 = pneg %p3265_p3 }
  0x62   : > { %p3271_p13 = pnand %p3269_p12, %p3266_p11 }
  0x64   : > { %3274 = shalt.err (!%p3271_p13)
}
  0x65   : > { %s3275_s12 = scalar_lea.vmem %s254_s14, 64  ;;  %p3283_p7 = scmp.lt.s32.totalorder %s254_s14, %s254_s14 }
  0x66   : > { %p3276_p0 = scmp.ne.s32.totalorder %s254_s14, %s3275_s12  ;;  %p3284_p9 = scmp.lt.s32.totalorder %s3275_s12, %s3275_s12 }
  0x68   : > { %p3278_p2 = pnand %p3276_p0, %p3562_p8  ;;  %p3285_p5 = por %p3284_p9, %p3283_p7 }
  0x6a   : > { %p3279_p4 = pneg %p3278_p2 }
  0x6c   : > { %p3286_p10 = pnand %p3285_p5, %p3279_p4 }
  0x6e   : > { %3289 = shalt.err (!%p3286_p10)
}
  0x6f   : > { %2908 = dma.hbm_to_vmem [thread:$0]  (!%p3546_p6), %s5184_s4, 64, %s254_s14, [#allocation12]  }
  0x70   : > { %s3290_s17 = scalar_lea.hbm %s5185_s5, 2048 }
  0x71   : > { %p3291_p1 = scmp.ne.s32.totalorder %s5185_s5, %s3290_s17  ;;  %p3297_p12 = scmp.lt.u32.totalorder %s3290_s17, %s5185_s5 }
  0x73   : > { %p3293_p3 = pnand %p3291_p1, %p3562_p8 }
  0x75   : > { %p3294_p11 = pneg %p3293_p3 }
  0x77   : > { %p3299_p13 = pnand %p3297_p12, %p3294_p11 }
  0x79   : > { %3302 = shalt.err (!%p3299_p13)
}
  0x7a   : > { %s3303_s10 = scalar_lea.vmem %s264_s16, 2048  ;;  %p3311_p7 = scmp.lt.s32.totalorder %s264_s16, %s264_s16 }
  0x7b   : > { %p3304_p0 = scmp.ne.s32.totalorder %s264_s16, %s3303_s10  ;;  %p3312_p9 = scmp.lt.s32.totalorder %s3303_s10, %s3303_s10 }
  0x7d   : > { %p3306_p2 = pnand %p3304_p0, %p3562_p8  ;;  %p3313_p5 = por %p3312_p9, %p3311_p7 }
  0x7f   : > { %p3307_p4 = pneg %p3306_p2 }
  0x81   : > { %p3314_p10 = pnand %p3313_p5, %p3307_p4 }
  0x83   : > { %3317 = shalt.err (!%p3314_p10)
}
  0x84   : > { %2911 = dma.hbm_to_vmem [thread:$0]  (!%p3546_p6), %s5185_s5, 2048, %s264_s16, [#allocation15], %s3447_s9, %s3447_s9, %s3448_s11  }
  0x85   : > { %s2696_s8 = sadd.s32 4294967294, %s3442_s26   ;;  %s37_s18 = sadd.s32 1, %s3438_s25 }
  0x86   : > { %s46_s27 = sadd.s32 1, %s3430_s23  ;;  %p39_p8 = scmp.ge.s32.totalorder %s37_s18, 2 }
  0x87   : > { %p53_p1 = scmp.ne.s32.totalorder %s3430_s23, %s3426_s22  ;;  %p54_p3 = scmp.eq.s32.totalorder %s3442_s26, 0 }
  0x88   : > { %p59_p11 = scmp.ne.s32.totalorder %s3426_s22, %s3422_s21  ;;  %s5542_s18 = smov (%p39_p8, %s37_s18), 0 }
  0x89   : > { %p3683_p12 = por %p54_p3, %p53_p1  ;;  %p5309_p13 = scmp.ne.s32.totalorder %s5303_s28, 0 }
  0x8a   : > { %s41_s11 = ssub.s32 %s3438_s25, %s5542_s18  ;;  %s5311_s16 = sadd.s32 4294967295, %s3442_s26  }
  0x8b   : > { %p3689_p6 = por %p5309_p13, %p59_p11  ;;  %p188_p0 = scmp.eq.s32.totalorder %s5311_s16, 1 }
  0x8c   : > { %p44_p2 = scmp.eq.s32.totalorder %s41_s11, 0  ;;  %p194_p4 = scmp.eq.s32.totalorder %s2696_s8, 1 }
  0x8d   : > { %p3697_p7 = por %p188_p0, %p53_p1  ;;  %p2925_p9 = scmp.lt.s32.totalorder %s3442_s26, 2 }
  0x8e   : > { %s3703_s15 = scalar_select %p44_p2, %s3430_s23, %s46_s27  }
  0x8f   : > { %s5312_s1 = scalar_select %p3697_p7, 1, 0 }
  0x90   : > { %p3705_p5 = por %p194_p4, %p59_p11  ;;  %s277_s19 = sand.u32 1, %s3430_s23  }
  0x91   : > { %s2704_s20 = sshll.u32 %s277_s19, 3  ;;  %s2719_s30 = sshll.u32 %s3438_s25, 7 }
  0x92   : > { %s5313_s17 = scalar_select %p3705_p5, 1, 0 }
  0x93   : > { %s3714_s14 = scalar_lea.hbm %s5180_s0, %s2719_s30  ;;  %s281_s12 = scalar_lea.vmem [#allocation5], %s2704_s20 }
  0x94   : > { %s291_s8 = sshll.u32 %s281_s12, 4  ;;  %p3720_p10 = pnand %p2925_p9, %p3683_p12  ;;  %s3716_s8 = int_to_ptr.vmem [resolvable:$true] %s291_s8 }
  0x95   : > { %s278_s11 = scalar_lea.sflag [#allocation6], %s277_s19  ;;  %s3318_s16 = scalar_lea.hbm %s3714_s14, 128 }
  0x96   : > { %p3319_p8 = scmp.ne.s32.totalorder %s3714_s14, %s3318_s16  ;;  %p3320_p1 = pneg %p3720_p10 }
  0x97   : > { %s3323_s7 = scalar_lea.hbm %s5180_s0, 256  ;;  %p3324_p12 = scmp.lt.u32.totalorder %s3714_s14, %s5180_s0 }
  0x98   : > { %p3321_p3 = pnand %p3320_p1, %p3319_p8  ;;  %p3325_p13 = scmp.lt.u32.totalorder %s3323_s7, %s3318_s16 }
  0x99   : > { %p3327_p2 = scmp.lt.u32.totalorder %s3318_s16, %s3714_s14 }
  0x9a   : > { %p3322_p11 = pneg %p3321_p3  ;;  %p3326_p0 = por %p3325_p13, %p3324_p12 }
  0x9c   : > { %p3328_p4 = por %p3327_p2, %p3326_p0 }
  0x9e   : > { %p3329_p9 = pnand %p3328_p4, %p3322_p11 }
  0xa0   : > { %3332 = shalt.err (!%p3329_p9)
}
  0xa1   : > { %s3333_s19 = scalar_lea.vmem %s3716_s8, 128  ;;  %s3451_s12 = smov [#allocation5]  }
  0xa2   : > { %p3334_p8 = scmp.ne.s32.totalorder %s3716_s8, %s3333_s19  ;;  %s3338_s20 = sshll.u32 %s3451_s12, 4  ;;  %s3339_s20 = int_to_ptr.vmem [resolvable:$false] %s3338_s20 }
  0xa3   : > { %s3340_s30 = scalar_lea.vmem %s3339_s20, 256  ;;  %p3341_p7 = scmp.lt.s32.totalorder %s3716_s8, %s3339_s20 }
  0xa4   : > { %p3336_p3 = pnand %p3334_p8, %p3320_p1  ;;  %p3342_p12 = scmp.lt.s32.totalorder %s3340_s30, %s3333_s19 }
  0xa6   : > { %p3337_p5 = pneg %p3336_p3  ;;  %p3343_p13 = por %p3342_p12, %p3341_p7 }
  0xa8   : > { %p3344_p0 = pnand %p3343_p13, %p3337_p5 }
  0xaa   : > { %3347 = shalt.err (!%p3344_p0)
}
  0xab   : > { %2915 = dma.hbm_to_vmem [thread:$0]  (!%p3720_p10), %s3714_s14, 128, %s3716_s8, %s278_s11  }
  0xac   : > { %p5315_p11 = scmp.ne.s32.totalorder %s5304_s29, 0 }
  0xae   : > { %300 = sbr.rel (%p5315_p11) target bundleno = 1902 (0x76e), region = 44 }
  0xb5   : > { %s3752_s16 = sand.u32 1, %s3426_s22  }
  0xb6   : > { %s2708_s7 = sshll.u32 %s3752_s16, 3  ;;  %s303_s13 = scalar_lea.sflag [#allocation6], %s3752_s16 }
  0xb7   : > { %s3756_s10 = scalar_lea.vmem [#allocation5], %s2708_s7 }
  0xb8   : > { %3401 = dma.done.wait (%p3689_p6), %s303_s13, 128  }
  0xb9   : > { %3403 = vsyncadd (%p3689_p6), %s303_s13, 4294967168  ;;  %p5316_p7 = scmp.ne.s32.totalorder %s5303_s28, 0 }
  0xbb   : > { %3405 = dma.done.wait (%p5316_p7), [#allocation9], 4096  }
  0xbc   : > { %3407 = vsyncadd (%p5316_p7), [#allocation9], 4294963200 }
  0xbd   : > { %3409 = dma.done.wait (%p5316_p7), [#allocation12], 2112  }
  0xbe   : > { %3411 = vsyncadd (%p5316_p7), [#allocation12], 4294965184 }
  0xbf   : > { %3413 = dma.done.wait (%p5316_p7), [#allocation15], 2048  }
  0xc0   : > { %3415 = vsyncadd (%p5316_p7), [#allocation15], 4294965248  ;;  %v5196_v0 = vmov 3   ;;  %v5194_v1 = vmov 1   ;;  %v412_v2 = vld [vmem:[#allocation8 + $0x8] sm:$0xff]  ;;  %v411_v3 = vld [vmem:[#allocation8] sm:$0xff]  ;;  %v508_v36 = vlaneseq }
  0xc1   : > { %2998 = vset.pattern.permute.xlu0 %v5196_v0  ;;  %2995 = vset.pattern.permute.xlu1 %v5194_v1  ;;  %v415_v4 = vld [vmem:[#allocation8 + $0x20] sm:$0xff]  ;;  %v3776_v5 = vld [vmem:[#allocation8 + $0x38] sm:$0xff]  ;;  %v5198_v6 = vmov 2   ;;  %v3780_v7 = vld [vmem:[#allocation8 + $0x50] sm:$0xff]  ;;  %v5192_v9 = vmov 0   ;;  %vm361_vm0 = vcmask 7168  }
  0xc2   : > { %855 = vperm.xlu0 %2998, %v412_v2   ;;  %559 = vperm.xlu1 %2995, %v411_v3   ;;  %v413_v8 = vld [vmem:[#allocation8 + $0x10] sm:$0xff]  ;;  %v416_v10 = vld [vmem:[#allocation8 + $0x28] sm:$0xff]  ;;  %v414_v11 = vld [vmem:[#allocation8 + $0x18] sm:$0xff]  ;;  %v509_v39 = vshrl.u32 %v508_v36, 7  ;;  %vm3459_vm1 = vmmov 0   ;;  %s2714_s28 = sshll.u32 %s3752_s16, 2 }
  0xc3   : > { %v419_v12 = vld [vmem:[#allocation8 + $0x40] sm:$0xff]  ;;  %v3786_v13 = vld [vmem:[#allocation8 + $0x58] sm:$0xff]  ;;  %v3790_v14 = vld [vmem:[#allocation8 + $0x70] sm:$0xff]  ;;  %s2716_s29 = sshll.u32 %s3434_s24, 6  ;;  %s354_s9 = scalar_lea.vmem [#allocation16], %s2714_s28  ;;  %vm2550_vm2 = vcmask 27648  }
  0xc4   : > { %v417_v15 = vld [vmem:[#allocation8 + $0x30] sm:$0xff]  ;;  %v3797_v16 = vld [vmem:[#allocation8 + $0x48] sm:$0xff]  ;;  %v3801_v17 = vld [vmem:[#allocation8 + $0x60] sm:$0xff]  ;;  %v624_v42 = vsub.s32 1, %v509_v39  ;;  %v510_v44 = vsub.s32 0, %v509_v39  ;;  %v514_v45 = vsub.s32 4, %v509_v39  ;;  %s5131_s11 = scalar_lea.hbm %s5186_s6, %s2716_s29 }
  0xc5   : > { %v3804_v18 = vld [vmem:[#allocation8 + $0x78] sm:$0xff]  ;;  %v628_v47 = vsub.s32 5, %v509_v39  ;;  %v770_v49 = vsub.s32 2, %v509_v39  ;;  %v916_v51 = vsub.s32 3, %v509_v39  ;;  %v920_v52 = vsub.s32 7, %v509_v39  ;;  %s2566_s14 = sshll.u32 %s354_s9, 4  ;;  %s5133_s14 = int_to_ptr.vmem [resolvable:$true] %s2566_s14 }
  0xc6   : > { %867 = vperm.xlu0 %2998, %v415_v4   ;;  %563 = vperm.xlu1 %2995, %v412_v2   ;;  %v410_v43 = vld [vmem:[%s3756_s10] sm:$0xff]  ;;  %v774_v53 = vsub.s32 6, %v509_v39  ;;  %s2553_s19 = scalar_lea.sflag [#allocation7], %s3752_s16  ;;  %s3348_s12 = scalar_lea.vmem %s5133_s14, 64 }
  0xc7   : > { %v625_v50 = vrot.slane %v410_v43, %v624_v42  ;;  %v511_v54 = vrot.slane %v410_v43, %v510_v44  ;;  %v515_v55 = vrot.slane %v410_v43, %v514_v45  ;;  %v629_v57 = vrot.slane %v410_v43, %v628_v47  ;;  %p3349_p6 = scmp.ne.s32.totalorder %s5133_s14, %s3348_s12  ;;  %p5533_p5 = scmp.ne.s32.totalorder %s5312_s1, 0 }
  0xc8   : > { %v771_v58 = vrot.slane %v410_v43, %v770_v49  ;;  %v917_v61 = vrot.slane %v410_v43, %v916_v51  ;;  %v921_v62 = vrot.slane %v410_v43, %v920_v52  ;;  %v775_v63 = vrot.slane %v410_v43, %v774_v53  ;;  %s3460_s24 = smov [#allocation16]  }
  0xc9   : > { %v3881_v60 = vrot.slane %v625_v50, %v624_v42  ;;  %p3350_p10 = pnand %p3349_p6, %p5533_p5  ;;  %s3352_s20 = sshll.u32 %s3460_s24, 4  ;;  %s3353_s20 = int_to_ptr.vmem [resolvable:$false] %s3352_s20 }
  0xca   : > { %879 = vperm.xlu0 %2998, %v3776_v5   ;;  %2996 = vset.pattern.permute.xlu1 %v5198_v6  ;;  %s3354_s30 = scalar_lea.vmem %s3353_s20, 128  ;;  %p3355_p2 = scmp.lt.s32.totalorder %s5133_s14, %s3353_s20 }
  0xcb   : > { %709 = vperm.xlu1 %2996, %v412_v2   ;;  %p3351_p1 = pneg %p3350_p10  ;;  %p3356_p4 = scmp.lt.s32.totalorder %s3354_s30, %s3348_s12 }
  0xcd   : > { %p3357_p9 = por %p3356_p4, %p3355_p2 }
  0xce   : > { %891 = vperm.xlu0 %2998, %v3780_v7  }
  0xcf   : > { %2997 = vset.pattern.permute.xlu1 %v5196_v0  ;;  %p3358_p8 = pnand %p3357_p9, %p3351_p1 }
  0xd0   : > { %851 = vperm.xlu1 %2997, %v411_v3  }
  0xd2   : > { %3018 = vset.pattern.permute.xlu0 %v5194_v1 }
  0xd3   : > { %567 = vperm.xlu0 %3018, %v413_v8  }
  0xd4   : > { %2999 = vset.pattern.permute.xlu1 %v5192_v9 }
  0xd5   : > { %439 = vperm.xlu1 %2999, %v413_v8  }
  0xd7   : > { %579 = vperm.xlu0 %3018, %v416_v10  }
  0xd9   : > { %444 = vperm.xlu1 %2999, %v414_v11  }
  0xdb   : > { %591 = vperm.xlu0 %3018, %v419_v12  }
  0xdd   : > { %3000 = vset.pattern.permute.xlu1 %v5194_v1 }
  0xde   : > { %571 = vperm.xlu1 %3000, %v414_v11  }
  0xdf   : > { %603 = vperm.xlu0 %3018, %v3786_v13  }
  0xe2   : > { %3001 = vset.pattern.permute.xlu1 %v5198_v6 }
  0xe3   : > { %615 = vperm.xlu0 %3018, %v3790_v14   ;;  %713 = vperm.xlu1 %3001, %v413_v8  }
  0xe7   : > { %3022 = vset.pattern.permute.xlu0 %v5198_v6  ;;  %3002 = vset.pattern.permute.xlu1 %v5196_v0 }
  0xe8   : > { %705 = vperm.xlu0 %3022, %v411_v3   ;;  %859 = vperm.xlu1 %3002, %v413_v8  }
  0xec   : > { %717 = vperm.xlu0 %3022, %v414_v11   ;;  %863 = vperm.xlu1 %3002, %v414_v11   ;;  %v3897_v11 = vrot.slane %v921_v62, %v916_v51 }
  0xf0   : > { %729 = vperm.xlu0 %3022, %v417_v15   ;;  %3003 = vset.pattern.permute.xlu1 %v5192_v9 }
  0xf1   : > { %454 = vperm.xlu1 %3003, %v416_v10  }
  0xf4   : > { %741 = vperm.xlu0 %3022, %v3797_v16  }
  0xf5   : > { %3004 = vset.pattern.permute.xlu1 %v5194_v1 }
  0xf6   : > { %575 = vperm.xlu1 %3004, %v415_v4  }
  0xf8   : > { %753 = vperm.xlu0 %3022, %v3801_v17  }
  0xfa   : > { %3005 = vset.pattern.permute.xlu1 %v5198_v6 }
  0xfb   : > { %721 = vperm.xlu1 %3005, %v415_v4  }
  0xfc   : > { %765 = vperm.xlu0 %3022, %v3804_v18  }
  0xff   : > { %725 = vperm.xlu1 %3005, %v416_v10  }
 0x100   : > { %3023 = vset.pattern.permute.xlu0 %v5192_v9 }
 0x101   : > { %429 = vperm.xlu0 %3023, %v411_v3   ;;  %v3885_v3 = vrot.slane %v515_v55, %v510_v44 }
 0x103   : > { %3006 = vset.pattern.permute.xlu1 %v5196_v0 }
 0x104   : > { %871 = vperm.xlu1 %3006, %v416_v10   ;;  %v3895_v10 = vrot.slane %v917_v61, %v916_v51 }
 0x105   : > { %434 = vperm.xlu0 %3023, %v412_v2   ;;  %v3883_v2 = vrot.slane %v511_v54, %v510_v44 }
 0x108   : > { %3007 = vset.pattern.permute.xlu1 %v5192_v9 }
 0x109   : > { %449 = vperm.xlu0 %3023, %v415_v4   ;;  %459 = vperm.xlu1 %3007, %v417_v15  }
 0x10d   : > { %3008 = vset.pattern.permute.xlu1 %v5194_v1  ;;  %464 = vperm.xlu0 %3023, %v3776_v5  }
 0x10e   : > { %583 = vperm.xlu1 %3008, %v417_v15  }
 0x111   : > { %479 = vperm.xlu0 %3023, %v3780_v7  }
 0x112   : > { %587 = vperm.xlu1 %3008, %v3776_v5  }
 0x116   : > { %3009 = vset.pattern.permute.xlu1 %v5198_v6 }
 0x117   : > { %733 = vperm.xlu1 %3009, %v3776_v5   ;;  %v3889_v5 = vrot.slane %v629_v57, %v624_v42 }
 0x11b   : > { %3010 = vset.pattern.permute.xlu1 %v5196_v0 }
 0x11c   : > { %875 = vperm.xlu1 %3010, %v417_v15  }
 0x120   : > { %3011 = vset.pattern.permute.xlu1 %v5192_v9 }
 0x121   : > { %469 = vperm.xlu1 %3011, %v419_v12  }
 0x125   : > { %474 = vperm.xlu1 %3011, %v3797_v16  }
 0x129   : > { %3012 = vset.pattern.permute.xlu1 %v5194_v1 }
 0x12a   : > { %595 = vperm.xlu1 %3012, %v3797_v16  }
 0x12e   : > { %3013 = vset.pattern.permute.xlu1 %v5198_v6 }
 0x12f   : > { %737 = vperm.xlu1 %3013, %v419_v12  }
 0x133   : > { %3014 = vset.pattern.permute.xlu1 %v5196_v0 }
 0x134   : > { %883 = vperm.xlu1 %3014, %v419_v12   ;;  %v3899_v12 = vrot.slane %v775_v63, %v770_v49 }
 0x138   : > { %3015 = vset.pattern.permute.xlu1 %v5192_v9 }
 0x139   : > { %484 = vperm.xlu1 %3015, %v3786_v13  }
 0x13d   : > { %3016 = vset.pattern.permute.xlu1 %v5194_v1 }
 0x13e   : > { %599 = vperm.xlu1 %3016, %v3780_v7  }
 0x141   : > { %v3828_v19 = vpop.permute.xlu1 %559  ;;  %v3830_v20 = vpop.permute.xlu0 %855 }
 0x142   : > { %3017 = vset.pattern.permute.xlu1 %v5198_v6  ;;  %v640_v8 = vmul.f32 %v3881_v60, %v3828_v19  ;;  %v641_v45 = vmul.f32 %v3889_v5, %v3828_v19  ;;  %v3913_v47 = vmul.f32 %v3895_v10, %v3830_v20 }
 0x143   : > { %745 = vperm.xlu1 %3017, %v3780_v7   ;;  %v3891_v7 = vrot.slane %v771_v58, %v770_v49  ;;  %v3917_v49 = vmul.f32 %v3897_v11, %v3830_v20 }
 0x145   : > { %v3834_v21 = vpop.permute.xlu1 %563  ;;  %v3836_v22 = vpop.permute.xlu0 %867 }
 0x146   : > { %v643_v50 = vmul.f32 %v3889_v5, %v3834_v21  ;;  %v3929_v19 = vmul.f32 %v3897_v11, %v3836_v22 }
 0x147   : > { %3019 = vset.pattern.permute.xlu1 %v5192_v9 }
 0x148   : > { %489 = vperm.xlu1 %3019, %v3801_v17  }
 0x149   : > { %v3840_v23 = vpop.permute.xlu0 %879 }
 0x14a   : > { %v3842_v24 = vpop.permute.xlu1 %709 }
 0x14b   : > { %v788_v51 = vmul.f32 %v3891_v7, %v3842_v24  ;;  %v789_v20 = vmul.f32 %v3899_v12, %v3842_v24 }
 0x14c   : > { %3020 = vset.pattern.permute.xlu1 %v5194_v1 }
 0x14d   : > { %607 = vperm.xlu1 %3020, %v3801_v17   ;;  %v3846_v25 = vpop.permute.xlu0 %891 }
 0x14f   : > { %v3848_v26 = vpop.permute.xlu1 %851 }
 0x150   : > { %v932_v55 = vmul.f32 %v3895_v10, %v3848_v26 }
 0x151   : > { %3021 = vset.pattern.permute.xlu1 %v5192_v9 }
 0x152   : > { %499 = vperm.xlu1 %3021, %v3790_v14   ;;  %v568_v27 = vpop.permute.xlu0 %567 }
 0x153   : > { %v644_v36 = vmul.f32 %v3881_v60, %v568_v27  ;;  %v645_v39 = vmul.f32 %v3889_v5, %v568_v27  ;;  %v642_v27 = vmul.f32 %v3881_v60, %v3834_v21 }
 0x154   : > { %v440_v28 = vpop.permute.xlu1 %439 }
 0x155   : > { %v530_v42 = vmul.f32 %v3883_v2, %v440_v28  ;;  %v531_v43 = vmul.f32 %v3885_v3, %v440_v28  ;;  %v3925_v28 = vmul.f32 %v3895_v10, %v3836_v22  ;;  %v933_v22 = vmul.f32 %v3897_v11, %v3848_v26 }
 0x156   : > { %v3852_v29 = vpop.permute.xlu0 %579  ;;  %504 = vperm.xlu1 %3021, %v3804_v18  }
 0x157   : > { %v676_v57 = vadd.f32 %v644_v36, %v530_v42  ;;  %v677_v58 = vadd.f32 %v645_v39, %v531_v43 }
 0x158   : > { %v3855_v30 = vpop.permute.xlu1 %444 }
 0x159   : > { %v532_v61 = vmul.f32 %v3883_v2, %v3855_v30  ;;  %v533_v6 = vmul.f32 %v3885_v3, %v3855_v30  ;;  %v651_v30 = vmul.f32 %v3889_v5, %v3852_v29 }
 0x15a   : > { %v3857_v31 = vpop.permute.xlu0 %591  ;;  %3024 = vset.pattern.permute.xlu1 %v5196_v0  ;;  %v650_v0 = vmul.f32 %v3881_v60, %v3852_v29 }
 0x15d   : > { %v3860_v32 = vpop.permute.xlu1 %571 }
 0x15e   : > { %v3862_v33 = vpop.permute.xlu0 %603  ;;  %v646_v52 = vmul.f32 %v3881_v60, %v3860_v32  ;;  %v647_v39 = vmul.f32 %v3889_v5, %v3860_v32 }
 0x15f   : > { %5317 = vst [vmem:[#allocation22_spill] sm:$0xff] %v3862_v33 }
 0x160   : > { %v678_v42 = vadd.f32 %v646_v52, %v532_v61 }
 0x162   : > { %v714_v34 = vpop.permute.xlu1 %713  ;;  %v3864_v35 = vpop.permute.xlu0 %615 }
 0x163   : > { %5318 = vst [vmem:[#allocation23_spill] sm:$0xff] %v3864_v35  ;;  %v790_v53 = vmul.f32 %v3891_v7, %v714_v34  ;;  %v791_v21 = vmul.f32 %v3899_v12, %v714_v34 }
 0x165   : > { %v822_v43 = vadd.f32 %v790_v53, %v676_v57 }
 0x167   : > { %v3866_v37 = vpop.permute.xlu0 %705  ;;  %v860_v38 = vpop.permute.xlu1 %859 }
 0x168   : > { %v936_v24 = vmul.f32 %v3895_v10, %v860_v38  ;;  %v937_v62 = vmul.f32 %v3897_v11, %v860_v38  ;;  %v786_v9 = vmul.f32 %v3891_v7, %v3866_v37  ;;  %v787_v1 = vmul.f32 %v3899_v12, %v3866_v37 }
 0x169   : > { %v823_v38 = vadd.f32 %v791_v21, %v677_v58 }
 0x16b   : > { %v3868_v40 = vpop.permute.xlu0 %717  ;;  %v3870_v41 = vpop.permute.xlu1 %863 }
 0x16c   : > { %v792_v63 = vmul.f32 %v3891_v7, %v3868_v40  ;;  %v793_v37 = vmul.f32 %v3899_v12, %v3868_v40  ;;  %v939_v40 = vmul.f32 %v3897_v11, %v3870_v41 }
 0x16e   : > { %v824_v32 = vadd.f32 %v792_v63, %v678_v42 }
 0x16f   : > { %v3873_v46 = vpop.permute.xlu0 %729 }
 0x170   : > { %v3875_v48 = vpop.permute.xlu1 %454 }
 0x173   : > { %v3877_v56 = vpop.permute.xlu0 %741 }
 0x174   : > { %5319 = vst [vmem:[#allocation24_spill] sm:$0xff] %v3877_v56  ;;  %v3965_v56 = vadd.f32 %v937_v62, %v823_v38 }
 0x175   : > { %v3879_v59 = vpop.permute.xlu1 %575 }
 0x176   : > { %5323 = vst [vmem:[#allocation28_spill] sm:$0xff] %v3965_v56 }
 0x177   : > { %v3887_v4 = vpop.permute.xlu0 %753 }
 0x178   : > { %5320 = vst [vmem:[#allocation25_spill] sm:$0xff] %v3887_v4 }
 0x17a   : > { %v3901_v15 = vpop.permute.xlu1 %721 }
 0x17b   : > { %v3907_v44 = vpop.permute.xlu0 %765 }
 0x17c   : > { %5321 = vst [vmem:[#allocation26_spill] sm:$0xff] %v3907_v44 }
 0x17e   : > { %v726_v54 = vpop.permute.xlu1 %725 }
 0x17f   : > { %v797_v38 = vmul.f32 %v3899_v12, %v726_v54 }
 0x180   : > { %v430_v34 = vpop.permute.xlu0 %429 }
 0x181   : > { %v526_v26 = vmul.f32 %v3883_v2, %v430_v34  ;;  %v527_v36 = vmul.f32 %v3885_v3, %v430_v34  ;;  %v3963_v34 = vadd.f32 %v936_v24, %v822_v43  ;;  %v796_v43 = vmul.f32 %v3891_v7, %v726_v54 }
 0x183   : > { %v672_v44 = vadd.f32 %v640_v8, %v526_v26  ;;  %v673_v35 = vadd.f32 %v641_v45, %v527_v36  ;;  %v872_v33 = vpop.permute.xlu1 %871  ;;  %5322 = vst [vmem:[#allocation27_spill] sm:$0xff] %v3963_v34  ;;  %v679_v8 = vadd.f32 %v647_v39, %v533_v6  ;;  %v938_v45 = vmul.f32 %v3895_v10, %v3870_v41 }
 0x184   : > { %v435_v4 = vpop.permute.xlu0 %434  ;;  %v1546_v6 = vmax.f32 %v3963_v34, %v3965_v56  ;;  %v648_v41 = vmul.f32 %v3881_v60, %v3879_v59  ;;  %v794_v36 = vmul.f32 %v3891_v7, %v3901_v15  ;;  %v795_v39 = vmul.f32 %v3899_v12, %v3901_v15  ;;  %v5400_v56 = vld [vmem:[#allocation26_spill] sm:$0xff] }
 0x185   : > { %v528_v52 = vmul.f32 %v3883_v2, %v435_v4  ;;  %v529_v53 = vmul.f32 %v3885_v3, %v435_v4  ;;  %v818_v21 = vadd.f32 %v786_v9, %v672_v44  ;;  %v819_v57 = vadd.f32 %v787_v1, %v673_v35 }
 0x186   : > { %v536_v9 = vmul.f32 %v3883_v2, %v3875_v48  ;;  %v825_v29 = vadd.f32 %v793_v37, %v679_v8  ;;  %v3985_v4 = vadd.f32 %v938_v45, %v824_v32  ;;  %v649_v44 = vmul.f32 %v3889_v5, %v3879_v59 }
 0x187   : > { %v674_v58 = vadd.f32 %v642_v27, %v528_v52  ;;  %v675_v61 = vadd.f32 %v643_v50, %v529_v53  ;;  %v3975_v24 = vadd.f32 %v932_v55, %v818_v21  ;;  %v3977_v62 = vadd.f32 %v933_v22, %v819_v57 }
 0x188   : > { %v450_v1 = vpop.permute.xlu0 %449  ;;  %v3981_v35 = vpop.permute.xlu1 %459  ;;  %5325 = vst [vmem:[#allocation30_spill] sm:$0xff] %v3985_v4  ;;  %v537_v55 = vmul.f32 %v3885_v3, %v3875_v48  ;;  %v4009_v53 = vadd.f32 %v939_v40, %v825_v29  ;;  %v942_v21 = vmul.f32 %v3895_v10, %v872_v33  ;;  %v943_v57 = vmul.f32 %v3897_v11, %v872_v33 }
 0x189   : > { %5324 = vst [vmem:[#allocation29_spill] sm:$0xff] %v3977_v62  ;;  %v534_v27 = vmul.f32 %v3883_v2, %v450_v1  ;;  %v535_v50 = vmul.f32 %v3885_v3, %v450_v1  ;;  %v1540_v22 = vmax.f32 %v3975_v24, %v3977_v62  ;;  %v820_v63 = vadd.f32 %v788_v51, %v674_v58 }
 0x18a   : > { %v821_v26 = vadd.f32 %v789_v20, %v675_v61  ;;  %v682_v51 = vadd.f32 %v650_v0, %v536_v9  ;;  %5328 = vst [vmem:[#allocation33_spill] sm:$0xff] %v4009_v53  ;;  %v683_v15 = vadd.f32 %v651_v30, %v537_v55  ;;  %v1549_v58 = vmax.f32 %v3985_v4, %v4009_v53 }
 0x18b   : > { %v680_v42 = vadd.f32 %v648_v41, %v534_v27  ;;  %v681_v59 = vadd.f32 %v649_v44, %v535_v50  ;;  %1541 = vmax.xlane.f32.xlu0 %v1540_v22  ;;  %v4004_v48 = vadd.f32 %v3913_v47, %v820_v63  ;;  %v3456_v41 = vmov -inf  }
 0x18c   : > { %v4007_v37 = vadd.f32 %v3917_v49, %v821_v26  ;;  %v465_v8 = vpop.permute.xlu0 %464  ;;  %v828_v0 = vadd.f32 %v796_v43, %v682_v51  ;;  %v829_v45 = vadd.f32 %v797_v38, %v683_v15  ;;  %362 = vst.msk [vmem:[#allocation2] sm:$0xff] %vm361_vm0, %v3456_v41  ;;  %363 = vst.msk [vmem:[#allocation2 + $0x8] sm:$0xff] %vm361_vm0, %v3456_v41 }
 0x18d   : > { %5326 = vst [vmem:[#allocation31_spill] sm:$0xff] %v4004_v48  ;;  %v584_v20 = vpop.permute.xlu1 %583  ;;  %v826_v32 = vadd.f32 %v794_v36, %v680_v42  ;;  %v827_v52 = vadd.f32 %v795_v39, %v681_v59  ;;  %v540_v33 = vmul.f32 %v3883_v2, %v465_v8  ;;  %364 = vst.msk [vmem:[#allocation2 + $0x10] sm:$0xff] %vm361_vm0, %v3456_v41 }
 0x18e   : > { %5327 = vst [vmem:[#allocation32_spill] sm:$0xff] %v4007_v37  ;;  %v1543_v54 = vmax.f32 %v4004_v48, %v4007_v37  ;;  %v4026_v61 = vadd.f32 %v942_v21, %v828_v0  ;;  %v653_v29 = vmul.f32 %v3889_v5, %v584_v20  ;;  %365 = vst.msk [vmem:[#allocation2 + $0x18] sm:$0xff] %vm361_vm0, %v3456_v41 }
 0x18f   : > { %v4016_v47 = vadd.f32 %v3925_v28, %v826_v32  ;;  %v4019_v49 = vadd.f32 %v3929_v19, %v827_v52  ;;  %1547 = vmax.xlane.f32.xlu0 %v1546_v6  ;;  %v4028_v28 = vadd.f32 %v943_v57, %v829_v45  ;;  %v541_v19 = vmul.f32 %v3885_v3, %v465_v8 }
 0x190   : > { %1544 = vmax.xlane.f32.xlu1 %v1543_v54  ;;  %5331 = vst [vmem:[#allocation36_spill] sm:$0xff] %v4026_v61  ;;  %v652_v6 = vmul.f32 %v3881_v60, %v584_v20  ;;  %366 = vst.msk [vmem:[#allocation2 + $0x20] sm:$0xff] %vm361_vm0, %v3456_v41  ;;  %v538_v44 = vmul.f32 %v3883_v2, %v3981_v35  ;;  %v539_v27 = vmul.f32 %v3885_v3, %v3981_v35 }
 0x191   : > { %5329 = vst [vmem:[#allocation34_spill] sm:$0xff] %v4016_v47  ;;  %5330 = vst [vmem:[#allocation35_spill] sm:$0xff] %v4019_v49  ;;  %v588_v40 = vpop.permute.xlu1 %587  ;;  %v1552_v30 = vmax.f32 %v4016_v47, %v4019_v49  ;;  %v1555_v55 = vmax.f32 %v4026_v61, %v4028_v28  ;;  %v946_v59 = vmul.f32 %v3895_v10, %v3840_v23 }
 0x192   : > { %5332 = vst [vmem:[#allocation37_spill] sm:$0xff] %v4028_v28  ;;  %v654_v9 = vmul.f32 %v3881_v60, %v588_v40  ;;  %v655_v1 = vmul.f32 %v3889_v5, %v588_v40  ;;  %367 = vst.msk [vmem:[#allocation2 + $0x28] sm:$0xff] %vm361_vm0, %v3456_v41  ;;  %v684_v39 = vadd.f32 %v652_v6, %v538_v44 }
 0x193   : > { %1550 = vmax.xlane.f32.xlu0 %v1549_v58  ;;  %368 = vst.msk [vmem:[#allocation2 + $0x30] sm:$0xff] %vm361_vm0, %v3456_v41  ;;  %369 = vst.msk [vmem:[#allocation2 + $0x38] sm:$0xff] %vm361_vm0, %v3456_v41  ;;  %v685_v42 = vadd.f32 %v653_v29, %v539_v27  ;;  %v947_v43 = vmul.f32 %v3897_v11, %v3840_v23  ;;  %v798_v51 = vmul.f32 %v3891_v7, %v3873_v46 }
 0x194   : > { %1553 = vmax.xlane.f32.xlu1 %v1552_v30  ;;  %370 = vst.msk [vmem:[#allocation2 + $0x40] sm:$0xff] %vm361_vm0, %v3456_v41  ;;  %371 = vst.msk [vmem:[#allocation2 + $0x48] sm:$0xff] %vm361_vm0, %v3456_v41  ;;  %v686_v22 = vadd.f32 %v654_v9, %v540_v33  ;;  %v687_v63 = vadd.f32 %v655_v1, %v541_v19  ;;  %v799_v20 = vmul.f32 %v3899_v12, %v3873_v46  ;;  %v5205_v33 = vmov 0.0  }
 0x195   : > { %372 = vst.msk [vmem:[#allocation2 + $0x50] sm:$0xff] %vm361_vm0, %v3456_v41  ;;  %373 = vst.msk [vmem:[#allocation2 + $0x58] sm:$0xff] %vm361_vm0, %v3456_v41  ;;  %v830_v54 = vadd.f32 %v798_v51, %v684_v39  ;;  %v656_v6 = vmul.f32 %v3881_v60, %v3857_v31  ;;  %v657_v29 = vmul.f32 %v3889_v5, %v3857_v31 }
 0x196   : > { %374 = vst.msk [vmem:[#allocation2 + $0x60] sm:$0xff] %vm361_vm0, %v3456_v41  ;;  %375 = vst.msk [vmem:[#allocation2 + $0x68] sm:$0xff] %vm361_vm0, %v3456_v41  ;;  %v734_v50 = vpop.permute.xlu1 %733  ;;  %v831_v8 = vadd.f32 %v799_v20, %v685_v42  ;;  %v817_v34 = vmul.f32 %v3899_v12, %v5400_v56 }
 0x197   : > { %376 = vst.msk [vmem:[#allocation2 + $0x70] sm:$0xff] %vm361_vm0, %v3456_v41  ;;  %377 = vst.msk [vmem:[#allocation2 + $0x78] sm:$0xff] %vm361_vm0, %v3456_v41  ;;  %v800_v26 = vmul.f32 %v3891_v7, %v734_v50  ;;  %v801_v36 = vmul.f32 %v3899_v12, %v734_v50  ;;  %1556 = vmax.xlane.f32.xlu0 %v1555_v55 }
 0x198   : > { %378 = vst.msk [vmem:[#allocation3] sm:$0xff] %vm361_vm0, %v5205_v33  ;;  %379 = vst.msk [vmem:[#allocation3 + $0x8] sm:$0xff] %vm361_vm0, %v5205_v33 }
 0x199   : > { %v832_v35 = vadd.f32 %v800_v26, %v686_v22  ;;  %v833_v38 = vadd.f32 %v801_v36, %v687_v63  ;;  %380 = vst.msk [vmem:[#allocation3 + $0x10] sm:$0xff] %vm361_vm0, %v5205_v33  ;;  %381 = vst.msk [vmem:[#allocation3 + $0x18] sm:$0xff] %vm361_vm0, %v5205_v33 }
 0x19a   : > { %382 = vst.msk [vmem:[#allocation3 + $0x20] sm:$0xff] %vm361_vm0, %v5205_v33  ;;  %383 = vst.msk [vmem:[#allocation3 + $0x28] sm:$0xff] %vm361_vm0, %v5205_v33 }
 0x19b   : > { %v876_v32 = vpop.permute.xlu1 %875  ;;  %v4067_v52 = vadd.f32 %v946_v59, %v832_v35  ;;  %v4069_v15 = vadd.f32 %v947_v43, %v833_v38  ;;  %384 = vst.msk [vmem:[#allocation3 + $0x30] sm:$0xff] %vm361_vm0, %v5205_v33  ;;  %385 = vst.msk [vmem:[#allocation3 + $0x38] sm:$0xff] %vm361_vm0, %v5205_v33  ;;  %v4138_v59 = vld [vmem:[#allocation10] sm:$0xff]  ;;  %v4141_v43 = vld [vmem:[#allocation10 + $0x8] sm:$0xff]  ;;  %v5339_v38 = vmov 2  }
 0x19c   : > { %v944_v21 = vmul.f32 %v3895_v10, %v876_v32  ;;  %v945_v57 = vmul.f32 %v3897_v11, %v876_v32  ;;  %386 = vst.msk [vmem:[#allocation3 + $0x40] sm:$0xff] %vm361_vm0, %v5205_v33  ;;  %387 = vst.msk [vmem:[#allocation3 + $0x48] sm:$0xff] %vm361_vm0, %v5205_v33  ;;  %v4144_v35 = vld [vmem:[#allocation10 + $0x10] sm:$0xff]  ;;  %v480_v32 = vpop.permute.xlu0 %479  ;;  %v4460_v48 = vld [vmem:[#allocation2 + $0x58] sm:$0xff] }
 0x19d   : > { %5333 = vst [vmem:[#allocation38_spill] sm:$0xff] %v4067_v52  ;;  %5334 = vst [vmem:[#allocation39_spill] sm:$0xff] %v4069_v15  ;;  %v1561_v23 = vmax.f32 %v4067_v52, %v4069_v15  ;;  %v1005_v52 = vld [vmem:[#allocation10 + $0x48] sm:$0xff] }
 0x19e   : > { %v4075_v0 = vadd.f32 %v944_v21, %v830_v54  ;;  %v4077_v45 = vadd.f32 %v945_v57, %v831_v8  ;;  %388 = vst.msk [vmem:[#allocation3 + $0x50] sm:$0xff] %vm361_vm0, %v5205_v33  ;;  %389 = vst.msk [vmem:[#allocation3 + $0x58] sm:$0xff] %vm361_vm0, %v5205_v33  ;;  %v546_v8 = vmul.f32 %v3883_v2, %v480_v32 }
 0x19f   : > { %1562 = vmax.xlane.f32.xlu0 %v1561_v23  ;;  %390 = vst.msk [vmem:[#allocation3 + $0x60] sm:$0xff] %vm361_vm0, %v5205_v33  ;;  %391 = vst.msk [vmem:[#allocation3 + $0x68] sm:$0xff] %vm361_vm0, %v5205_v33  ;;  %v547_v23 = vmul.f32 %v3885_v3, %v480_v32  ;;  %v4187_v32 = vld [vmem:[#allocation2 + $0x10] sm:$0xff] }
 0x1a0   : > { %5335 = vst [vmem:[#allocation40_spill] sm:$0xff] %v4075_v0  ;;  %5336 = vst [vmem:[#allocation41_spill] sm:$0xff] %v4077_v45  ;;  %v470_v46 = vpop.permute.xlu1 %469  ;;  %v1558_v40 = vmax.f32 %v4075_v0, %v4077_v45 }
 0x1a1   : > { %392 = vst.msk [vmem:[#allocation3 + $0x70] sm:$0xff] %vm361_vm0, %v5205_v33  ;;  %393 = vst.msk [vmem:[#allocation3 + $0x78] sm:$0xff] %vm361_vm0, %v5205_v33  ;;  %v542_v19 = vmul.f32 %v3883_v2, %v470_v46  ;;  %v543_v9 = vmul.f32 %v3885_v3, %v470_v46  ;;  %v4255_v33 = vld [vmem:[#allocation2 + $0x40] sm:$0xff] }
 0x1a2   : > { %1559 = vmax.xlane.f32.xlu1 %v1558_v40  ;;  %5345 = vst [vmem:[#allocation49_spill] sm:$0xff] %v4187_v32  ;;  %5358 = vst [vmem:[#allocation62_spill] sm:$0xff] %v4255_v33 }
 0x1a3   : > { %v688_v27 = vadd.f32 %v656_v6, %v542_v19  ;;  %v689_v50 = vadd.f32 %v657_v29, %v543_v9  ;;  %5392 = vst [vmem:[#allocation85_spill] sm:$0xff] %v4460_v48 }
 0x1a4   : > { %v4081_v30 = vpop.permute.xlu1 %474 }
 0x1a9   : > { %v4115_v58 = vpop.permute.xlu1 %595 }
 0x1ae   : > { %v738_v1 = vpop.permute.xlu1 %737 }
 0x1af   : > { %v802_v41 = vmul.f32 %v3891_v7, %v738_v1  ;;  %v803_v44 = vmul.f32 %v3899_v12, %v738_v1 }
 0x1b1   : > { %v834_v26 = vadd.f32 %v802_v41, %v688_v27  ;;  %v835_v36 = vadd.f32 %v803_v44, %v689_v50  ;;  %v952_v41 = vmul.f32 %v3895_v10, %v3846_v25  ;;  %v953_v44 = vmul.f32 %v3897_v11, %v3846_v25  ;;  %v4185_v25 = vld [vmem:[#allocation2 + $0x8] sm:$0xff] }
 0x1b2   : > { %5344 = vst [vmem:[#allocation48_spill] sm:$0xff] %v4185_v25 }
 0x1b3   : > { %v884_v55 = vpop.permute.xlu1 %883 }
 0x1b4   : > { %v948_v22 = vmul.f32 %v3895_v10, %v884_v55  ;;  %v949_v63 = vmul.f32 %v3897_v11, %v884_v55 }
 0x1b6   : > { %v4127_v39 = vadd.f32 %v948_v22, %v834_v26  ;;  %v4129_v42 = vadd.f32 %v949_v63, %v835_v36  ;;  %v4178_v26 = vld [vmem:[#allocation2] sm:$0xff] }
 0x1b7   : > { %5342 = vst [vmem:[#allocation46_spill] sm:$0xff] %v4178_v26 }
 0x1b8   : > { %5337 = vst [vmem:[#allocation42_spill] sm:$0xff] %v4127_v39  ;;  %5338 = vst [vmem:[#allocation43_spill] sm:$0xff] %v4129_v42  ;;  %v1564_v31 = vmax.f32 %v4127_v39, %v4129_v42  ;;  %v4154_v51 = vpop.permute.xlu1 %484  ;;  %v5364_v42 = vmov 1  }
 0x1ba   : > { %1565 = vmax.xlane.f32.xlu1 %v1564_v31 }
 0x1bd   : > { %v600_v20 = vpop.permute.xlu1 %599 }
 0x1be   : > { %v660_v57 = vmul.f32 %v3881_v60, %v600_v20  ;;  %v661_v54 = vmul.f32 %v3889_v5, %v600_v20 }
 0x1c0   : > { %v692_v19 = vadd.f32 %v660_v57, %v546_v8  ;;  %v693_v9 = vadd.f32 %v661_v54, %v547_v23  ;;  %v4197_v23 = vld [vmem:[#allocation2 + $0x20] sm:$0xff] }
 0x1c1   : > { %5348 = vst [vmem:[#allocation52_spill] sm:$0xff] %v4197_v23 }
 0x1c2   : > { %v746_v21 = vpop.permute.xlu1 %745 }
 0x1c3   : > { %v806_v46 = vmul.f32 %v3891_v7, %v746_v21  ;;  %v807_v40 = vmul.f32 %v3899_v12, %v746_v21 }
 0x1c5   : > { %v838_v6 = vadd.f32 %v806_v46, %v692_v19  ;;  %v839_v29 = vadd.f32 %v807_v40, %v693_v9  ;;  %v4199_v46 = vld [vmem:[#allocation2 + $0x18] sm:$0xff] }
 0x1c6   : > { %5349 = vst [vmem:[#allocation53_spill] sm:$0xff] %v4199_v46 }
 0x1c7   : > { %v4162_v1 = vpop.permute.xlu1 %489  ;;  %v4168_v27 = vadd.f32 %v952_v41, %v838_v6  ;;  %v4170_v50 = vadd.f32 %v953_v44, %v839_v29  ;;  %v4211_v29 = vld [vmem:[#allocation2 + $0x28] sm:$0xff]  ;;  %v4218_v44 = vld [vmem:[#allocation8 + $0x68] sm:$0xff] }
 0x1c8   : > { %5352 = vst [vmem:[#allocation56_spill] sm:$0xff] %v4211_v29 }
 0x1c9   : > { %5340 = vst [vmem:[#allocation44_spill] sm:$0xff] %v4168_v27  ;;  %5341 = vst [vmem:[#allocation45_spill] sm:$0xff] %v4170_v50  ;;  %v1570_v22 = vmax.f32 %v4168_v27, %v4170_v50 }
 0x1cb   : > { %887 = vperm.xlu1 %3024, %v3797_v16   ;;  %v4147_v16 = vld [vmem:[#allocation10 + $0x20] sm:$0xff] }
 0x1cc   : > { %v4172_v55 = vpop.permute.xlu1 %607 }
 0x1cf   : > { %895 = vperm.xlu1 %3024, %v3786_v13  }
 0x1d1   : > { %v4176_v63 = vpop.permute.xlu1 %499 }
 0x1d3   : > { %899 = vperm.xlu1 %3024, %v3801_v17   ;;  %v4150_v17 = vld [vmem:[#allocation10 + $0x28] sm:$0xff] }
 0x1d5   : > { %v4180_v36 = vpop.permute.xlu1 %504 }
 0x1d7   : > { %907 = vperm.xlu1 %3024, %v3790_v14  }
 0x1db   : > { %911 = vperm.xlu1 %3024, %v3804_v18  }
 0x1df   : > { %1381 = vperm.xlu1 %3024, %v4138_v59  }
 0x1e3   : > { %1385 = vperm.xlu1 %3024, %v4141_v43  }
 0x1e7   : > { %1389 = vperm.xlu1 %3024, %v4144_v35  }
 0x1eb   : > { %1397 = vperm.xlu1 %3024, %v4147_v16  }
 0x1ef   : > { %1401 = vperm.xlu1 %3024, %v4150_v17  }
 0x1f3   : > { %3025 = vset.pattern.permute.xlu1 %v5339_v38 }
 0x213   : > { %1571 = vmax.xlane.f32.xlu1 %v1570_v22 }
 0x218   : > { %v1542_v31 = vpop.xlane.xlu0 %1541 }
 0x219   : > { %v4183_v20 = vmax.f32 %v4178_v26, %v1542_v31  ;;  %v4226_v31 = vld [vmem:[#allocation2 + $0x38] sm:$0xff] }
 0x21a   : > { %5354 = vst [vmem:[#allocation58_spill] sm:$0xff] %v4226_v31 }
 0x21b   : > { %5343 = vst [vmem:[#allocation47_spill] sm:$0xff] %v4183_v20  ;;  %2198 = vst.msk [vmem:[#allocation2] sm:$0xff] %vm361_vm0, %v4183_v20 }
 0x21c   : > { %v1548_v57 = vpop.xlane.xlu0 %1547 }
 0x21d   : > { %v1545_v21 = vpop.xlane.xlu1 %1544  ;;  %v4195_v8 = vmax.f32 %v4187_v32, %v1548_v57 }
 0x21e   : > { %v4192_v54 = vmax.f32 %v4185_v25, %v1545_v21 }
 0x21f   : > { %5347 = vst [vmem:[#allocation51_spill] sm:$0xff] %v4195_v8  ;;  %2200 = vst.msk [vmem:[#allocation2 + $0x10] sm:$0xff] %vm361_vm0, %v4195_v8 }
 0x220   : > { %5346 = vst [vmem:[#allocation50_spill] sm:$0xff] %v4192_v54  ;;  %2199 = vst.msk [vmem:[#allocation2 + $0x8] sm:$0xff] %vm361_vm0, %v4192_v54  ;;  %v1551_v19 = vpop.xlane.xlu0 %1550 }
 0x221   : > { %v1554_v40 = vpop.xlane.xlu1 %1553  ;;  %v4209_v6 = vmax.f32 %v4199_v46, %v1551_v19 }
 0x222   : > { %v4206_v9 = vmax.f32 %v4197_v23, %v1554_v40 }
 0x223   : > { %5351 = vst [vmem:[#allocation55_spill] sm:$0xff] %v4209_v6  ;;  %2201 = vst.msk [vmem:[#allocation2 + $0x18] sm:$0xff] %vm361_vm0, %v4209_v6 }
 0x224   : > { %5350 = vst [vmem:[#allocation54_spill] sm:$0xff] %v4206_v9  ;;  %2202 = vst.msk [vmem:[#allocation2 + $0x20] sm:$0xff] %vm361_vm0, %v4206_v9  ;;  %749 = vperm.xlu1 %3025, %v3786_v13   ;;  %v1557_v41 = vpop.xlane.xlu0 %1556  ;;  %v4232_v13 = vld [vmem:[#allocation2 + $0x30] sm:$0xff] }
 0x225   : > { %v4221_v22 = vmax.f32 %v4211_v29, %v1557_v41  ;;  %5356 = vst [vmem:[#allocation60_spill] sm:$0xff] %v4232_v13  ;;  %v4248_v41 = vld [vmem:[#allocation10 + $0x30] sm:$0xff]  ;;  %v544_v29 = vmul.f32 %v3883_v2, %v4081_v30 }
 0x227   : > { %5353 = vst [vmem:[#allocation57_spill] sm:$0xff] %v4221_v22  ;;  %2203 = vst.msk [vmem:[#allocation2 + $0x28] sm:$0xff] %vm361_vm0, %v4221_v22 }
 0x228   : > { %757 = vperm.xlu1 %3025, %v4218_v44  }
 0x22c   : > { %761 = vperm.xlu1 %3025, %v3790_v14   ;;  %v1563_v21 = vpop.xlane.xlu0 %1562  ;;  %v4243_v14 = vld [vmem:[#allocation10 + $0x18] sm:$0xff] }
 0x22d   : > { %v4230_v57 = vmax.f32 %v4226_v31, %v1563_v21  ;;  %v658_v21 = vmul.f32 %v3881_v60, %v4115_v58  ;;  %v4257_v31 = vld [vmem:[#allocation10 + $0x38] sm:$0xff] }
 0x22f   : > { %5355 = vst [vmem:[#allocation59_spill] sm:$0xff] %v4230_v57  ;;  %2205 = vst.msk [vmem:[#allocation2 + $0x38] sm:$0xff] %vm361_vm0, %v4230_v57  ;;  %v1560_v40 = vpop.xlane.xlu1 %1559  ;;  %v690_v23 = vadd.f32 %v658_v21, %v544_v29 }
 0x230   : > { %v4237_v19 = vmax.f32 %v4232_v13, %v1560_v40  ;;  %1253 = vperm.xlu1 %3025, %v4138_v59   ;;  %v659_v40 = vmul.f32 %v3889_v5, %v4115_v58  ;;  %v545_v13 = vmul.f32 %v3885_v3, %v4081_v30  ;;  %v5360_v58 = vld [vmem:[#allocation24_spill] sm:$0xff] }
 0x231   : > { %v804_v26 = vmul.f32 %v3891_v7, %v5360_v58  ;;  %v805_v50 = vmul.f32 %v3899_v12, %v5360_v58 }
 0x232   : > { %5357 = vst [vmem:[#allocation61_spill] sm:$0xff] %v4237_v19  ;;  %2204 = vst.msk [vmem:[#allocation2 + $0x30] sm:$0xff] %vm361_vm0, %v4237_v19  ;;  %v691_v25 = vadd.f32 %v659_v40, %v545_v13  ;;  %v5361_v13 = vmov 3  }
 0x234   : > { %1257 = vperm.xlu1 %3025, %v4141_v43   ;;  %v837_v21 = vadd.f32 %v805_v50, %v691_v25  ;;  %v664_v50 = vmul.f32 %v3881_v60, %v4172_v55  ;;  %v665_v25 = vmul.f32 %v3889_v5, %v4172_v55 }
 0x238   : > { %1265 = vperm.xlu1 %3025, %v4243_v14  }
 0x23c   : > { %1269 = vperm.xlu1 %3025, %v4147_v16  }
 0x240   : > { %1273 = vperm.xlu1 %3025, %v4150_v17  }
 0x244   : > { %1277 = vperm.xlu1 %3025, %v4248_v41  }
 0x247   : > { %v1566_v46 = vpop.xlane.xlu1 %1565 }
 0x248   : > { %v4264_v32 = vmax.f32 %v4255_v33, %v1566_v46  ;;  %1281 = vperm.xlu1 %3025, %v4257_v31   ;;  %v836_v46 = vadd.f32 %v804_v26, %v690_v23  ;;  %v551_v26 = vmul.f32 %v3885_v3, %v4162_v1 }
 0x24a   : > { %5359 = vst [vmem:[#allocation63_spill] sm:$0xff] %v4264_v32  ;;  %2206 = vst.msk [vmem:[#allocation2 + $0x40] sm:$0xff] %vm361_vm0, %v4264_v32 }
 0x24b   : > { %v888_v27 = vpop.permute.xlu1 %887 }
 0x24c   : > { %v950_v30 = vmul.f32 %v3895_v10, %v888_v27  ;;  %v951_v29 = vmul.f32 %v3897_v11, %v888_v27  ;;  %3027 = vset.pattern.permute.xlu1 %v5361_v13  ;;  %v550_v27 = vmul.f32 %v3883_v2, %v4162_v1 }
 0x24d   : > { %1409 = vperm.xlu1 %3027, %v4257_v31  }
 0x24e   : > { %v4277_v40 = vadd.f32 %v950_v30, %v836_v46  ;;  %v4279_v33 = vadd.f32 %v951_v29, %v837_v21  ;;  %v696_v30 = vadd.f32 %v664_v50, %v550_v27  ;;  %v697_v29 = vadd.f32 %v665_v25, %v551_v26  ;;  %v5365_v46 = vld [vmem:[#allocation25_spill] sm:$0xff] }
 0x24f   : > { %v896_v39 = vpop.permute.xlu1 %895  ;;  %v810_v21 = vmul.f32 %v3891_v7, %v5365_v46 }
 0x250   : > { %5362 = vst [vmem:[#allocation24_spill] sm:$0xff] %v4277_v40  ;;  %5363 = vst [vmem:[#allocation64_spill] sm:$0xff] %v4279_v33  ;;  %v1567_v58 = vmax.f32 %v4277_v40, %v4279_v33  ;;  %v955_v4 = vmul.f32 %v3897_v11, %v896_v39 }
 0x251   : > { %3028 = vset.pattern.permute.xlu1 %v5364_v42  ;;  %v842_v1 = vadd.f32 %v810_v21, %v696_v30  ;;  %v548_v30 = vmul.f32 %v3883_v2, %v4154_v51  ;;  %v5373_v21 = vld [vmem:[#allocation22_spill] sm:$0xff] }
 0x252   : > { %1568 = vmax.xlane.f32.xlu0 %v1567_v58  ;;  %v811_v58 = vmul.f32 %v3899_v12, %v5365_v46 }
 0x253   : > { %v900_v23 = vpop.permute.xlu1 %899 }
 0x254   : > { %v956_v33 = vmul.f32 %v3895_v10, %v900_v23  ;;  %v957_v40 = vmul.f32 %v3897_v11, %v900_v23  ;;  %v843_v45 = vadd.f32 %v811_v58, %v697_v29  ;;  %v549_v29 = vmul.f32 %v3885_v3, %v4154_v51 }
 0x255   : > { %v662_v58 = vmul.f32 %v3881_v60, %v5373_v21 }
 0x256   : > { %v4298_v0 = vadd.f32 %v956_v33, %v842_v1  ;;  %v4300_v15 = vadd.f32 %v957_v40, %v843_v45  ;;  %v663_v1 = vmul.f32 %v3889_v5, %v5373_v21 }
 0x257   : > { %v4304_v27 = vpop.permute.xlu1 %907 }
 0x258   : > { %5366 = vst [vmem:[#allocation25_spill] sm:$0xff] %v4298_v0  ;;  %5367 = vst [vmem:[#allocation65_spill] sm:$0xff] %v4300_v15  ;;  %v1576_v55 = vmax.f32 %v4298_v0, %v4300_v15  ;;  %v694_v0 = vadd.f32 %v662_v58, %v548_v30  ;;  %v695_v53 = vadd.f32 %v663_v1, %v549_v29 }
 0x25b   : > { %v4306_v26 = vpop.permute.xlu1 %911 }
 0x25f   : > { %v4309_v50 = vpop.permute.xlu1 %1381 }
 0x263   : > { %v4312_v25 = vpop.permute.xlu1 %1385 }
 0x267   : > { %v4316_v45 = vpop.permute.xlu1 %1389 }
 0x268   : > { %5368 = vst [vmem:[#allocation66_spill] sm:$0xff] %v4316_v45 }
 0x26b   : > { %v4319_v33 = vpop.permute.xlu1 %1397 }
 0x26c   : > { %5369 = vst [vmem:[#allocation67_spill] sm:$0xff] %v4319_v33 }
 0x26f   : > { %v4323_v40 = vpop.permute.xlu1 %1401 }
 0x270   : > { %5370 = vst [vmem:[#allocation68_spill] sm:$0xff] %v4323_v40 }
 0x271   : > { %1577 = vmax.xlane.f32.xlu1 %v1576_v55  ;;  %v4342_v55 = vld [vmem:[#allocation10 + $0x40] sm:$0xff] }
 0x282   : > { %611 = vperm.xlu1 %3028, %v4218_v44  }
 0x286   : > { %619 = vperm.xlu1 %3028, %v3804_v18   ;;  %v4326_v18 = vld [vmem:[#allocation2 + $0x50] sm:$0xff] }
 0x287   : > { %5371 = vst [vmem:[#allocation69_spill] sm:$0xff] %v4326_v18 }
 0x28a   : > { %1125 = vperm.xlu1 %3028, %v4138_v59  }
 0x28e   : > { %1129 = vperm.xlu1 %3028, %v4141_v43  }
 0x292   : > { %1133 = vperm.xlu1 %3028, %v4144_v35  }
 0x296   : > { %1137 = vperm.xlu1 %3028, %v4243_v14  }
 0x29a   : > { %1141 = vperm.xlu1 %3028, %v4147_v16  }
 0x29e   : > { %1145 = vperm.xlu1 %3028, %v4150_v17  }
 0x2a0   : > { %v1572_v23 = vpop.xlane.xlu1 %1571 }
 0x2a1   : > { %v4333_v46 = vmax.f32 %v4326_v18, %v1572_v23  ;;  %v954_v18 = vmul.f32 %v3895_v10, %v896_v39 }
 0x2a2   : > { %1149 = vperm.xlu1 %3028, %v4248_v41  }
 0x2a3   : > { %5372 = vst [vmem:[#allocation70_spill] sm:$0xff] %v4333_v46  ;;  %2208 = vst.msk [vmem:[#allocation2 + $0x50] sm:$0xff] %vm361_vm0, %v4333_v46 }
 0x2a4   : > { %v750_v15 = vpop.permute.xlu1 %749 }
 0x2a5   : > { %v808_v51 = vmul.f32 %v3891_v7, %v750_v15  ;;  %v809_v23 = vmul.f32 %v3899_v12, %v750_v15  ;;  %v554_v15 = vmul.f32 %v3883_v2, %v4176_v63 }
 0x2a6   : > { %1157 = vperm.xlu1 %3028, %v4342_v55  }
 0x2a7   : > { %v840_v21 = vadd.f32 %v808_v51, %v694_v0  ;;  %v841_v28 = vadd.f32 %v809_v23, %v695_v53  ;;  %v5376_v53 = vmov 0   ;;  %v555_v0 = vmul.f32 %v3885_v3, %v4176_v63 }
 0x2a8   : > { %v960_v63 = vmul.f32 %v3895_v10, %v4304_v27 }
 0x2a9   : > { %v4349_v61 = vadd.f32 %v954_v18, %v840_v21  ;;  %v4351_v37 = vadd.f32 %v955_v4, %v841_v28  ;;  %v4361_v4 = vpop.permute.xlu1 %757  ;;  %v5377_v18 = vld [vmem:[#allocation23_spill] sm:$0xff] }
 0x2aa   : > { %1161 = vperm.xlu1 %3028, %v1005_v52   ;;  %v668_v29 = vmul.f32 %v3881_v60, %v5377_v18  ;;  %v669_v58 = vmul.f32 %v3889_v5, %v5377_v18  ;;  %v961_v18 = vmul.f32 %v3897_v11, %v4304_v27 }
 0x2ab   : > { %5374 = vst [vmem:[#allocation22_spill] sm:$0xff] %v4349_v61  ;;  %5375 = vst [vmem:[#allocation71_spill] sm:$0xff] %v4351_v37  ;;  %v1573_v30 = vmax.f32 %v4349_v61, %v4351_v37  ;;  %v1011_v61 = vld [vmem:[#allocation10 + $0x78] sm:$0xff] }
 0x2ac   : > { %v701_v51 = vadd.f32 %v669_v58, %v555_v0  ;;  %v4393_v0 = vld [vmem:[#allocation2 + $0x48] sm:$0xff] }
 0x2ad   : > { %1574 = vmax.xlane.f32.xlu0 %v1573_v30  ;;  %v762_v28 = vpop.permute.xlu1 %761  ;;  %5381 = vst [vmem:[#allocation74_spill] sm:$0xff] %v4393_v0 }
 0x2ae   : > { %3029 = vset.pattern.permute.xlu1 %v5339_v38  ;;  %v815_v1 = vmul.f32 %v3899_v12, %v762_v28 }
 0x2af   : > { %1285 = vperm.xlu1 %3029, %v4342_v55  }
 0x2b0   : > { %v847_v21 = vadd.f32 %v815_v1, %v701_v51 }
 0x2b1   : > { %v4370_v39 = vpop.permute.xlu1 %1253 }
 0x2b3   : > { %1289 = vperm.xlu1 %3029, %v1005_v52  }
 0x2b5   : > { %v4379_v30 = vpop.permute.xlu1 %1257 }
 0x2b7   : > { %3030 = vset.pattern.permute.xlu1 %v5361_v13 }
 0x2b8   : > { %1413 = vperm.xlu1 %3030, %v4342_v55  }
 0x2bc   : > { %1417 = vperm.xlu1 %3030, %v1005_v52  }
 0x2c0   : > { %3031 = vset.pattern.permute.xlu1 %v5376_v53 }
 0x2c3   : > { %494 = vperm.xlu0 %3023, %v4218_v44  }
 0x2c7   : > { %1019 = vperm.xlu0 %3023, %v4141_v43   ;;  %v814_v43 = vmul.f32 %v3891_v7, %v762_v28  ;;  %v4389_v28 = vadd.f32 %v961_v18, %v847_v21  ;;  %v4426_v18 = vld [vmem:[#allocation10 + $0x50] sm:$0xff] }
 0x2c9   : > { %5379 = vst [vmem:[#allocation72_spill] sm:$0xff] %v4389_v28 }
 0x2cb   : > { %1029 = vperm.xlu0 %3023, %v4243_v14  }
 0x2cf   : > { %1039 = vperm.xlu0 %3023, %v4150_v17   ;;  %v700_v17 = vadd.f32 %v668_v29, %v554_v15  ;;  %v4391_v15 = vpop.permute.xlu1 %1265 }
 0x2d0   : > { %5380 = vst [vmem:[#allocation73_spill] sm:$0xff] %v4391_v15 }
 0x2d1   : > { %v846_v23 = vadd.f32 %v814_v43, %v700_v17 }
 0x2d3   : > { %1044 = vperm.xlu0 %3023, %v4248_v41   ;;  %v4387_v37 = vadd.f32 %v960_v63, %v846_v23  ;;  %v4400_v1 = vpop.permute.xlu1 %1269  ;;  %v4415_v23 = vld [vmem:[#allocation2 + $0x60] sm:$0xff] }
 0x2d4   : > { %5383 = vst [vmem:[#allocation76_spill] sm:$0xff] %v4400_v1  ;;  %5388 = vst [vmem:[#allocation81_spill] sm:$0xff] %v4415_v23 }
 0x2d5   : > { %5378 = vst [vmem:[#allocation23_spill] sm:$0xff] %v4387_v37  ;;  %v1582_v29 = vmax.f32 %v4387_v37, %v4389_v28  ;;  %v4454_v28 = vld [vmem:[#allocation10 + $0x70] sm:$0xff] }
 0x2d7   : > { %3026 = vset.pattern.permute.xlu0 %v5361_v13 }
 0x2d8   : > { %903 = vperm.xlu0 %3026, %v4218_v44   ;;  %v4404_v44 = vpop.permute.xlu1 %1273 }
 0x2d9   : > { %5384 = vst [vmem:[#allocation77_spill] sm:$0xff] %v4404_v44 }
 0x2dc   : > { %v4406_v27 = vpop.permute.xlu1 %1277 }
 0x2dd   : > { %5385 = vst [vmem:[#allocation78_spill] sm:$0xff] %v4406_v27 }
 0x2df   : > { %v1569_v58 = vpop.xlane.xlu0 %1568 }
 0x2e0   : > { %v4398_v43 = vmax.f32 %v4393_v0, %v1569_v58  ;;  %1583 = vmax.xlane.f32.xlu1 %v1582_v29  ;;  %v4409_v17 = vpop.permute.xlu1 %1281 }
 0x2e1   : > { %5386 = vst [vmem:[#allocation79_spill] sm:$0xff] %v4409_v17 }
 0x2e2   : > { %5382 = vst [vmem:[#allocation75_spill] sm:$0xff] %v4398_v43  ;;  %2207 = vst.msk [vmem:[#allocation2 + $0x48] sm:$0xff] %vm361_vm0, %v4398_v43 }
 0x2e4   : > { %v4412_v51 = vpop.permute.xlu1 %1409 }
 0x2e5   : > { %5387 = vst [vmem:[#allocation80_spill] sm:$0xff] %v4412_v51 }
 0x2f1   : > { %1014 = vperm.xlu1 %3031, %v4138_v59   ;;  %v4423_v59 = vld [vmem:[#allocation10 + $0x58] sm:$0xff] }
 0x2f5   : > { %1024 = vperm.xlu1 %3031, %v4144_v35  }
 0x2f9   : > { %1034 = vperm.xlu1 %3031, %v4147_v16  }
 0x2fd   : > { %1049 = vperm.xlu1 %3031, %v4257_v31  }
 0x2fe   : > { %v1578_v21 = vpop.xlane.xlu1 %1577 }
 0x2ff   : > { %v4419_v63 = vmax.f32 %v4415_v23, %v1578_v21  ;;  %v4443_v21 = vld [vmem:[#allocation10 + $0x68] sm:$0xff] }
 0x301   : > { %5389 = vst [vmem:[#allocation82_spill] sm:$0xff] %v4419_v63  ;;  %2210 = vst.msk [vmem:[#allocation2 + $0x60] sm:$0xff] %vm361_vm0, %v4419_v63  ;;  %1059 = vperm.xlu1 %3031, %v1005_v52   ;;  %v4435_v52 = vld [vmem:[#allocation10 + $0x60] sm:$0xff] }
 0x302   : > { %v612_v16 = vpop.permute.xlu1 %611 }
 0x305   : > { %1069 = vperm.xlu1 %3031, %v4423_v59  }
 0x306   : > { %v620_v29 = vpop.permute.xlu1 %619 }
 0x309   : > { %3032 = vset.pattern.permute.xlu1 %v5364_v42 }
 0x30a   : > { %1165 = vperm.xlu1 %3032, %v4426_v18   ;;  %v4440_v58 = vpop.permute.xlu1 %1125 }
 0x30e   : > { %3033 = vset.pattern.permute.xlu1 %v5339_v38  ;;  %v4446_v23 = vpop.permute.xlu1 %1129 }
 0x30f   : > { %1293 = vperm.xlu1 %3033, %v4426_v18  }
 0x312   : > { %v4450_v0 = vpop.permute.xlu1 %1133 }
 0x313   : > { %1297 = vperm.xlu1 %3033, %v4423_v59   ;;  %5390 = vst [vmem:[#allocation83_spill] sm:$0xff] %v4450_v0 }
 0x316   : > { %v4456_v37 = vpop.permute.xlu1 %1137 }
 0x317   : > { %3035 = vset.pattern.permute.xlu1 %v5361_v13  ;;  %5391 = vst [vmem:[#allocation84_spill] sm:$0xff] %v4456_v37  ;;  %v671_v37 = vmul.f32 %v3889_v5, %v620_v29 }
 0x318   : > { %1425 = vperm.xlu1 %3035, %v4423_v59  }
 0x31a   : > { %v4462_v49 = vpop.permute.xlu1 %1141 }
 0x31b   : > { %5393 = vst [vmem:[#allocation86_spill] sm:$0xff] %v4462_v49 }
 0x31c   : > { %3036 = vset.pattern.permute.xlu1 %v5376_v53 }
 0x31d   : > { %1074 = vperm.xlu1 %3036, %v4435_v52  }
 0x31e   : > { %v4472_v17 = vpop.permute.xlu1 %1145 }
 0x31f   : > { %5395 = vst [vmem:[#allocation88_spill] sm:$0xff] %v4472_v17  ;;  %v670_v17 = vmul.f32 %v3881_v60, %v620_v29 }
 0x321   : > { %3037 = vset.pattern.permute.xlu1 %v5364_v42 }
 0x322   : > { %1173 = vperm.xlu1 %3037, %v4435_v52   ;;  %v4476_v49 = vpop.permute.xlu1 %1149 }
 0x323   : > { %5396 = vst [vmem:[#allocation89_spill] sm:$0xff] %v4476_v49  ;;  %v667_v49 = vmul.f32 %v3889_v5, %v612_v16 }
 0x326   : > { %1177 = vperm.xlu1 %3037, %v4443_v21  }
 0x32a   : > { %3039 = vset.pattern.permute.xlu1 %v5339_v38 }
 0x32b   : > { %1305 = vperm.xlu1 %3039, %v4443_v21  }
 0x32f   : > { %3040 = vset.pattern.permute.xlu1 %v5361_v13 }
 0x330   : > { %1429 = vperm.xlu1 %3040, %v4435_v52  }
 0x334   : > { %3041 = vset.pattern.permute.xlu1 %v5376_v53 }
 0x335   : > { %1084 = vperm.xlu1 %3041, %v4454_v28  }
 0x339   : > { %1089 = vperm.xlu1 %3041, %v1011_v61  }
 0x33a   : > { %v1575_v47 = vpop.xlane.xlu0 %1574 }
 0x33b   : > { %v4465_v0 = vmax.f32 %v4460_v48, %v1575_v47  ;;  %v4482_v48 = vpop.permute.xlu1 %1157 }
 0x33c   : > { %5398 = vst [vmem:[#allocation91_spill] sm:$0xff] %v4482_v48  ;;  %v556_v48 = vmul.f32 %v3883_v2, %v4180_v36 }
 0x33d   : > { %5394 = vst [vmem:[#allocation87_spill] sm:$0xff] %v4465_v0  ;;  %2209 = vst.msk [vmem:[#allocation2 + $0x58] sm:$0xff] %vm361_vm0, %v4465_v0  ;;  %3043 = vset.pattern.permute.xlu1 %v5364_v42 }
 0x33e   : > { %1185 = vperm.xlu1 %3043, %v1011_v61   ;;  %v702_v40 = vadd.f32 %v670_v17, %v556_v48  ;;  %v963_v17 = vmul.f32 %v3897_v11, %v4306_v26 }
 0x342   : > { %3044 = vset.pattern.permute.xlu1 %v5376_v53  ;;  %v495_v27 = vpop.permute.xlu0 %494 }
 0x343   : > { %1654 = vperm.xlu1 %3044, %v4183_v20   ;;  %v666_v20 = vmul.f32 %v3881_v60, %v612_v16  ;;  %v552_v1 = vmul.f32 %v3883_v2, %v495_v27  ;;  %v553_v15 = vmul.f32 %v3885_v3, %v495_v27  ;;  %v816_v27 = vmul.f32 %v3891_v7, %v5400_v56 }
 0x345   : > { %v698_v16 = vadd.f32 %v666_v20, %v552_v1  ;;  %v699_v45 = vadd.f32 %v667_v49, %v553_v15 }
 0x346   : > { %v1020_v47 = vpop.permute.xlu0 %1019 }
 0x347   : > { %3046 = vset.pattern.permute.xlu1 %v5339_v38 }
 0x348   : > { %1309 = vperm.xlu1 %3046, %v4454_v28  }
 0x34a   : > { %v4480_v51 = vpop.permute.xlu0 %1029 }
 0x34b   : > { %5397 = vst [vmem:[#allocation90_spill] sm:$0xff] %v4480_v51  ;;  %v4497_v51 = vpop.permute.xlu1 %1161 }
 0x34c   : > { %1313 = vperm.xlu1 %3046, %v1011_v61  }
 0x34e   : > { %v4484_v44 = vpop.permute.xlu0 %1039 }
 0x34f   : > { %5399 = vst [vmem:[#allocation92_spill] sm:$0xff] %v4484_v44  ;;  %v557_v44 = vmul.f32 %v3885_v3, %v4180_v36  ;;  %v4506_v62 = vpop.permute.xlu1 %1285  ;;  %v813_v36 = vmul.f32 %v3899_v12, %v4361_v4 }
 0x350   : > { %3047 = vset.pattern.permute.xlu1 %v5361_v13  ;;  %5401 = vst [vmem:[#allocation26_spill] sm:$0xff] %v4506_v62 }
 0x351   : > { %1441 = vperm.xlu1 %3047, %v1011_v61   ;;  %v703_v33 = vadd.f32 %v671_v37, %v557_v44  ;;  %v812_v61 = vmul.f32 %v3891_v7, %v4361_v4  ;;  %v848_v37 = vadd.f32 %v816_v27, %v702_v40  ;;  %v845_v1 = vadd.f32 %v813_v36, %v699_v45 }
 0x352   : > { %v4499_v29 = vpop.permute.xlu0 %1044  ;;  %v962_v44 = vmul.f32 %v3895_v10, %v4306_v26  ;;  %v1190_v36 = vmul.f32 %v4446_v23, %v3881_v60 }
 0x353   : > { %v849_v49 = vadd.f32 %v817_v34, %v703_v33  ;;  %v844_v56 = vadd.f32 %v812_v61, %v698_v16  ;;  %v4524_v40 = vpop.permute.xlu1 %1289  ;;  %v4542_v61 = vld [vmem:[#allocation2 + $0x70] sm:$0xff] }
 0x354   : > { %v4528_v33 = vadd.f32 %v962_v44, %v848_v37  ;;  %5408 = vst [vmem:[#allocation99_spill] sm:$0xff] %v4542_v61  ;;  %v1094_v37 = vmul.f32 %v1020_v47, %v3883_v2  ;;  %v1318_v44 = vmul.f32 %v4379_v30, %v3891_v7 }
 0x355   : > { %3048 = vset.pattern.permute.xlu1 %v5376_v53  ;;  %v4530_v45 = vadd.f32 %v963_v17, %v849_v49  ;;  %v1095_v49 = vmul.f32 %v1020_v47, %v3885_v3  ;;  %v1319_v17 = vmul.f32 %v4379_v30, %v3899_v12  ;;  %v1189_v47 = vmul.f32 %v4440_v58, %v3889_v5 }
 0x356   : > { %1664 = vperm.xlu1 %3048, %v4195_v8   ;;  %5404 = vst [vmem:[#allocation95_spill] sm:$0xff] %v4528_v33 }
 0x357   : > { %v904_v48 = vpop.permute.xlu0 %903  ;;  %5405 = vst [vmem:[#allocation96_spill] sm:$0xff] %v4530_v45  ;;  %v1585_v26 = vmax.f32 %v4528_v33, %v4530_v45  ;;  %v4535_v16 = vpop.permute.xlu1 %1413 }
 0x358   : > { %v958_v20 = vmul.f32 %v3895_v10, %v904_v48  ;;  %v959_v15 = vmul.f32 %v3897_v11, %v904_v48  ;;  %5406 = vst [vmem:[#allocation97_spill] sm:$0xff] %v4535_v16  ;;  %v1191_v48 = vmul.f32 %v4446_v23, %v3889_v5 }
 0x35a   : > { %1674 = vperm.xlu1 %3048, %v4206_v9   ;;  %v4520_v4 = vadd.f32 %v958_v20, %v844_v56  ;;  %v4522_v8 = vadd.f32 %v959_v15, %v845_v1  ;;  %v1222_v56 = vadd.f32 %v1190_v36, %v1094_v37  ;;  %v1223_v1 = vadd.f32 %v1191_v48, %v1095_v49 }
 0x35b   : > { %v4539_v27 = vpop.permute.xlu1 %1417  ;;  %v1316_v48 = vmul.f32 %v4370_v39, %v3891_v7  ;;  %v1317_v37 = vmul.f32 %v4370_v39, %v3899_v12 }
 0x35c   : > { %5402 = vst [vmem:[#allocation93_spill] sm:$0xff] %v4520_v4  ;;  %5403 = vst [vmem:[#allocation94_spill] sm:$0xff] %v4522_v8  ;;  %v1579_v34 = vmax.f32 %v4520_v4, %v4522_v8  ;;  %v1351_v30 = vadd.f32 %v1319_v17, %v1223_v1 }
 0x35d   : > { %5407 = vst [vmem:[#allocation98_spill] sm:$0xff] %v4539_v27 }
 0x35e   : > { %1580 = vmax.xlane.f32.xlu0 %v1579_v34  ;;  %1679 = vperm.xlu1 %3048, %v4221_v22   ;;  %v1188_v34 = vmul.f32 %v4440_v58, %v3881_v60  ;;  %v1445_v58 = vmul.f32 %v4309_v50, %v3897_v11 }
 0x362   : > { %1586 = vmax.xlane.f32.xlu0 %v1585_v26  ;;  %1689 = vperm.xlu1 %3048, %v4230_v57   ;;  %v1447_v57 = vmul.f32 %v4312_v25, %v3897_v11 }
 0x366   : > { %1699 = vperm.xlu1 %3048, %v4398_v43  }
 0x36a   : > { %1709 = vperm.xlu1 %3048, %v4465_v0   ;;  %v1350_v0 = vadd.f32 %v1318_v44, %v1222_v56  ;;  %v1479_v56 = vadd.f32 %v1447_v57, %v1351_v30 }
 0x36d   : > { %v1584_v20 = vpop.xlane.xlu1 %1583 }
 0x36e   : > { %v4551_v15 = vmax.f32 %v4542_v61, %v1584_v20  ;;  %v1444_v61 = vmul.f32 %v4309_v50, %v3895_v10 }
 0x370   : > { %5409 = vst [vmem:[#allocation100_spill] sm:$0xff] %v4551_v15  ;;  %2212 = vst.msk [vmem:[#allocation2 + $0x70] sm:$0xff] %vm361_vm0, %v4551_v15 }
 0x371   : > { %v1015_v23 = vpop.permute.xlu1 %1014 }
 0x372   : > { %v1092_v26 = vmul.f32 %v1015_v23, %v3883_v2  ;;  %v1093_v36 = vmul.f32 %v1015_v23, %v3885_v3  ;;  %v1446_v23 = vmul.f32 %v4312_v25, %v3895_v10 }
 0x374   : > { %v1220_v49 = vadd.f32 %v1188_v34, %v1092_v26  ;;  %v1221_v20 = vadd.f32 %v1189_v47, %v1093_v36  ;;  %v1478_v17 = vadd.f32 %v1446_v23, %v1350_v0 }
 0x375   : > { %v4573_v43 = vpop.permute.xlu1 %1024 }
 0x376   : > { %v1349_v22 = vadd.f32 %v1317_v37, %v1221_v20  ;;  %v1348_v39 = vadd.f32 %v1316_v48, %v1220_v49 }
 0x378   : > { %1393 = vperm.xlu0 %3026, %v4243_v14   ;;  %v1477_v1 = vadd.f32 %v1445_v58, %v1349_v22  ;;  %v1476_v44 = vadd.f32 %v1444_v61, %v1348_v39 }
 0x379   : > { %v4580_v34 = vpop.permute.xlu1 %1034 }
 0x37a   : > { %v1509_v47 = vpack.c.bf16 %v1479_v56, %v1477_v1  ;;  %v1508_v50 = vpack.c.bf16 %v1478_v17, %v1476_v44 }
 0x37c   : > { %2069 = vmatprep.subr.bf16.mxu0 %v1509_v47  ;;  %1405 = vperm.xlu0 %3026, %v4248_v41  }
 0x37d   : > { %v4583_v26 = vpop.permute.xlu1 %1049  ;;  %2070 = vmatpush1.bf16.xpose.msra.mxu0 %v1508_v50 }
 0x380   : > { %1421 = vperm.xlu0 %3026, %v4426_v18  }
 0x381   : > { %v4586_v25 = vpop.permute.xlu1 %1059 }
 0x384   : > { %3034 = vset.pattern.permute.xlu0 %v5339_v38 }
 0x385   : > { %1261 = vperm.xlu0 %3034, %v4144_v35   ;;  %v4590_v22 = vpop.permute.xlu1 %1069 }
 0x389   : > { %1301 = vperm.xlu0 %3034, %v4435_v52   ;;  %v4593_v57 = vpop.permute.xlu1 %1165 }
 0x38a   : > { %5410 = vst [vmem:[#allocation101_spill] sm:$0xff] %v4593_v57 }
 0x38d   : > { %3038 = vset.pattern.permute.xlu0 %v5364_v42 }
 0x38e   : > { %1153 = vperm.xlu0 %3038, %v4257_v31   ;;  %v4597_v14 = vpop.permute.xlu1 %1293 }
 0x38f   : > { %5411 = vst [vmem:[#allocation102_spill] sm:$0xff] %v4597_v14  ;;  %v5445_v14 = vld [vmem:[#allocation80_spill] sm:$0xff] }
 0x392   : > { %1169 = vperm.xlu0 %3038, %v4423_v59   ;;  %v4600_v41 = vpop.permute.xlu1 %1297 }
 0x396   : > { %1181 = vperm.xlu0 %3038, %v4454_v28  }
 0x397   : > { %v4603_v38 = vpop.permute.xlu1 %1425 }
 0x398   : > { %5412 = vst [vmem:[#allocation103_spill] sm:$0xff] %v4603_v38 }
 0x39a   : > { %3042 = vset.pattern.permute.xlu0 %v5376_v53 }
 0x39b   : > { %1054 = vperm.xlu0 %3042, %v4342_v55  }
 0x39c   : > { %v1075_v35 = vpop.permute.xlu1 %1074 }
 0x39d   : > { %v1116_v42 = vmul.f32 %v1075_v35, %v3883_v2  ;;  %v1117_v31 = vmul.f32 %v1075_v35, %v3885_v3 }
 0x39f   : > { %1064 = vperm.xlu0 %3042, %v4426_v18  }
 0x3a1   : > { %v1174_v0 = vpop.permute.xlu1 %1173 }
 0x3a2   : > { %v1212_v59 = vmul.f32 %v1174_v0, %v3881_v60  ;;  %v1213_v52 = vmul.f32 %v1174_v0, %v3889_v5 }
 0x3a3   : > { %1079 = vperm.xlu0 %3042, %v4443_v21  }
 0x3a4   : > { %v4613_v61 = vadd.f32 %v1212_v59, %v1116_v42  ;;  %v4615_v36 = vadd.f32 %v1213_v52, %v1117_v31  ;;  %v5417_v42 = vld [vmem:[#allocation29_spill] sm:$0xff] }
 0x3a5   : > { %v4617_v48 = vpop.permute.xlu1 %1177 }
 0x3a6   : > { %5413 = vst [vmem:[#allocation104_spill] sm:$0xff] %v4617_v48 }
 0x3a7   : > { %1659 = vperm.xlu0 %3042, %v4192_v54   ;;  %v5438_v54 = vld [vmem:[#allocation86_spill] sm:$0xff] }
 0x3a8   : > { %v1197_v45 = vmul.f32 %v5438_v54, %v3889_v5 }
 0x3aa   : > { %v4620_v55 = vpop.permute.xlu1 %1305 }
 0x3ab   : > { %5414 = vst [vmem:[#allocation105_spill] sm:$0xff] %v4620_v55  ;;  %3045 = vset.pattern.permute.xlu0 %v5361_v13 }
 0x3ac   : > { %1433 = vperm.xlu0 %3045, %v4443_v21  }
 0x3af   : > { %v4624_v18 = vpop.permute.xlu1 %1429 }
 0x3b0   : > { %1437 = vperm.xlu0 %3045, %v4454_v28  }
 0x3b4   : > { %3049 = vset.pattern.permute.xlu0 %v5376_v53  ;;  %v4628_v37 = vpop.permute.xlu1 %1084 }
 0x3b5   : > { %5415 = vst [vmem:[#allocation106_spill] sm:$0xff] %v4628_v37  ;;  %1669 = vperm.xlu0 %3049, %v4209_v6  }
 0x3b8   : > { %v1090_v49 = vpop.permute.xlu1 %1089 }
 0x3b9   : > { %1684 = vperm.xlu0 %3049, %v4237_v19   ;;  %v1122_v20 = vmul.f32 %v1090_v49, %v3883_v2  ;;  %v1123_v30 = vmul.f32 %v1090_v49, %v3885_v3  ;;  %v5437_v19 = vld [vmem:[#allocation77_spill] sm:$0xff] }
 0x3ba   : > { %v1326_v6 = vmul.f32 %v5437_v19, %v3891_v7  ;;  %v1327_v9 = vmul.f32 %v5437_v19, %v3899_v12 }
 0x3bd   : > { %1694 = vperm.xlu0 %3049, %v4264_v32   ;;  %v1186_v13 = vpop.permute.xlu1 %1185 }
 0x3be   : > { %v1218_v21 = vmul.f32 %v1186_v13, %v3881_v60  ;;  %v1219_v28 = vmul.f32 %v1186_v13, %v3889_v5 }
 0x3c0   : > { %v1250_v58 = vadd.f32 %v1218_v21, %v1122_v20  ;;  %v1251_v53 = vadd.f32 %v1219_v28, %v1123_v30  ;;  %v5420_v21 = vld [vmem:[#allocation27_spill] sm:$0xff] }
 0x3c1   : > { %1704 = vperm.xlu0 %3049, %v4333_v46  }
 0x3c2   : > { %v1655_v23 = vpop.permute.xlu1 %1654 }
 0x3c3   : > { %v1732_v50 = vsub.f32 %v3975_v24, %v1655_v23  ;;  %v1733_v31 = vsub.f32 %v5417_v42, %v1655_v23 }
 0x3c5   : > { %1714 = vperm.xlu0 %3049, %v4419_v63   ;;  %v1764_v20 = vmul.f32 1.442695, %v1732_v50  ;;  %v1766_v30 = vmul.f32 1.442695, %v1733_v31  ;;  %v4664_v50 = vld [vmem:[#allocation2 + $0x68] sm:$0xff]  ;;  %v5436_v63 = vld [vmem:[#allocation90_spill] sm:$0xff] }
 0x3c6   : > { %5426 = vst [vmem:[#allocation111_spill] sm:$0xff] %v4664_v50  ;;  %v1098_v46 = vmul.f32 %v5436_v63, %v3883_v2 }
 0x3c7   : > { %v4639_v39 = vpop.permute.xlu1 %1309  ;;  %3050 = vpow2.f32 %v1764_v20 }
 0x3c8   : > { %5416 = vst [vmem:[#allocation107_spill] sm:$0xff] %v4639_v39  ;;  %3052 = vpow2.f32 %v1766_v30 }
 0x3c9   : > { %1724 = vperm.xlu0 %3049, %v4551_v15  }
 0x3cb   : > { %v1314_v1 = vpop.permute.xlu1 %1313 }
 0x3cc   : > { %v1346_v56 = vmul.f32 %v1314_v1, %v3891_v7  ;;  %v1347_v44 = vmul.f32 %v1314_v1, %v3899_v12 }
 0x3ce   : > { %v1378_v17 = vadd.f32 %v1346_v56, %v1250_v58  ;;  %v1379_v47 = vadd.f32 %v1347_v44, %v1251_v53  ;;  %v5421_v58 = vld [vmem:[#allocation28_spill] sm:$0xff] }
 0x3d0   : > { %v1442_v35 = vpop.permute.xlu1 %1441 }
 0x3d1   : > { %v1474_v0 = vmul.f32 %v1442_v35, %v3895_v10  ;;  %v1475_v59 = vmul.f32 %v1442_v35, %v3897_v11  ;;  %v4654_v23 = vpop.eup %3050 }
 0x3d2   : > { %5422 = vst [vmem:[#allocation27_spill] sm:$0xff] %v4654_v23  ;;  %v4656_v56 = vpop.eup %3052 }
 0x3d3   : > { %v4648_v52 = vadd.f32 %v1474_v0, %v1378_v17  ;;  %v4650_v49 = vadd.f32 %v1475_v59, %v1379_v47  ;;  %5423 = vst [vmem:[#allocation28_spill] sm:$0xff] %v4656_v56  ;;  %v1860_v17 = vadd.f32 %v4656_v56, %v4654_v23  ;;  %v4671_v0 = vld [vmem:[#allocation2 + $0x78] sm:$0xff]  ;;  %v1100_v23 = vmul.f32 %v4580_v34, %v3883_v2 }
 0x3d4   : > { %5428 = vst [vmem:[#allocation113_spill] sm:$0xff] %v4671_v0 }
 0x3d5   : > { %5418 = vst [vmem:[#allocation29_spill] sm:$0xff] %v4648_v52  ;;  %5419 = vst [vmem:[#allocation108_spill] sm:$0xff] %v4650_v49  ;;  %v1665_v13 = vpop.permute.xlu1 %1664 }
 0x3d6   : > { %v1736_v28 = vsub.f32 %v5420_v21, %v1665_v13  ;;  %v1737_v53 = vsub.f32 %v5421_v58, %v1665_v13  ;;  %v5433_v13 = vld [vmem:[#allocation73_spill] sm:$0xff] }
 0x3d7   : > { %v1322_v59 = vmul.f32 %v5433_v13, %v3891_v7 }
 0x3d8   : > { %v1772_v24 = vmul.f32 1.442695, %v1736_v28  ;;  %v1774_v1 = vmul.f32 1.442695, %v1737_v53  ;;  %v5430_v28 = vld [vmem:[#allocation66_spill] sm:$0xff] }
 0x3d9   : > { %v4688_v58 = vmul.f32 %v5430_v28, %v3895_v10  ;;  %v4692_v53 = vmul.f32 %v5430_v28, %v3897_v11  ;;  %v1323_v28 = vmul.f32 %v5433_v13, %v3899_v12  ;;  %v1099_v13 = vmul.f32 %v5436_v63, %v3885_v3  ;;  %v5440_v63 = vld [vmem:[#allocation92_spill] sm:$0xff] }
 0x3da   : > { %3054 = vpow2.f32 %v1772_v24  ;;  %v5431_v24 = vld [vmem:[#allocation67_spill] sm:$0xff]  ;;  %v1102_v4 = vmul.f32 %v5440_v63, %v3883_v2 }
 0x3db   : > { %3056 = vpow2.f32 %v1774_v1  ;;  %v4696_v1 = vmul.f32 %v5431_v24, %v3895_v10 }
 0x3e4   : > { %v4658_v44 = vpop.eup %3054 }
 0x3e5   : > { %5424 = vst [vmem:[#allocation109_spill] sm:$0xff] %v4658_v44  ;;  %v4662_v47 = vpop.eup %3056 }
 0x3e6   : > { %5425 = vst [vmem:[#allocation110_spill] sm:$0xff] %v4662_v47  ;;  %v1866_v35 = vadd.f32 %v4662_v47, %v4658_v44  ;;  %v5441_v44 = vld [vmem:[#allocation78_spill] sm:$0xff] }
 0x3e7   : > { %v4744_v47 = vmul.f32 %v5441_v44, %v3891_v7  ;;  %v4748_v19 = vmul.f32 %v5441_v44, %v3899_v12  ;;  %v4764_v44 = vmul.f32 %v5445_v14, %v3895_v10 }
 0x3e8   : > { %1861 = vadd.xlane.f32.xlu0 %v1860_v17  ;;  %v1453_v17 = vmul.f32 %v5431_v24, %v3897_v11  ;;  %v1101_v24 = vmul.f32 %v4580_v34, %v3885_v3  ;;  %v1196_v34 = vmul.f32 %v5438_v54, %v3881_v60 }
 0x3ea   : > { %v1229_v56 = vadd.f32 %v1197_v45, %v1101_v24  ;;  %v1096_v45 = vmul.f32 %v4573_v43, %v3883_v2  ;;  %v1097_v24 = vmul.f32 %v4573_v43, %v3885_v3  ;;  %v1228_v16 = vadd.f32 %v1196_v34, %v1100_v23 }
 0x3eb   : > { %v1581_v42 = vpop.xlane.xlu0 %1580 }
 0x3ec   : > { %v4669_v31 = vmax.f32 %v4664_v50, %v1581_v42  ;;  %1867 = vadd.xlane.f32.xlu0 %v1866_v35  ;;  %v5432_v35 = vld [vmem:[#allocation68_spill] sm:$0xff] }
 0x3ed   : > { %v4702_v42 = vmul.f32 %v5432_v35, %v3895_v10  ;;  %v5435_v50 = vld [vmem:[#allocation84_spill] sm:$0xff]  ;;  %5446 = vst [vmem:[#allocation68_spill] sm:$0xff] %v4764_v44 }
 0x3ee   : > { %5427 = vst [vmem:[#allocation112_spill] sm:$0xff] %v4669_v31  ;;  %2211 = vst.msk [vmem:[#allocation2 + $0x68] sm:$0xff] %vm361_vm0, %v4669_v31  ;;  %1719 = vperm.xlu1 %3048, %v4669_v31   ;;  %v1194_v15 = vmul.f32 %v5435_v50, %v3881_v60 }
 0x3ef   : > { %v1587_v20 = vpop.xlane.xlu0 %1586 }
 0x3f0   : > { %v4679_v30 = vmax.f32 %v4671_v0, %v1587_v20  ;;  %v4706_v20 = vmul.f32 %v5432_v35, %v3897_v11  ;;  %v1195_v35 = vmul.f32 %v5435_v50, %v3889_v5  ;;  %v5439_v50 = vld [vmem:[#allocation88_spill] sm:$0xff]  ;;  %v1226_v55 = vadd.f32 %v1194_v15, %v1098_v46 }
 0x3f1   : > { %v1198_v33 = vmul.f32 %v5439_v50, %v3881_v60  ;;  %v1199_v8 = vmul.f32 %v5439_v50, %v3889_v5  ;;  %v5443_v50 = vld [vmem:[#allocation79_spill] sm:$0xff] }
 0x3f2   : > { %5429 = vst [vmem:[#allocation114_spill] sm:$0xff] %v4679_v30  ;;  %2213 = vst.msk [vmem:[#allocation2 + $0x78] sm:$0xff] %vm361_vm0, %v4679_v30  ;;  %1729 = vperm.xlu1 %3048, %v4679_v30   ;;  %v5434_v30 = vld [vmem:[#allocation76_spill] sm:$0xff]  ;;  %v4756_v49 = vmul.f32 %v5443_v50, %v3891_v7  ;;  %v1227_v48 = vadd.f32 %v1195_v35, %v1099_v13  ;;  %v5448_v13 = vld [vmem:[#allocation89_spill] sm:$0xff]  ;;  %v1354_v27 = vadd.f32 %v1322_v59, %v1226_v55 }
 0x3f3   : > { %v1324_v0 = vmul.f32 %v5434_v30, %v3891_v7  ;;  %v1325_v32 = vmul.f32 %v5434_v30, %v3899_v12  ;;  %v1103_v30 = vmul.f32 %v5440_v63, %v3885_v3  ;;  %v4760_v63 = vmul.f32 %v5443_v50, %v3899_v12 }
 0x3f4   : > { %5444 = vst [vmem:[#allocation67_spill] sm:$0xff] %v4756_v49  ;;  %v1230_v15 = vadd.f32 %v1198_v33, %v1102_v4  ;;  %v1200_v50 = vmul.f32 %v5448_v13, %v3881_v60  ;;  %v1201_v54 = vmul.f32 %v5448_v13, %v3889_v5  ;;  %v1355_v44 = vadd.f32 %v1323_v28, %v1227_v48 }
 0x3f5   : > { %v1231_v35 = vadd.f32 %v1199_v8, %v1103_v30  ;;  %v1357_v62 = vadd.f32 %v1325_v32, %v1229_v56  ;;  %v1104_v30 = vmul.f32 %v4499_v29, %v3883_v2  ;;  %v1105_v32 = vmul.f32 %v4499_v29, %v3885_v3 }
 0x3f6   : > { %v1358_v33 = vadd.f32 %v1326_v6, %v1230_v15  ;;  %v1356_v48 = vadd.f32 %v1324_v0, %v1228_v16  ;;  %v1469_v59 = vmul.f32 %v4624_v18, %v3897_v11 }
 0x3f7   : > { %v1394_v21 = vpop.permute.xlu0 %1393  ;;  %v1485_v56 = vadd.f32 %v1453_v17, %v1357_v62  ;;  %v1459_v62 = vmul.f32 %v5445_v14, %v3897_v11  ;;  %v1232_v16 = vadd.f32 %v1200_v50, %v1104_v30  ;;  %v4807_v17 = vmul.f32 %v4524_v40, %v3891_v7 }
 0x3f8   : > { %v1450_v43 = vmul.f32 %v1394_v21, %v3895_v10  ;;  %v1451_v39 = vmul.f32 %v1394_v21, %v3897_v11  ;;  %v1484_v14 = vadd.f32 %v4696_v1, %v1356_v48  ;;  %v1335_v1 = vmul.f32 %v4524_v40, %v3899_v12 }
 0x3f9   : > { %v1360_v13 = vadd.f32 %v4744_v47, %v1232_v16  ;;  %v1111_v50 = vmul.f32 %v4586_v25, %v3885_v3  ;;  %v1115_v40 = vmul.f32 %v4590_v22, %v3885_v3 }
 0x3fa   : > { %v1482_v21 = vadd.f32 %v1450_v43, %v1354_v27 }
 0x3fb   : > { %v4716_v31 = vpop.permute.xlu0 %1405 }
 0x3fc   : > { %v1457_v47 = vmul.f32 %v4716_v31, %v3897_v11 }
 0x3ff   : > { %v4752_v52 = vpop.permute.xlu0 %1421 }
 0x400   : > { %5442 = vst [vmem:[#allocation66_spill] sm:$0xff] %v4752_v52  ;;  %v5447_v52 = vld [vmem:[#allocation83_spill] sm:$0xff] }
 0x401   : > { %v1192_v57 = vmul.f32 %v5447_v52, %v3881_v60  ;;  %v1193_v46 = vmul.f32 %v5447_v52, %v3889_v5  ;;  %v1359_v52 = vadd.f32 %v1327_v9, %v1231_v35  ;;  %v1110_v35 = vmul.f32 %v4586_v25, %v3883_v2 }
 0x403   : > { %v1224_v37 = vadd.f32 %v1192_v57, %v1096_v45  ;;  %v1225_v38 = vadd.f32 %v1193_v46, %v1097_v24  ;;  %v1468_v57 = vmul.f32 %v4624_v18, %v3895_v10  ;;  %v1486_v45 = vadd.f32 %v4702_v42, %v1358_v33 }
 0x404   : > { %v1262_v49 = vpop.permute.xlu0 %1261  ;;  %v1106_v24 = vmul.f32 %v4583_v26, %v3883_v2  ;;  %v1339_v33 = vmul.f32 %v4600_v41, %v3899_v12 }
 0x405   : > { %v1320_v4 = vmul.f32 %v1262_v49, %v3891_v7  ;;  %v1321_v8 = vmul.f32 %v1262_v49, %v3899_v12  ;;  %v1483_v49 = vadd.f32 %v1451_v39, %v1355_v44  ;;  %v1512_v43 = vpack.c.bf16 %v1486_v45, %v1484_v14 }
 0x407   : > { %v1352_v55 = vadd.f32 %v1320_v4, %v1224_v37  ;;  %v1353_v23 = vadd.f32 %v1321_v8, %v1225_v38  ;;  %v1233_v38 = vadd.f32 %v1201_v54, %v1105_v32  ;;  %v1487_v37 = vadd.f32 %v4706_v20, %v1359_v52  ;;  %v5449_v32 = vld [vmem:[#allocation103_spill] sm:$0xff] }
 0x408   : > { %v1302_v6 = vpop.permute.xlu0 %1301  ;;  %v1114_v4 = vmul.f32 %v4590_v22, %v3883_v2  ;;  %v1338_v8 = vmul.f32 %v4600_v41, %v3891_v7  ;;  %v1466_v48 = vmul.f32 %v5449_v32, %v3895_v10  ;;  %v1467_v22 = vmul.f32 %v5449_v32, %v3897_v11 }
 0x409   : > { %v1480_v9 = vadd.f32 %v4688_v58, %v1352_v55  ;;  %v1481_v28 = vadd.f32 %v4692_v53, %v1353_v23  ;;  %v1340_v34 = vmul.f32 %v1302_v6, %v3891_v7  ;;  %v1341_v29 = vmul.f32 %v1302_v6, %v3899_v12  ;;  %v5450_v55 = vld [vmem:[#allocation106_spill] sm:$0xff] }
 0x40a   : > { %v1206_v58 = vmul.f32 %v4497_v51, %v3881_v60  ;;  %v1207_v53 = vmul.f32 %v4497_v51, %v3889_v5  ;;  %v1107_v51 = vmul.f32 %v4583_v26, %v3885_v3  ;;  %v1361_v42 = vadd.f32 %v4748_v19, %v1233_v38 }
 0x40b   : > { %v1372_v18 = vadd.f32 %v1340_v34, %v4613_v61  ;;  %v1373_v27 = vadd.f32 %v1341_v29, %v4615_v36  ;;  %v1511_v39 = vpack.c.bf16 %v1483_v49, %v1481_v28  ;;  %v1510_v0 = vpack.c.bf16 %v1482_v21, %v1480_v9  ;;  %v5452_v49 = vld [vmem:[#allocation107_spill] sm:$0xff] }
 0x40c   : > { %v1513_v36 = vpack.c.bf16 %v1487_v37, %v1485_v56  ;;  %v1120_v23 = vmul.f32 %v5450_v55, %v3883_v2  ;;  %v5451_v56 = vld [vmem:[#allocation67_spill] sm:$0xff]  ;;  %v1121_v41 = vmul.f32 %v5450_v55, %v3885_v3  ;;  %v1344_v6 = vmul.f32 %v5452_v49, %v3891_v7 }
 0x40d   : > { %v4810_v44 = vadd.f32 %v1468_v57, %v1372_v18  ;;  %v4812_v20 = vadd.f32 %v1469_v59, %v1373_v27  ;;  %2071 = vmatprep.subr.bf16.mxu0 %v1511_v39  ;;  %v1154_v61 = vpop.permute.xlu0 %1153  ;;  %v1345_v9 = vmul.f32 %v5452_v49, %v3899_v12  ;;  %v1456_v28 = vmul.f32 %v4716_v31, %v3895_v10  ;;  %v5454_v31 = vld [vmem:[#allocation91_spill] sm:$0xff] }
 0x40e   : > { %v1202_v46 = vmul.f32 %v1154_v61, %v3881_v60  ;;  %v1203_v15 = vmul.f32 %v1154_v61, %v3889_v5  ;;  %2072 = vmatpush1.bf16.xpose.msra.mxu0 %v1510_v0  ;;  %v1489_v34 = vadd.f32 %v1457_v47, %v1361_v42  ;;  %v1238_v27 = vadd.f32 %v1206_v58, %v1110_v35  ;;  %v5453_v0 = vld [vmem:[#allocation68_spill] sm:$0xff] }
 0x40f   : > { %2073 = vmatprep.subr.bf16.mxu0 %v1513_v36  ;;  %v1205_v58 = vmul.f32 %v5454_v31, %v3889_v5 }
 0x410   : > { %v1234_v26 = vadd.f32 %v1202_v46, %v1106_v24  ;;  %v1235_v54 = vadd.f32 %v1203_v15, %v1107_v51  ;;  %v1204_v51 = vmul.f32 %v5454_v31, %v3881_v60  ;;  %v1488_v46 = vadd.f32 %v1456_v28, %v1360_v13  ;;  %v5462_v31 = vld [vmem:[#allocation105_spill] sm:$0xff] }
 0x411   : > { %v1170_v19 = vpop.permute.xlu0 %1169  ;;  %v1366_v13 = vadd.f32 %v4807_v17, %v1238_v27 }
 0x412   : > { %v1363_v25 = vadd.f32 %v4760_v63, %v1235_v54  ;;  %v1210_v52 = vmul.f32 %v1170_v19, %v3881_v60  ;;  %v1211_v30 = vmul.f32 %v1170_v19, %v3889_v5  ;;  %v1362_v57 = vadd.f32 %v5451_v56, %v1234_v26 }
 0x414   : > { %v1242_v59 = vadd.f32 %v1210_v52, %v1114_v4  ;;  %v1243_v63 = vadd.f32 %v1211_v30, %v1115_v40  ;;  %v1491_v21 = vadd.f32 %v1459_v62, %v1363_v25  ;;  %v1239_v62 = vadd.f32 %v1207_v53, %v1111_v50  ;;  %v5455_v53 = vld [vmem:[#allocation98_spill] sm:$0xff]  ;;  %v5457_v52 = vld [vmem:[#allocation97_spill] sm:$0xff] }
 0x415   : > { %v1182_v29 = vpop.permute.xlu0 %1181  ;;  %v1490_v14 = vadd.f32 %v5453_v0, %v1362_v57  ;;  %v1462_v35 = vmul.f32 %v5455_v53, %v3895_v10  ;;  %v1460_v30 = vmul.f32 %v5457_v52, %v3895_v10  ;;  %v1461_v32 = vmul.f32 %v5457_v52, %v3897_v11 }
 0x416   : > { %v1370_v16 = vadd.f32 %v1338_v8, %v1242_v59  ;;  %v1371_v38 = vadd.f32 %v1339_v33, %v1243_v63  ;;  %2074 = vmatpush1.bf16.xpose.msra.mxu0 %v1512_v43  ;;  %v1216_v37 = vmul.f32 %v1182_v29, %v3881_v60  ;;  %v1217_v18 = vmul.f32 %v1182_v29, %v3889_v5  ;;  %v5456_v8 = vld [vmem:[#allocation26_spill] sm:$0xff] }
 0x417   : > { %v1515_v39 = vpack.c.bf16 %v1491_v21, %v1489_v34  ;;  %v1463_v43 = vmul.f32 %v5455_v53, %v3897_v11  ;;  %v1367_v4 = vadd.f32 %v1335_v1, %v1239_v62  ;;  %v1514_v40 = vpack.c.bf16 %v1490_v14, %v1488_v46 }
 0x418   : > { %v1248_v61 = vadd.f32 %v1216_v37, %v1120_v23  ;;  %v1249_v36 = vadd.f32 %v1217_v18, %v1121_v41  ;;  %v4860_v45 = vadd.f32 %v1467_v22, %v1371_v38  ;;  %v4862_v24 = vadd.f32 %v1466_v48, %v1370_v16  ;;  %v5458_v48 = vld [vmem:[#allocation101_spill] sm:$0xff]  ;;  %v5459_v41 = vld [vmem:[#allocation102_spill] sm:$0xff]  ;;  %v5460_v16 = vld [vmem:[#allocation104_spill] sm:$0xff] }
 0x419   : > { %2075 = vmatprep.subr.bf16.mxu0 %v1515_v39  ;;  %v1332_v47 = vmul.f32 %v5456_v8, %v3891_v7  ;;  %v1333_v19 = vmul.f32 %v5456_v8, %v3899_v12  ;;  %v1208_v22 = vmul.f32 %v5458_v48, %v3881_v60  ;;  %v1209_v17 = vmul.f32 %v5458_v48, %v3889_v5  ;;  %v5461_v18 = vld [vmem:[#allocation66_spill] sm:$0xff] }
 0x41a   : > { %v1055_v15 = vpop.permute.xlu0 %1054  ;;  %v4866_v42 = vadd.f32 %v1344_v6, %v1248_v61  ;;  %v4868_v26 = vadd.f32 %v1345_v9, %v1249_v36  ;;  %v1336_v59 = vmul.f32 %v5459_v41, %v3891_v7  ;;  %v1337_v63 = vmul.f32 %v5459_v41, %v3899_v12  ;;  %v1675_v6 = vpop.permute.xlu1 %1674 }
 0x41b   : > { %v1108_v50 = vmul.f32 %v1055_v15, %v3883_v2  ;;  %v1109_v54 = vmul.f32 %v1055_v15, %v3885_v3  ;;  %v1495_v21 = vadd.f32 %v1463_v43, %v1367_v4  ;;  %v1494_v49 = vadd.f32 %v1462_v35, %v1366_v13  ;;  %v5464_v43 = vld [vmem:[#allocation35_spill] sm:$0xff] }
 0x41c   : > { %v1214_v38 = vmul.f32 %v5460_v16, %v3881_v60  ;;  %v1215_v37 = vmul.f32 %v5460_v16, %v3889_v5  ;;  %v1464_v27 = vmul.f32 %v5461_v18, %v3895_v10  ;;  %v1465_v62 = vmul.f32 %v5461_v18, %v3897_v11  ;;  %v5463_v60 = vld [vmem:[#allocation34_spill] sm:$0xff] }
 0x41d   : > { %v1236_v33 = vadd.f32 %v1204_v51, %v1108_v50  ;;  %v1237_v25 = vadd.f32 %v1205_v58, %v1109_v54  ;;  %v1342_v51 = vmul.f32 %v5462_v31, %v3891_v7  ;;  %v1740_v46 = vsub.f32 %v5463_v60, %v1675_v6 }
 0x41e   : > { %2076 = vmatpush1.bf16.xpose.msra.mxu0 %v1514_v40  ;;  %v1065_v1 = vpop.permute.xlu0 %1064  ;;  %v1343_v54 = vmul.f32 %v5462_v31, %v3899_v12  ;;  %v1741_v13 = vsub.f32 %v5464_v43, %v1675_v6  ;;  %v5466_v40 = vld [vmem:[#allocation32_spill] sm:$0xff] }
 0x41f   : > { %v1364_v55 = vadd.f32 %v1332_v47, %v1236_v33  ;;  %v1365_v23 = vadd.f32 %v1333_v19, %v1237_v25  ;;  %v1112_v56 = vmul.f32 %v1065_v1, %v3883_v2  ;;  %v1113_v57 = vmul.f32 %v1065_v1, %v3885_v3  ;;  %v5474_v31 = vld [vmem:[#allocation28_spill] sm:$0xff] }
 0x420   : > { %v1780_v25 = vmul.f32 1.442695, %v1740_v46  ;;  %v1782_v12 = vmul.f32 1.442695, %v1741_v13  ;;  %v5475_v46 = vld [vmem:[#allocation39_spill] sm:$0xff]  ;;  %v5478_v43 = vld [vmem:[#allocation24_spill] sm:$0xff] }
 0x421   : > { %v1240_v9 = vadd.f32 %v1208_v22, %v1112_v56  ;;  %v1241_v28 = vadd.f32 %v1209_v17, %v1113_v57  ;;  %v1493_v34 = vadd.f32 %v1461_v32, %v1365_v23  ;;  %v1492_v29 = vadd.f32 %v1460_v30, %v1364_v55  ;;  %v1680_v32 = vpop.permute.xlu1 %1679 }
 0x422   : > { %v1080_v39 = vpop.permute.xlu0 %1079 }
 0x423   : > { %v1368_v0 = vadd.f32 %v1336_v59, %v1240_v9  ;;  %v1369_v14 = vadd.f32 %v1337_v63, %v1241_v28  ;;  %v1118_v61 = vmul.f32 %v1080_v39, %v3883_v2  ;;  %v1119_v36 = vmul.f32 %v1080_v39, %v3885_v3  ;;  %v5465_v3 = vld [vmem:[#allocation31_spill] sm:$0xff]  ;;  %v5473_v39 = vld [vmem:[#allocation33_spill] sm:$0xff] }
 0x424   : > { %v1517_v15 = vpack.c.bf16 %v1495_v21, %v1493_v34  ;;  %v1516_v5 = vpack.c.bf16 %v1494_v49, %v1492_v29  ;;  %v5469_v29 = vld [vmem:[#allocation38_spill] sm:$0xff] }
 0x425   : > { %v1246_v58 = vadd.f32 %v1214_v38, %v1118_v61  ;;  %v1247_v53 = vadd.f32 %v1215_v37, %v1119_v36  ;;  %v1497_v35 = vadd.f32 %v1465_v62, %v1369_v14  ;;  %v1496_v50 = vadd.f32 %v1464_v27, %v1368_v0  ;;  %v1690_v41 = vpop.permute.xlu1 %1689  ;;  %v5470_v37 = vld [vmem:[#allocation108_spill] sm:$0xff]  ;;  %v5471_v27 = vld [vmem:[#allocation29_spill] sm:$0xff] }
 0x426   : > { %2077 = vmatprep.subr.bf16.mxu0 %v1517_v15  ;;  %v1660_v2 = vpop.permute.xlu0 %1659  ;;  %v1746_v16 = vsub.f32 %v5469_v29, %v1690_v41  ;;  %v1747_v15 = vsub.f32 %v5475_v46, %v1690_v41  ;;  %v5485_v41 = vld [vmem:[#allocation45_spill] sm:$0xff] }
 0x427   : > { %2078 = vmatpush1.bf16.xpose.msra.mxu0 %v1516_v5  ;;  %v1734_v4 = vsub.f32 %v5465_v3, %v1660_v2  ;;  %v1735_v7 = vsub.f32 %v5466_v40, %v1660_v2  ;;  %v1519_v8 = vpack.c.bf16 %v4860_v45, %v1497_v35  ;;  %v1374_v47 = vadd.f32 %v1342_v51, %v1246_v58  ;;  %v5467_v45 = vld [vmem:[#allocation36_spill] sm:$0xff] }
 0x428   : > { %v1375_v19 = vadd.f32 %v1343_v54, %v1247_v53  ;;  %v1518_v33 = vpack.c.bf16 %v4862_v24, %v1496_v50  ;;  %v1742_v1 = vsub.f32 %v5467_v45, %v1680_v32  ;;  %v5468_v24 = vld [vmem:[#allocation37_spill] sm:$0xff]  ;;  %v1792_v5 = vmul.f32 1.442695, %v1746_v16  ;;  %v5476_v53 = vld [vmem:[#allocation40_spill] sm:$0xff]  ;;  %v5486_v16 = vld [vmem:[#allocation27_spill] sm:$0xff] }
 0x429   : > { %v1768_v52 = vmul.f32 1.442695, %v1734_v4  ;;  %v1770_v30 = vmul.f32 1.442695, %v1735_v7  ;;  %2079 = vmatprep.subr.bf16.mxu0 %v1519_v8  ;;  %v1743_v56 = vsub.f32 %v5468_v24, %v1680_v32  ;;  %v5477_v50 = vld [vmem:[#allocation41_spill] sm:$0xff]  ;;  %v5479_v7 = vld [vmem:[#allocation64_spill] sm:$0xff] }
 0x42a   : > { %v1784_v6 = vmul.f32 1.442695, %v1742_v1  ;;  %v1794_v40 = vmul.f32 1.442695, %v1747_v15  ;;  %v5482_v32 = vld [vmem:[#allocation22_spill] sm:$0xff] }
 0x42b   : > { %3058 = vpow2.f32 %v1768_v52  ;;  %v1434_v48 = vpop.permute.xlu0 %1433  ;;  %v1786_v34 = vmul.f32 1.442695, %v1743_v56  ;;  %v5481_v52 = vld [vmem:[#allocation43_spill] sm:$0xff]  ;;  %v5484_v56 = vld [vmem:[#allocation44_spill] sm:$0xff] }
 0x42c   : > { %3060 = vpow2.f32 %v1770_v30  ;;  %v1470_v22 = vmul.f32 %v1434_v48, %v3895_v10  ;;  %v1471_v17 = vmul.f32 %v1434_v48, %v3897_v11 }
 0x42d   : > { %3062 = vpow2.f32 %v1780_v25 }
 0x42e   : > { %3064 = vpow2.f32 %v1782_v12  ;;  %v1502_v55 = vadd.f32 %v1470_v22, %v1374_v47  ;;  %v1503_v23 = vadd.f32 %v1471_v17, %v1375_v19 }
 0x42f   : > { %2080 = vmatpush1.bf16.xpose.msra.mxu0 %v1518_v33  ;;  %v1438_v57 = vpop.permute.xlu0 %1437  ;;  %3066 = vpow2.f32 %v1784_v6  ;;  %v5480_v33 = vld [vmem:[#allocation42_spill] sm:$0xff] }
 0x430   : > { %v1472_v59 = vmul.f32 %v1438_v57, %v3895_v10  ;;  %v1473_v63 = vmul.f32 %v1438_v57, %v3897_v11  ;;  %v1521_v21 = vpack.c.bf16 %v1503_v23, %v4812_v20  ;;  %v1520_v49 = vpack.c.bf16 %v1502_v55, %v4810_v44  ;;  %v5472_v11 = vld [vmem:[#allocation30_spill] sm:$0xff]  ;;  %v5483_v55 = vld [vmem:[#allocation71_spill] sm:$0xff] }
 0x431   : > { %3068 = vpow2.f32 %v1786_v34 }
 0x432   : > { %v1504_v9 = vadd.f32 %v1472_v59, %v4866_v42  ;;  %v1505_v28 = vadd.f32 %v1473_v63, %v4868_v26  ;;  %2081 = vmatprep.subr.bf16.mxu0 %v1521_v21  ;;  %v1700_v42 = vpop.permute.xlu1 %1699 }
 0x433   : > { %v1750_v13 = vsub.f32 %v5478_v43, %v1700_v42  ;;  %v1751_v8 = vsub.f32 %v5479_v7, %v1700_v42  ;;  %v5492_v43 = vld [vmem:[#allocation109_spill] sm:$0xff] }
 0x434   : > { %v1670_v38 = vpop.permute.xlu0 %1669  ;;  %v1523_v18 = vpack.c.bf16 %v5470_v37, %v1505_v28  ;;  %v1522_v10 = vpack.c.bf16 %v5471_v27, %v1504_v9  ;;  %v5487_v37 = vld [vmem:[#allocation25_spill] sm:$0xff] }
 0x435   : > { %v4930_v62 = vpop.eup %3058  ;;  %v1738_v20 = vsub.f32 %v5472_v11, %v1670_v38  ;;  %v1739_v44 = vsub.f32 %v5473_v39, %v1670_v38  ;;  %v1800_v12 = vmul.f32 1.442695, %v1750_v13  ;;  %v1802_v1 = vmul.f32 1.442695, %v1751_v8  ;;  %v5488_v27 = vld [vmem:[#allocation65_spill] sm:$0xff]  ;;  %v5489_v11 = vld [vmem:[#allocation110_spill] sm:$0xff] }
 0x436   : > { %v3061_v0 = vpop.eup %3060  ;;  %v1710_v47 = vpop.permute.xlu1 %1709  ;;  %v2053_v38 = vpack.c.bf16 %v4930_v62, %v5486_v16 }
 0x437   : > { %v4934_v14 = vpop.eup %3062  ;;  %v1776_v26 = vmul.f32 1.442695, %v1738_v20  ;;  %v1778_v61 = vmul.f32 1.442695, %v1739_v44  ;;  %2082 = vmatpush1.bf16.xpose.msra.mxu0 %v1520_v49  ;;  %v1863_v36 = vadd.f32 %v3061_v0, %v4930_v62  ;;  %v2054_v51 = vpack.c.bf16 %v3061_v0, %v5474_v31 }
 0x438   : > { %v4938_v60 = vpop.eup %3064  ;;  %2083 = vmatprep.subr.bf16.mxu0 %v1523_v18  ;;  %v1685_v58 = vpop.permute.xlu0 %1684  ;;  %v1754_v48 = vsub.f32 %v5482_v32, %v1710_v47  ;;  %v1755_v23 = vsub.f32 %v5483_v55, %v1710_v47  ;;  %v5493_v55 = vld [vmem:[#allocation47_spill] sm:$0xff] }
 0x439   : > { %3070 = vpow2.f32 %v1776_v26  ;;  %v1744_v35 = vsub.f32 %v5476_v53, %v1685_v58  ;;  %v1745_v54 = vsub.f32 %v5477_v50, %v1685_v58  ;;  %1864 = vadd.xlane.f32.xlu1 %v1863_v36  ;;  %2101 = vmatprep.mubr.bf16.mxu0 %v2054_v51  ;;  %v1872_v4 = vadd.f32 %v4938_v60, %v4934_v14  ;;  %v4950_v45 = vpop.eup %3066  ;;  %v5490_v36 = vld [vmem:[#allocation23_spill] sm:$0xff]  ;;  %v5491_v51 = vld [vmem:[#allocation72_spill] sm:$0xff] }
 0x43a   : > { %3072 = vpow2.f32 %v1778_v61  ;;  %v1808_v49 = vmul.f32 1.442695, %v1754_v48  ;;  %v1810_v34 = vmul.f32 1.442695, %v1755_v23  ;;  %v5494_v23 = vld [vmem:[#allocation46_spill] sm:$0xff] }
 0x43b   : > { %v1788_v2 = vmul.f32 1.442695, %v1744_v35  ;;  %v1790_v3 = vmul.f32 1.442695, %v1745_v54  ;;  %3074 = vpow2.f32 %v1792_v5  ;;  %v3069_v63 = vpop.eup %3068 }
 0x43c   : > { %v1695_v19 = vpop.permute.xlu0 %1694  ;;  %v1875_v58 = vadd.f32 %v3069_v63, %v4950_v45 }
 0x43d   : > { %3076 = vpow2.f32 %v1788_v2  ;;  %v1748_v25 = vsub.f32 %v5480_v33, %v1695_v19  ;;  %v1749_v30 = vsub.f32 %v5481_v52, %v1695_v19  ;;  %1873 = vadd.xlane.f32.xlu1 %v1872_v4  ;;  %v2058_v4 = vpack.c.bf16 %v3069_v63, %v4938_v60 }
 0x43e   : > { %3078 = vpow2.f32 %v1790_v3  ;;  %v2057_v60 = vpack.c.bf16 %v4950_v45, %v4934_v14 }
 0x43f   : > { %v1796_v22 = vmul.f32 1.442695, %v1748_v25  ;;  %v1798_v17 = vmul.f32 1.442695, %v1749_v30  ;;  %2084 = vmatpush1.bf16.xpose.msra.mxu0 %v1522_v10  ;;  %3080 = vpow2.f32 %v1794_v40 }
 0x440   : > { %v1705_v24 = vpop.permute.xlu0 %1704 }
 0x441   : > { %3082 = vpow2.f32 %v1796_v22  ;;  %v1752_v57 = vsub.f32 %v5484_v56, %v1705_v24  ;;  %v1753_v59 = vsub.f32 %v5485_v41, %v1705_v24  ;;  %v1604_v24 = vsub.f32 %v5494_v23, %v5493_v55  ;;  %v5495_v41 = vld [vmem:[#allocation51_spill] sm:$0xff]  ;;  %v5507_v23 = vld [vmem:[#allocation61_spill] sm:$0xff] }
 0x442   : > { %3084 = vpow2.f32 %v1798_v17 }
 0x443   : > { %v3071_v21 = vpop.eup %3070  ;;  %3086 = vpow2.f32 %v1800_v12  ;;  %v1804_v6 = vmul.f32 1.442695, %v1752_v57  ;;  %v1806_v9 = vmul.f32 1.442695, %v1753_v59  ;;  %v1620_v45 = vmul.f32 1.442695, %v1604_v24 }
 0x444   : > { %v3073_v28 = vpop.eup %3072  ;;  %3088 = vpow2.f32 %v1802_v1  ;;  %v1715_v29 = vpop.permute.xlu0 %1714  ;;  %v2055_v13 = vpack.c.bf16 %v3071_v21, %v5492_v43  ;;  %v5496_v59 = vld [vmem:[#allocation49_spill] sm:$0xff]  ;;  %v5508_v24 = vld [vmem:[#allocation60_spill] sm:$0xff] }
 0x445   : > { %3090 = vpow2.f32 %v1804_v6  ;;  %v1756_v18 = vsub.f32 %v5487_v37, %v1715_v29  ;;  %v1757_v10 = vsub.f32 %v5488_v27, %v1715_v29  ;;  %v2056_v20 = vpack.c.bf16 %v3073_v28, %v5489_v11  ;;  %v4960_v39 = vpop.eup %3074  ;;  %v5497_v29 = vld [vmem:[#allocation93_spill] sm:$0xff]  ;;  %v1828_v11 = vld [vmem:[#allocation3] sm:$0xff] }
 0x446   : > { %3092 = vpow2.f32 %v1806_v9  ;;  %2102 = vmatmul.mubr.bf16.vlgmr.msra.gmra.mrb[0].mxu0 %v2053_v38  ;;  %v1869_v44 = vadd.f32 %v3073_v28, %v3071_v21  ;;  %v1606_v63 = vsub.f32 %v5496_v59, %v5495_v41  ;;  %v5498_v38 = vld [vmem:[#allocation94_spill] sm:$0xff]  ;;  %v5510_v41 = vld [vmem:[#allocation56_spill] sm:$0xff] }
 0x447   : > { %v3077_v0 = vpop.eup %3076  ;;  %3094 = vpow2.f32 %v1808_v49  ;;  %v1812_v42 = vmul.f32 1.442695, %v1756_v18  ;;  %v1814_v26 = vmul.f32 1.442695, %v1757_v10  ;;  %2109 = vmatprep.mubr.bf16.mxu0 %v2056_v20  ;;  %v5499_v20 = vld [vmem:[#allocation95_spill] sm:$0xff] }
 0x448   : > { %v3079_v61 = vpop.eup %3078  ;;  %3096 = vpow2.f32 %v1810_v34  ;;  %1870 = vadd.xlane.f32.xlu0 %v1869_v44  ;;  %v1725_v62 = vpop.permute.xlu0 %1724  ;;  %v2059_v14 = vpack.c.bf16 %v4960_v39, %v3077_v0  ;;  %v1624_v6 = vmul.f32 1.442695, %v1606_v63  ;;  %v5500_v44 = vld [vmem:[#allocation96_spill] sm:$0xff] }
 0x449   : > { %3098 = vpow2.f32 %v1812_v42  ;;  %v1760_v31 = vsub.f32 %v5490_v36, %v1725_v62  ;;  %v1761_v46 = vsub.f32 %v5491_v51, %v1725_v62  ;;  %v1878_v15 = vadd.f32 %v3079_v61, %v3077_v0  ;;  %v3081_v5 = vpop.eup %3080 }
 0x44a   : > { %3100 = vpow2.f32 %v1814_v26  ;;  %v1881_v7 = vadd.f32 %v3081_v5, %v4960_v39  ;;  %v2060_v48 = vpack.c.bf16 %v3081_v5, %v3079_v61 }
 0x44b   : > { %v3083_v53 = vpop.eup %3082  ;;  %v1820_v35 = vmul.f32 1.442695, %v1760_v31  ;;  %v1822_v50 = vmul.f32 1.442695, %v1761_v46  ;;  %1879 = vadd.xlane.f32.xlu1 %v1878_v15  ;;  %v1830_v31 = vld [vmem:[#allocation3 + $0x10] sm:$0xff] }
 0x44c   : > { %v3085_v54 = vpop.eup %3084  ;;  %1876 = vadd.xlane.f32.xlu0 %v1875_v58 }
 0x44d   : > { %v3087_v2 = vpop.eup %3086  ;;  %3102 = vpow2.f32 %v1820_v35  ;;  %v1884_v3 = vadd.f32 %v3085_v54, %v3083_v53 }
 0x44e   : > { %v3089_v40 = vpop.eup %3088  ;;  %3104 = vpow2.f32 %v1822_v50  ;;  %2110 = vmatmul.mubr.bf16.gmra.mrb[4].mxu0 %v2055_v13  ;;  %v2061_v21 = vpack.c.bf16 %v3087_v2, %v3083_v53 }
 0x44f   : > { %v3091_v8 = vpop.eup %3090  ;;  %1885 = vadd.xlane.f32.xlu1 %v1884_v3  ;;  %2117 = vmatprep.mubr.bf16.mxu0 %v2058_v4  ;;  %v1887_v52 = vadd.f32 %v3089_v40, %v3087_v2  ;;  %v2062_v57 = vpack.c.bf16 %v3089_v40, %v3085_v54  ;;  %3106 = vpow2.f32 %v1620_v45  ;;  %v5501_v40 = vld [vmem:[#allocation50_spill] sm:$0xff] }
 0x450   : > { %v3093_v47 = vpop.eup %3092  ;;  %1882 = vadd.xlane.f32.xlu0 %v1881_v7  ;;  %3108 = vpow2.f32 %v1624_v6  ;;  %v5502_v7 = vld [vmem:[#allocation48_spill] sm:$0xff]  ;;  %v5512_v6 = vld [vmem:[#allocation62_spill] sm:$0xff] }
 0x451   : > { %v3095_v19 = vpop.eup %3094  ;;  %v1890_v33 = vadd.f32 %v3093_v47, %v3091_v8 }
 0x452   : > { %v3097_v25 = vpop.eup %3096  ;;  %v2063_v28 = vpack.c.bf16 %v3095_v19, %v3091_v8  ;;  %v1605_v8 = vsub.f32 %v5502_v7, %v5501_v40 }
 0x453   : > { %v4968_v30 = vpop.eup %3098  ;;  %1891 = vadd.xlane.f32.xlu1 %v1890_v33  ;;  %v1893_v22 = vadd.f32 %v3097_v25, %v3095_v19  ;;  %v2064_v49 = vpack.c.bf16 %v3097_v25, %v3093_v47  ;;  %v5503_v25 = vld [vmem:[#allocation54_spill] sm:$0xff] }
 0x454   : > { %v4970_v12 = vpop.eup %3100  ;;  %1888 = vadd.xlane.f32.xlu0 %v1887_v52  ;;  %v1622_v33 = vmul.f32 1.442695, %v1605_v8  ;;  %v5504_v52 = vld [vmem:[#allocation52_spill] sm:$0xff] }
 0x455   : > { %v1896_v32 = vadd.f32 %v4970_v12, %v4968_v30 }
 0x456   : > { %2118 = vmatmul.mubr.bf16.gmra.mrb[8].mxu0 %v2057_v60 }
 0x457   : > { %v4976_v17 = vpop.eup %3102  ;;  %1897 = vadd.xlane.f32.xlu1 %v1896_v32  ;;  %2125 = vmatprep.mubr.bf16.mxu0 %v2060_v48 }
 0x458   : > { %v3105_v1 = vpop.eup %3104  ;;  %1894 = vadd.xlane.f32.xlu0 %v1893_v22 }
 0x459   : > { %v1902_v56 = vadd.f32 %v3105_v1, %v4976_v17  ;;  %v3107_v9 = vpop.eup %3106 }
 0x45a   : > { %v1844_v61 = vmul.f32 %v3107_v9, %v1828_v11  ;;  %v3109_v62 = vpop.eup %3108  ;;  %v5515_v11 = vld [vmem:[#allocation70_spill] sm:$0xff] }
 0x45b   : > { %1903 = vadd.xlane.f32.xlu1 %v1902_v56  ;;  %v1846_v46 = vmul.f32 %v3109_v62, %v1830_v31  ;;  %v1610_v56 = vsub.f32 %v5508_v24, %v5507_v23  ;;  %v5519_v31 = vld [vmem:[#allocation82_spill] sm:$0xff] }
 0x45c   : > { %v1835_v23 = vld [vmem:[#allocation3 + $0x38] sm:$0xff] }
 0x45e   : > { %2126 = vmatmul.mubr.bf16.gmra.mrb[12].mxu0 %v2059_v14  ;;  %v1829_v14 = vld [vmem:[#allocation3 + $0x8] sm:$0xff] }
 0x45f   : > { %2133 = vmatprep.mubr.bf16.mxu0 %v2062_v57  ;;  %v5509_v57 = vld [vmem:[#allocation57_spill] sm:$0xff] }
 0x460   : > { %v1609_v59 = vsub.f32 %v5510_v41, %v5509_v57 }
 0x466   : > { %2134 = vmatmul.mubr.bf16.gmra.mrb[16].mxu0 %v2061_v21  ;;  %v1632_v21 = vmul.f32 1.442695, %v1610_v56 }
 0x467   : > { %2141 = vmatprep.mubr.bf16.mxu0 %v2064_v49  ;;  %v5511_v49 = vld [vmem:[#allocation63_spill] sm:$0xff] }
 0x46c   : > { %1959 = vperm.xlu1 %3048, %v3107_v9   ;;  %v1612_v9 = vsub.f32 %v5512_v6, %v5511_v49  ;;  %v1837_v6 = vld [vmem:[#allocation3 + $0x48] sm:$0xff] }
 0x46d   : > { %v1720_v34 = vpop.permute.xlu1 %1719 }
 0x46e   : > { %2142 = vmatmul.mubr.bf16.gmra.mrb[20].mxu0 %v2063_v28  ;;  %v1758_v16 = vsub.f32 %v5497_v29, %v1720_v34  ;;  %v1759_v37 = vsub.f32 %v5498_v38, %v1720_v34  ;;  %v1832_v34 = vld [vmem:[#allocation3 + $0x20] sm:$0xff]  ;;  %v1630_v29 = vmul.f32 1.442695, %v1609_v59  ;;  %v1838_v59 = vld [vmem:[#allocation3 + $0x50] sm:$0xff] }
 0x46f   : > { %v5514_v38 = vld [vmem:[#allocation58_spill] sm:$0xff] }
 0x470   : > { %v1816_v18 = vmul.f32 1.442695, %v1758_v16  ;;  %v1818_v27 = vmul.f32 1.442695, %v1759_v37  ;;  %v5513_v16 = vld [vmem:[#allocation59_spill] sm:$0xff] }
 0x471   : > { %v1730_v10 = vpop.permute.xlu1 %1729  ;;  %v1611_v37 = vsub.f32 %v5514_v38, %v5513_v16 }
 0x472   : > { %3110 = vpow2.f32 %v1816_v18  ;;  %v1762_v39 = vsub.f32 %v5499_v20, %v1730_v10  ;;  %v1763_v0 = vsub.f32 %v5500_v44, %v1730_v10  ;;  %v1636_v10 = vmul.f32 1.442695, %v1612_v9  ;;  %v5516_v20 = vld [vmem:[#allocation69_spill] sm:$0xff] }
 0x473   : > { %3112 = vpow2.f32 %v1818_v27 }
 0x474   : > { %v1824_v42 = vmul.f32 1.442695, %v1762_v39  ;;  %v1826_v26 = vmul.f32 1.442695, %v1763_v0  ;;  %v1614_v39 = vsub.f32 %v5516_v20, %v5515_v11  ;;  %v1634_v0 = vmul.f32 1.442695, %v1611_v37 }
 0x475   : > { %v1862_v36 = vpop.xlane.xlu0 %1861  ;;  %v1839_v20 = vld [vmem:[#allocation3 + $0x58] sm:$0xff] }
 0x476   : > { %3114 = vpow2.f32 %v1824_v42  ;;  %v1908_v51 = vadd.f32 %v1862_v36, %v1844_v61  ;;  %v5517_v42 = vld [vmem:[#allocation75_spill] sm:$0xff]  ;;  %v1640_v36 = vmul.f32 1.442695, %v1614_v39 }
 0x477   : > { %3116 = vpow2.f32 %v1826_v26  ;;  %v5518_v26 = vld [vmem:[#allocation74_spill] sm:$0xff] }
 0x478   : > { %1925 = vst.msk [vmem:[#allocation3] sm:$0xff] %vm361_vm0, %v1908_v51  ;;  %v1613_v61 = vsub.f32 %v5518_v26, %v5517_v42  ;;  %v5520_v51 = vld [vmem:[#allocation81_spill] sm:$0xff] }
 0x479   : > { %v1868_v15 = vpop.xlane.xlu0 %1867 }
 0x47a   : > { %v1910_v5 = vadd.f32 %v1868_v15, %v1846_v46  ;;  %v1616_v46 = vsub.f32 %v5520_v51, %v5519_v31  ;;  %v1638_v15 = vmul.f32 1.442695, %v1613_v61 }
 0x47c   : > { %v3111_v58 = vpop.eup %3110  ;;  %1927 = vst.msk [vmem:[#allocation3 + $0x10] sm:$0xff] %vm361_vm0, %v1910_v5 }
 0x47d   : > { %v3113_v53 = vpop.eup %3112  ;;  %v2065_v35 = vpack.c.bf16 %v3111_v58, %v4968_v30  ;;  %v1608_v30 = vsub.f32 %v5504_v52, %v5503_v25  ;;  %v1833_v25 = vld [vmem:[#allocation3 + $0x28] sm:$0xff] }
 0x47e   : > { %v2066_v50 = vpack.c.bf16 %v3113_v53, %v4970_v12  ;;  %v1899_v54 = vadd.f32 %v3113_v53, %v3111_v58  ;;  %v1831_v53 = vld [vmem:[#allocation3 + $0x18] sm:$0xff] }
 0x47f   : > { %v2217_v43 = vld [vmem:[#allocation3] sm:$0xff]  ;;  %v1628_v60 = vmul.f32 1.442695, %v1608_v30 }
 0x480   : > { %v3115_v13 = vpop.eup %3114  ;;  %3118 = vrcp.f32 %v2217_v43  ;;  %2149 = vmatprep.mubr.bf16.mxu0 %v2066_v50  ;;  %1900 = vadd.xlane.f32.xlu0 %v1899_v54  ;;  %v5521_v50 = vld [vmem:[#allocation100_spill] sm:$0xff]  ;;  %v5522_v54 = vld [vmem:[#allocation99_spill] sm:$0xff] }
 0x481   : > { %v3117_v2 = vpop.eup %3116  ;;  %2150 = vmatmul.mubr.bf16.gmra.mrb[24].mxu0 %v2065_v35  ;;  %v2067_v47 = vpack.c.bf16 %v3115_v13, %v4976_v17  ;;  %3120 = vpow2.f32 %v1622_v33  ;;  %v5505_v17 = vld [vmem:[#allocation55_spill] sm:$0xff]  ;;  %v1644_v35 = vmul.f32 1.442695, %v1616_v46  ;;  %v1618_v43 = vsub.f32 %v5522_v54, %v5521_v50 }
 0x482   : > { %v2068_v3 = vpack.c.bf16 %v3117_v2, %v3105_v1  ;;  %v1905_v4 = vadd.f32 %v3117_v2, %v3115_v13  ;;  %v5506_v1 = vld [vmem:[#allocation53_spill] sm:$0xff]  ;;  %v5524_v2 = vld [vmem:[#allocation87_spill] sm:$0xff] }
 0x483   : > { %v2219_v12 = vld [vmem:[#allocation3 + $0x10] sm:$0xff]  ;;  %v1607_v55 = vsub.f32 %v5506_v1, %v5505_v17  ;;  %v1648_v52 = vmul.f32 1.442695, %v1618_v43 }
 0x484   : > { %2157 = vmatprep.mubr.bf16.mxu0 %v2068_v3  ;;  %1906 = vadd.xlane.f32.xlu0 %v1905_v4  ;;  %3122 = vrcp.f32 %v2219_v12  ;;  %v5523_v13 = vld [vmem:[#allocation85_spill] sm:$0xff] }
 0x485   : > { %3124 = vpow2.f32 %v1628_v60  ;;  %v1626_v45 = vmul.f32 1.442695, %v1607_v55  ;;  %v5525_v3 = vsub.f32 %v5523_v13, %v5524_v2 }
 0x487   : > { %3126 = vpow2.f32 %v1626_v45  ;;  %v1642_v4 = vmul.f32 1.442695, %v5525_v3 }
 0x488   : > { %3128 = vpow2.f32 %v1632_v21 }
 0x489   : > { %2158 = vmatmul.mubr.bf16.gmra.mrb[28].mxu0 %v2067_v47  ;;  %3130 = vpow2.f32 %v1630_v29  ;;  %v1834_v47 = vld [vmem:[#allocation3 + $0x30] sm:$0xff] }
 0x48a   : > { %v3119_v19 = vpop.eup %3118  ;;  %3132 = vpow2.f32 %v1636_v10 }
 0x48b   : > { %2267 = vperm.xlu1 %3048, %v3119_v19   ;;  %v3121_v32 = vpop.eup %3120  ;;  %3134 = vpow2.f32 %v1634_v0  ;;  %v3458_v0 = vmov 0.0|0.0  }
 0x48c   : > { %v1845_v63 = vmul.f32 %v3121_v32, %v1829_v14  ;;  %2824 = vmatprep.subr.bf16.mxu1 %v3458_v0 }
 0x48e   : > { %v3123_v48 = vpop.eup %3122 }
 0x48f   : > { %v3125_v22 = vpop.eup %3124 }
 0x490   : > { %v1848_v27 = vmul.f32 %v3125_v22, %v1832_v34 }
 0x491   : > { %v3127_v58 = vpop.eup %3126 }
 0x492   : > { %v5020_v40 = vpop.eup %3128  ;;  %v1847_v8 = vmul.f32 %v3127_v58, %v1831_v53 }
 0x493   : > { %v5022_v19 = vpop.eup %3130  ;;  %v1850_v12 = vmul.f32 %v5020_v40, %v1834_v47  ;;  %v5527_v47 = vld [vmem:[#allocation112_spill] sm:$0xff] }
 0x494   : > { %v5025_v60 = vpop.eup %3132 }
 0x495   : > { %v5029_v17 = vpop.eup %3134 }
 0x496   : > { %v1851_v57 = vmul.f32 %v5029_v17, %v1835_v23 }
 0x49a   : > { %1964 = vperm.xlu0 %3049, %v3121_v32   ;;  %v1849_v32 = vmul.f32 %v5022_v19, %v1833_v25 }
 0x49e   : > { %1969 = vperm.xlu0 %3049, %v3109_v62  }
 0x4a2   : > { %2277 = vperm.xlu0 %3049, %v3123_v48  }
 0x4a6   : > { %1979 = vperm.xlu0 %3049, %v3125_v22   ;;  %v1836_v22 = vld [vmem:[#allocation3 + $0x40] sm:$0xff] }
 0x4a7   : > { %v1852_v14 = vmul.f32 %v5025_v60, %v1836_v22 }
 0x4c6   : > { %v1865_v28 = vpop.xlane.xlu1 %1864 }
 0x4c7   : > { %v1909_v18 = vadd.f32 %v1865_v28, %v1845_v63 }
 0x4c9   : > { %1926 = vst.msk [vmem:[#allocation3 + $0x8] sm:$0xff] %vm361_vm0, %v1909_v18  ;;  %v1840_v18 = vld [vmem:[#allocation3 + $0x60] sm:$0xff] }
 0x4ca   : > { %v1874_v44 = vpop.xlane.xlu1 %1873 }
 0x4cb   : > { %v1912_v62 = vadd.f32 %v1874_v44, %v1848_v27 }
 0x4cd   : > { %1929 = vst.msk [vmem:[#allocation3 + $0x20] sm:$0xff] %vm361_vm0, %v1912_v62 }
 0x4d0   : > { %v2218_v5 = vld [vmem:[#allocation3 + $0x8] sm:$0xff] }
 0x4d1   : > { %3136 = vrcp.f32 %v2218_v5 }
 0x4d2   : > { %3138 = vpow2.f32 %v1640_v36  ;;  %v1842_v36 = vld [vmem:[#allocation3 + $0x70] sm:$0xff] }
 0x4d3   : > { %3140 = vpow2.f32 %v1638_v15 }
 0x4d4   : > { %v2221_v7 = vld [vmem:[#allocation3 + $0x20] sm:$0xff] }
 0x4d5   : > { %3142 = vrcp.f32 %v2221_v7  ;;  %v1871_v33 = vpop.xlane.xlu0 %1870 }
 0x4d6   : > { %3144 = vpow2.f32 %v1644_v35  ;;  %v1911_v30 = vadd.f32 %v1871_v33, %v1847_v8  ;;  %v5526_v8 = vld [vmem:[#allocation111_spill] sm:$0xff] }
 0x4d7   : > { %3146 = vpow2.f32 %v1642_v4 }
 0x4d8   : > { %1928 = vst.msk [vmem:[#allocation3 + $0x18] sm:$0xff] %vm361_vm0, %v1911_v30  ;;  %v1880_v48 = vpop.xlane.xlu1 %1879  ;;  %3148 = vpow2.f32 %v1648_v52  ;;  %v5529_v30 = vld [vmem:[#allocation113_spill] sm:$0xff] }
 0x4d9   : > { %v1877_v1 = vpop.xlane.xlu0 %1876  ;;  %v1914_v55 = vadd.f32 %v1880_v48, %v1850_v12  ;;  %v5530_v12 = vld [vmem:[#allocation114_spill] sm:$0xff] }
 0x4da   : > { %v1913_v24 = vadd.f32 %v1877_v1, %v1849_v32 }
 0x4db   : > { %v3137_v56 = vpop.eup %3136  ;;  %1931 = vst.msk [vmem:[#allocation3 + $0x30] sm:$0xff] %vm361_vm0, %v1914_v55  ;;  %v1841_v55 = vld [vmem:[#allocation3 + $0x68] sm:$0xff] }
 0x4dc   : > { %v5033_v45 = vpop.eup %3138  ;;  %1930 = vst.msk [vmem:[#allocation3 + $0x28] sm:$0xff] %vm361_vm0, %v1913_v24  ;;  %v1886_v41 = vpop.xlane.xlu1 %1885  ;;  %2272 = vperm.xlu1 %3048, %v3137_v56  }
 0x4dd   : > { %v5037_v63 = vpop.eup %3140  ;;  %v1883_v21 = vpop.xlane.xlu0 %1882  ;;  %v1916_v49 = vadd.f32 %v1886_v41, %v1852_v14  ;;  %v1854_v29 = vmul.f32 %v5033_v45, %v1838_v59 }
 0x4de   : > { %v1915_v9 = vadd.f32 %v1883_v21, %v1851_v57  ;;  %v1853_v38 = vmul.f32 %v5037_v63, %v1837_v6  ;;  %v1843_v57 = vld [vmem:[#allocation3 + $0x78] sm:$0xff] }
 0x4df   : > { %v3143_v28 = vpop.eup %3142  ;;  %v2220_v34 = vld [vmem:[#allocation3 + $0x18] sm:$0xff]  ;;  %1933 = vst.msk [vmem:[#allocation3 + $0x40] sm:$0xff] %vm361_vm0, %v1916_v49 }
 0x4e0   : > { %v5041_v16 = vpop.eup %3144  ;;  %3150 = vrcp.f32 %v2220_v34  ;;  %1932 = vst.msk [vmem:[#allocation3 + $0x38] sm:$0xff] %vm361_vm0, %v1915_v9  ;;  %2287 = vperm.xlu0 %3049, %v3143_v28   ;;  %v1892_v37 = vpop.xlane.xlu1 %1891  ;;  %1974 = vperm.xlu1 %3048, %v3127_v58  }
 0x4e1   : > { %v5045_v27 = vpop.eup %3146  ;;  %v1889_v10 = vpop.xlane.xlu0 %1888  ;;  %v1918_v11 = vadd.f32 %v1892_v37, %v1854_v29  ;;  %v1856_v42 = vmul.f32 %v5041_v16, %v1840_v18 }
 0x4e2   : > { %v2223_v39 = vld [vmem:[#allocation3 + $0x30] sm:$0xff]  ;;  %v1917_v44 = vadd.f32 %v1889_v10, %v1853_v38  ;;  %v3149_v26 = vpop.eup %3148  ;;  %v1855_v61 = vmul.f32 %v5045_v27, %v1839_v20 }
 0x4e3   : > { %3152 = vrcp.f32 %v2223_v39  ;;  %1935 = vst.msk [vmem:[#allocation3 + $0x50] sm:$0xff] %vm361_vm0, %v1918_v11  ;;  %v2222_v31 = vld [vmem:[#allocation3 + $0x28] sm:$0xff]  ;;  %v1858_v5 = vmul.f32 %v3149_v26, %v1842_v36 }
 0x4e4   : > { %1934 = vst.msk [vmem:[#allocation3 + $0x48] sm:$0xff] %vm361_vm0, %v1917_v44  ;;  %1989 = vperm.xlu0 %3049, %v5020_v40   ;;  %v1898_v62 = vpop.xlane.xlu1 %1897  ;;  %3154 = vrcp.f32 %v2222_v31 }
 0x4e5   : > { %v1895_v51 = vpop.xlane.xlu0 %1894  ;;  %v1920_v46 = vadd.f32 %v1898_v62, %v1856_v42 }
 0x4e6   : > { %v1919_v15 = vadd.f32 %v1895_v51, %v1855_v61  ;;  %v2225_v58 = vld [vmem:[#allocation3 + $0x40] sm:$0xff]  ;;  %v5532_v61 = vmov 0.0  }
 0x4e7   : > { %1937 = vst.msk [vmem:[#allocation3 + $0x60] sm:$0xff] %vm361_vm0, %v1920_v46  ;;  %3156 = vrcp.f32 %v2225_v58  ;;  %v2224_v43 = vld [vmem:[#allocation3 + $0x38] sm:$0xff]  ;;  %2786 = vmatprep.mubr.msk.f32.mxu1 %vm3459_vm1, %v5532_v61 }
 0x4e8   : > { %1936 = vst.msk [vmem:[#allocation3 + $0x58] sm:$0xff] %vm361_vm0, %v1919_v15  ;;  %v1904_v53 = vpop.xlane.xlu1 %1903  ;;  %3158 = vrcp.f32 %v2224_v43 }
 0x4e9   : > { %v1922_v35 = vadd.f32 %v1904_v53, %v1858_v5 }
 0x4ea   : > { %v3151_v50 = vpop.eup %3150  ;;  %v2227_v13 = vld [vmem:[#allocation3 + $0x50] sm:$0xff] }
 0x4eb   : > { %1939 = vst.msk [vmem:[#allocation3 + $0x70] sm:$0xff] %vm361_vm0, %v1922_v35  ;;  %2282 = vperm.xlu1 %3048, %v3151_v50   ;;  %3160 = vrcp.f32 %v2227_v13  ;;  %v2226_v4 = vld [vmem:[#allocation3 + $0x48] sm:$0xff] }
 0x4ec   : > { %3162 = vrcp.f32 %v2226_v4 }
 0x4ed   : > { %v3153_v54 = vpop.eup %3152 }
 0x4ee   : > { %2297 = vperm.xlu0 %3049, %v3153_v54   ;;  %v3155_v2 = vpop.eup %3154  ;;  %v2229_v40 = vld [vmem:[#allocation3 + $0x60] sm:$0xff]  ;;  %v1960_v54 = vpop.permute.xlu1 %1959 }
 0x4ef   : > { %1984 = vperm.xlu1 %3048, %v5022_v19   ;;  %v5528_v19 = vsub.f32 %v5526_v8, %v5527_v47  ;;  %3164 = vrcp.f32 %v2229_v40  ;;  %v2228_v52 = vld [vmem:[#allocation3 + $0x58] sm:$0xff]  ;;  %v2037_v13 = vmul.f32 0.0, %v1960_v54 }
 0x4f1   : > { %v3157_v3 = vpop.eup %3156  ;;  %v1646_v33 = vmul.f32 1.442695, %v5528_v19 }
 0x4f2   : > { %1999 = vperm.xlu0 %3049, %v5025_v60   ;;  %v3159_v7 = vpop.eup %3158  ;;  %v5531_v60 = vsub.f32 %v5529_v30, %v5530_v12  ;;  %v2231_v48 = vld [vmem:[#allocation3 + $0x70] sm:$0xff] }
 0x4f3   : > { %2292 = vperm.xlu1 %3048, %v3155_v2   ;;  %3166 = vpow2.f32 %v1646_v33  ;;  %v2361_v12 = vld [vmem:[#allocation14] sm:$0xff] }
 0x4f4   : > { %v1650_v32 = vmul.f32 1.442695, %v5531_v60  ;;  %3168 = vrcp.f32 %v2228_v52  ;;  %v2362_v52 = vld [vmem:[#allocation14 + $0x8] sm:$0xff] }
 0x4f5   : > { %v3161_v25 = vpop.eup %3160 }
 0x4f6   : > { %2307 = vperm.xlu0 %3049, %v3157_v3   ;;  %v3163_v22 = vpop.eup %3162  ;;  %3170 = vpow2.f32 %v1650_v32 }
 0x4f7   : > { %1994 = vperm.xlu1 %3048, %v5029_v17   ;;  %3172 = vrcp.f32 %v2231_v48 }
 0x4f9   : > { %v3165_v17 = vpop.eup %3164 }
 0x4fa   : > { %2009 = vperm.xlu0 %3049, %v5033_v45  }
 0x4fb   : > { %2302 = vperm.xlu1 %3048, %v3159_v7  }
 0x4fd   : > { %v3167_v1 = vpop.eup %3166 }
 0x4fe   : > { %2317 = vperm.xlu0 %3049, %v3161_v25   ;;  %v3169_v23 = vpop.eup %3168  ;;  %v1857_v56 = vmul.f32 %v3167_v1, %v1841_v55 }
 0x4ff   : > { %2004 = vperm.xlu1 %3048, %v5037_v63  }
 0x500   : > { %v3171_v24 = vpop.eup %3170 }
 0x501   : > { %v3173_v14 = vpop.eup %3172  ;;  %v1859_v59 = vmul.f32 %v3171_v24, %v1843_v57 }
 0x502   : > { %2019 = vperm.xlu0 %3049, %v5041_v16  }
 0x503   : > { %2312 = vperm.xlu1 %3048, %v3163_v22  }
 0x506   : > { %2327 = vperm.xlu0 %3049, %v3165_v17  }
 0x507   : > { %2014 = vperm.xlu1 %3048, %v5045_v27  }
 0x50a   : > { %2029 = vperm.xlu0 %3049, %v3149_v26   ;;  %v2268_v8 = vpop.permute.xlu1 %2267 }
 0x50b   : > { %2322 = vperm.xlu1 %3048, %v3169_v23  }
 0x50d   : > { %v1901_v45 = vpop.xlane.xlu0 %1900 }
 0x50e   : > { %v1921_v41 = vadd.f32 %v1901_v45, %v1857_v56  ;;  %2337 = vperm.xlu0 %3049, %v3173_v14  }
 0x50f   : > { %2024 = vperm.xlu1 %3048, %v3167_v1  }
 0x510   : > { %1938 = vst.msk [vmem:[#allocation3 + $0x68] sm:$0xff] %vm361_vm0, %v1921_v41 }
 0x511   : > { %v1907_v63 = vpop.xlane.xlu0 %1906 }
 0x512   : > { %v1923_v21 = vadd.f32 %v1907_v63, %v1859_v59 }
 0x514   : > { %1940 = vst.msk [vmem:[#allocation3 + $0x78] sm:$0xff] %vm361_vm0, %v1923_v21 }
 0x517   : > { %v2230_v49 = vld [vmem:[#allocation3 + $0x68] sm:$0xff] }
 0x518   : > { %3174 = vrcp.f32 %v2230_v49  ;;  %v2363_v49 = vld [vmem:[#allocation14 + $0x10] sm:$0xff] }
 0x519   : > { %v2103_v6 = vpop.f32.mrb[0].mxu0  ;;  %v1965_v50 = vpop.permute.xlu0 %1964 }
 0x51a   : > { %v2105_v9 = vpop.f32.mrb[1].mxu0  ;;  %v2166_v4 = vadd.f32 %v2103_v6, %v2037_v13  ;;  %v2038_v40 = vmul.f32 0.0, %v1965_v50  ;;  %v2364_v6 = vld [vmem:[#allocation14 + $0x18] sm:$0xff] }
 0x51b   : > { %v2106_v28 = vpop.f32.mrb[2].mxu0  ;;  %v2232_v29 = vld [vmem:[#allocation3 + $0x78] sm:$0xff] }
 0x51c   : > { %v2108_v34 = vpop.f32.mrb[3].mxu0  ;;  %3176 = vrcp.f32 %v2232_v29  ;;  %v2345_v33 = vmul.f32 %v2268_v8, %v2166_v4  ;;  %v2167_v25 = vadd.f32 %v2106_v28, %v2038_v40 }
 0x51d   : > { %v1970_v43 = vpop.permute.xlu0 %1969 }
 0x51e   : > { %v2377_v1 = vmul.f32 %v2361_v12, %v2345_v33  ;;  %v2039_v14 = vmul.f32 0.0, %v1970_v43 }
 0x521   : > { %v2111_v16 = vpop.f32.mrb[4].mxu0  ;;  %v2278_v19 = vpop.permute.xlu0 %2277 }
 0x522   : > { %v3175_v38 = vpop.eup %3174  ;;  %v2113_v37 = vpop.f32.mrb[5].mxu0  ;;  %v2168_v57 = vadd.f32 %v2111_v16, %v2039_v14 }
 0x523   : > { %v2114_v18 = vpop.f32.mrb[6].mxu0  ;;  %2332 = vperm.xlu1 %3048, %v3175_v38  }
 0x524   : > { %v2116_v27 = vpop.f32.mrb[7].mxu0  ;;  %v2347_v59 = vmul.f32 %v2278_v19, %v2168_v57  ;;  %v2368_v19 = vld [vmem:[#allocation14 + $0x38] sm:$0xff] }
 0x525   : > { %v1980_v55 = vpop.permute.xlu0 %1979 }
 0x526   : > { %v3177_v11 = vpop.eup %3176  ;;  %v2379_v34 = vmul.f32 %v2363_v49, %v2347_v59  ;;  %v2041_v29 = vmul.f32 0.0, %v1980_v55 }
 0x527   : > { %2034 = vperm.xlu1 %3048, %v3171_v24  }
 0x529   : > { %v5071_v10 = vpop.f32.mrb[8].mxu0 }
 0x52a   : > { %v2121_v20 = vpop.f32.mrb[9].mxu0 }
 0x52b   : > { %v5073_v39 = vpop.f32.mrb[10].mxu0  ;;  %2342 = vperm.xlu1 %3048, %v3177_v11   ;;  %v2170_v11 = vadd.f32 %v5071_v10, %v2041_v29 }
 0x52c   : > { %v2124_v44 = vpop.f32.mrb[11].mxu0 }
 0x531   : > { %v5075_v42 = vpop.f32.mrb[12].mxu0 }
 0x532   : > { %v2129_v26 = vpop.f32.mrb[13].mxu0 }
 0x533   : > { %v5079_v62 = vpop.f32.mrb[14].mxu0 }
 0x534   : > { %v2132_v36 = vpop.f32.mrb[15].mxu0 }
 0x535   : > { %v2365_v36 = vld [vmem:[#allocation14 + $0x20] sm:$0xff] }
 0x539   : > { %v5081_v31 = vpop.f32.mrb[16].mxu0 }
 0x53a   : > { %v2137_v51 = vpop.f32.mrb[17].mxu0 }
 0x53b   : > { %v5083_v46 = vpop.f32.mrb[18].mxu0 }
 0x53c   : > { %v2140_v15 = vpop.f32.mrb[19].mxu0 }
 0x541   : > { %v5085_v5 = vpop.f32.mrb[20].mxu0 }
 0x542   : > { %v2145_v58 = vpop.f32.mrb[21].mxu0 }
 0x543   : > { %v5087_v53 = vpop.f32.mrb[22].mxu0 }
 0x544   : > { %v2148_v35 = vpop.f32.mrb[23].mxu0 }
 0x554   : > { %v5089_v2 = vpop.f32.mrb[24].mxu0 }
 0x555   : > { %v2153_v3 = vpop.f32.mrb[25].mxu0 }
 0x556   : > { %v5091_v7 = vpop.f32.mrb[26].mxu0 }
 0x557   : > { %v2156_v47 = vpop.f32.mrb[27].mxu0 }
 0x558   : > { %v2367_v47 = vld [vmem:[#allocation14 + $0x30] sm:$0xff] }
 0x55b   : > { %v2273_v30 = vpop.permute.xlu1 %2272 }
 0x55c   : > { %v2346_v60 = vmul.f32 %v2273_v30, %v2167_v25  ;;  %v5093_v32 = vpop.f32.mrb[28].mxu0 }
 0x55d   : > { %v2161_v48 = vpop.f32.mrb[29].mxu0 }
 0x55e   : > { %v2378_v22 = vmul.f32 %v2362_v52, %v2346_v60  ;;  %v5095_v17 = vpop.f32.mrb[30].mxu0 }
 0x55f   : > { %v2164_v23 = vpop.f32.mrb[31].mxu0  ;;  %v1975_v56 = vpop.permute.xlu1 %1974 }
 0x560   : > { %v2825_v24 = vpack.c.bf16 %v2378_v22, %v2377_v1  ;;  %v2288_v45 = vpop.permute.xlu0 %2287  ;;  %v2040_v41 = vmul.f32 0.0, %v1975_v56 }
 0x561   : > { %v2349_v26 = vmul.f32 %v2288_v45, %v2170_v11 }
 0x562   : > { %2826 = vmatpush3.bf16.xpose.msra.mxu1 %v2825_v24  ;;  %v2169_v21 = vadd.f32 %v2114_v18, %v2040_v41  ;;  %v2366_v18 = vld [vmem:[#allocation14 + $0x28] sm:$0xff] }
 0x563   : > { %2827 = vmatprep.subr.bf16.mxu1 %v3458_v0  ;;  %v2381_v50 = vmul.f32 %v2365_v36, %v2349_v26  ;;  %v2370_v24 = vld [vmem:[#allocation14 + $0x48] sm:$0xff] }
 0x564   : > { %v1990_v63 = vpop.permute.xlu0 %1989 }
 0x565   : > { %v2043_v58 = vmul.f32 0.0, %v1990_v63 }
 0x567   : > { %v2172_v13 = vadd.f32 %v5075_v42, %v2043_v58 }
 0x56a   : > { %v2283_v9 = vpop.permute.xlu1 %2282 }
 0x56b   : > { %v2348_v28 = vmul.f32 %v2283_v9, %v2169_v21  ;;  %v2371_v9 = vld [vmem:[#allocation14 + $0x50] sm:$0xff] }
 0x56d   : > { %v2380_v38 = vmul.f32 %v2364_v6, %v2348_v28  ;;  %v2298_v37 = vpop.permute.xlu0 %2297 }
 0x56e   : > { %v1985_v27 = vpop.permute.xlu1 %1984  ;;  %v2351_v40 = vmul.f32 %v2298_v37, %v2172_v13 }
 0x56f   : > { %v2042_v20 = vmul.f32 0.0, %v1985_v27  ;;  %v2828_v44 = vpack.c.bf16 %v2380_v38, %v2379_v34 }
 0x570   : > { %v2383_v52 = vmul.f32 %v2367_v47, %v2351_v40 }
 0x571   : > { %2829 = vmatpush3.bf16.xpose.msra.mxu1 %v2828_v44  ;;  %v2171_v16 = vadd.f32 %v5073_v39, %v2042_v20  ;;  %v2000_v51 = vpop.permute.xlu0 %1999 }
 0x572   : > { %v2293_v15 = vpop.permute.xlu1 %2292  ;;  %2830 = vmatprep.subr.bf16.mxu1 %v3458_v0  ;;  %v2045_v8 = vmul.f32 0.0, %v2000_v51 }
 0x573   : > { %v2350_v35 = vmul.f32 %v2293_v15, %v2171_v16  ;;  %v2374_v15 = vld [vmem:[#allocation14 + $0x68] sm:$0xff] }
 0x574   : > { %v2174_v30 = vadd.f32 %v5081_v31, %v2045_v8  ;;  %v2375_v8 = vld [vmem:[#allocation14 + $0x70] sm:$0xff] }
 0x575   : > { %v2382_v54 = vmul.f32 %v2366_v18, %v2350_v35  ;;  %v2308_v4 = vpop.permute.xlu0 %2307  ;;  %v2373_v18 = vld [vmem:[#allocation14 + $0x60] sm:$0xff] }
 0x576   : > { %v1995_v43 = vpop.permute.xlu1 %1994  ;;  %v2353_v1 = vmul.f32 %v2308_v4, %v2174_v30  ;;  %v2393_v30 = vld [vmem:[#allocation13] sm:$0xf] }
 0x577   : > { %v2044_v10 = vmul.f32 0.0, %v1995_v43  ;;  %v2831_v3 = vpack.c.bf16 %v2382_v54, %v2381_v50 }
 0x579   : > { %2832 = vmatpush3.bf16.xpose.msra.mxu1 %v2831_v3  ;;  %v2173_v39 = vadd.f32 %v5079_v62, %v2044_v10  ;;  %v2010_v60 = vpop.permute.xlu0 %2009  ;;  %v2369_v62 = vld [vmem:[#allocation14 + $0x40] sm:$0xff] }
 0x57a   : > { %v2303_v33 = vpop.permute.xlu1 %2302  ;;  %2833 = vmatprep.subr.bf16.mxu1 %v3458_v0  ;;  %v2047_v55 = vmul.f32 0.0, %v2010_v60  ;;  %v2385_v45 = vmul.f32 %v2369_v62, %v2353_v1  ;;  %v2466_v60 = vld [vmem:[#allocation11 + $0x10] sm:$0xff] }
 0x57b   : > { %v2352_v25 = vmul.f32 %v2303_v33, %v2173_v39  ;;  %v2376_v39 = vld [vmem:[#allocation14 + $0x78] sm:$0xff] }
 0x57c   : > { %v2176_v57 = vadd.f32 %v5085_v5, %v2047_v55  ;;  %v2470_v55 = vld [vmem:[#allocation11 + $0x30] sm:$0xff] }
 0x57d   : > { %v2384_v12 = vmul.f32 %v2368_v19, %v2352_v25  ;;  %v2318_v41 = vpop.permute.xlu0 %2317 }
 0x57e   : > { %v2005_v42 = vpop.permute.xlu1 %2004  ;;  %v2355_v49 = vmul.f32 %v2318_v41, %v2176_v57  ;;  %v2477_v41 = vld [vmem:[#allocation11 + $0x68] sm:$0xff] }
 0x57f   : > { %v2046_v48 = vmul.f32 0.0, %v2005_v42  ;;  %v2834_v22 = vpack.c.bf16 %v2384_v12, %v2383_v52  ;;  %v2465_v52 = vld [vmem:[#allocation11 + $0x8] sm:$0xff]  ;;  %v2467_v42 = vld [vmem:[#allocation11 + $0x18] sm:$0xff] }
 0x580   : > { %v2387_v29 = vmul.f32 %v2371_v9, %v2355_v49 }
 0x581   : > { %2835 = vmatpush3.bf16.xpose.msra.mxu1 %v2834_v22  ;;  %v2175_v23 = vadd.f32 %v5083_v46, %v2046_v48  ;;  %v2372_v46 = vld [vmem:[#allocation14 + $0x58] sm:$0xff]  ;;  %v2020_v5 = vpop.permute.xlu0 %2019  ;;  %v2469_v22 = vld [vmem:[#allocation11 + $0x28] sm:$0xff] }
 0x582   : > { %v2313_v56 = vpop.permute.xlu1 %2312  ;;  %2836 = vmatprep.subr.bf16.mxu1 %v3458_v0  ;;  %v2049_v11 = vmul.f32 0.0, %v2020_v5  ;;  %v2468_v48 = vld [vmem:[#allocation11 + $0x20] sm:$0xff] }
 0x583   : > { %v2354_v14 = vmul.f32 %v2313_v56, %v2175_v23  ;;  %v2855_v1 = vpack.c.bf16 %v2469_v22, %v2468_v48  ;;  %v2471_v23 = vld [vmem:[#allocation11 + $0x38] sm:$0xff]  ;;  %v2473_v56 = vld [vmem:[#allocation11 + $0x48] sm:$0xff] }
 0x584   : > { %v2178_v44 = vadd.f32 %v5089_v2, %v2049_v11  ;;  %v2858_v62 = vpack.c.bf16 %v2471_v23, %v2470_v55 }
 0x585   : > { %v2386_v31 = vmul.f32 %v2370_v24, %v2354_v14  ;;  %v2328_v27 = vpop.permute.xlu0 %2327  ;;  %v2472_v24 = vld [vmem:[#allocation11 + $0x40] sm:$0xff] }
 0x586   : > { %v2015_v59 = vpop.permute.xlu1 %2014  ;;  %v2357_v16 = vmul.f32 %v2328_v27, %v2178_v44  ;;  %v2861_v14 = vpack.c.bf16 %v2473_v56, %v2472_v24 }
 0x587   : > { %v2048_v63 = vmul.f32 0.0, %v2015_v59  ;;  %v2837_v21 = vpack.c.bf16 %v2386_v31, %v2385_v45  ;;  %v2475_v45 = vld [vmem:[#allocation11 + $0x58] sm:$0xff]  ;;  %v2476_v31 = vld [vmem:[#allocation11 + $0x60] sm:$0xff] }
 0x588   : > { %v2389_v50 = vmul.f32 %v2373_v18, %v2357_v16  ;;  %v2867_v59 = vpack.c.bf16 %v2477_v41, %v2476_v31 }
 0x589   : > { %2838 = vmatpush3.bf16.xpose.msra.mxu1 %v2837_v21  ;;  %v2177_v6 = vadd.f32 %v5087_v53, %v2048_v63  ;;  %v2030_v53 = vpop.permute.xlu0 %2029  ;;  %v2478_v63 = vld [vmem:[#allocation11 + $0x70] sm:$0xff]  ;;  %v2479_v21 = vld [vmem:[#allocation11 + $0x78] sm:$0xff] }
 0x58a   : > { %v2323_v28 = vpop.permute.xlu1 %2322  ;;  %2839 = vmatprep.subr.bf16.mxu1 %v3458_v0  ;;  %v2051_v36 = vmul.f32 0.0, %v2030_v53  ;;  %v2870_v49 = vpack.c.bf16 %v2479_v21, %v2478_v63 }
 0x58b   : > { %v2356_v34 = vmul.f32 %v2323_v28, %v2177_v6 }
 0x58c   : > { %v2180_v54 = vadd.f32 %v5093_v32, %v2051_v36  ;;  %v2464_v32 = vld [vmem:[#allocation11] sm:$0xff] }
 0x58d   : > { %v2388_v38 = vmul.f32 %v2372_v46, %v2356_v34  ;;  %v2338_v13 = vpop.permute.xlu0 %2337  ;;  %v2849_v12 = vpack.c.bf16 %v2465_v52, %v2464_v32 }
 0x58e   : > { %v2025_v20 = vpop.permute.xlu1 %2024  ;;  %v2359_v40 = vmul.f32 %v2338_v13, %v2180_v54 }
 0x58f   : > { %v2840_v37 = vpack.c.bf16 %v2388_v38, %v2387_v29  ;;  %v2050_v26 = vmul.f32 0.0, %v2025_v20 }
 0x590   : > { %v2391_v19 = vmul.f32 %v2375_v8, %v2359_v40 }
 0x591   : > { %2841 = vmatpush3.bf16.xpose.msra.mxu1 %v2840_v37  ;;  %v2179_v51 = vadd.f32 %v5091_v7, %v2050_v26 }
 0x592   : > { %2842 = vmatprep.subr.bf16.mxu1 %v3458_v0 }
 0x5a2   : > { %v2333_v58 = vpop.permute.xlu1 %2332 }
 0x5a3   : > { %v2358_v35 = vmul.f32 %v2333_v58, %v2179_v51 }
 0x5a5   : > { %v2390_v43 = vmul.f32 %v2374_v15, %v2358_v35 }
 0x5a6   : > { %v2035_v10 = vpop.permute.xlu1 %2034 }
 0x5a7   : > { %v2052_v3 = vmul.f32 0.0, %v2035_v10  ;;  %v2843_v4 = vpack.c.bf16 %v2390_v43, %v2389_v50 }
 0x5a9   : > { %2844 = vmatpush3.bf16.xpose.msra.mxu1 %v2843_v4  ;;  %v2181_v2 = vadd.f32 %v5095_v17, %v2052_v3  ;;  %v2852_v17 = vpack.c.bf16 %v2467_v42, %v2466_v60 }
 0x5aa   : > { %v2343_v47 = vpop.permute.xlu1 %2342  ;;  %2845 = vmatprep.subr.bf16.mxu1 %v3458_v0 }
 0x5ab   : > { %v2360_v7 = vmul.f32 %v2343_v47, %v2181_v2 }
 0x5ad   : > { %v2392_v33 = vmul.f32 %v2376_v39, %v2360_v7 }
 0x5af   : > { %v2846_v25 = vpack.c.bf16 %v2392_v33, %v2391_v19 }
 0x5b1   : > { %2847 = vmatpush3.bf16.xpose.msra.mxu1 %v2846_v25 }
 0x5b2   : > { %2848 = vmatprep.subr.bf16.mxu1 %v3458_v0 }
 0x5b8   : > { %2787 = vmatmul.mubr.f32.vlgmr.msra.gmra.mrb[0].mxu1 %v2393_v30 }
 0x5b9   : > { %2850 = vmatpush3.bf16.msra.mxu1 %v2849_v12  ;;  %2821 = vmatprep.mubr.msk.f32.mxu1 %vm3459_vm1, %v5532_v61  ;;  %v2474_v61 = vld [vmem:[#allocation11 + $0x50] sm:$0xff] }
 0x5ba   : > { %2851 = vmatprep.subr.bf16.mxu1 %v3458_v0  ;;  %v2864_v57 = vpack.c.bf16 %v2475_v45, %v2474_v61 }
 0x5bd   : > { %2853 = vmatpush3.bf16.msra.mxu1 %v2852_v17 }
 0x5be   : > { %2854 = vmatprep.subr.bf16.mxu1 %v3458_v0 }
 0x5c1   : > { %2856 = vmatpush3.bf16.msra.mxu1 %v2855_v1 }
 0x5c2   : > { %2857 = vmatprep.subr.bf16.mxu1 %v3458_v0 }
 0x5c5   : > { %2859 = vmatpush3.bf16.msra.mxu1 %v2858_v62 }
 0x5c6   : > { %2860 = vmatprep.subr.bf16.mxu1 %v3458_v0 }
 0x5c9   : > { %2862 = vmatpush3.bf16.msra.mxu1 %v2861_v14 }
 0x5ca   : > { %2863 = vmatprep.subr.bf16.mxu1 %v3458_v0 }
 0x5cd   : > { %2865 = vmatpush3.bf16.msra.mxu1 %v2864_v57 }
 0x5ce   : > { %2866 = vmatprep.subr.bf16.mxu1 %v3458_v0 }
 0x5d1   : > { %2868 = vmatpush3.bf16.msra.mxu1 %v2867_v59 }
 0x5d2   : > { %2869 = vmatprep.subr.bf16.mxu1 %v3458_v0 }
 0x5d5   : > { %2871 = vmatpush3.bf16.msra.mxu1 %v2870_v49 }
 0x68b   : > { %v2460_v6 = vpop.f32.mrb[0].mxu1 }
 0x68c   : > { %v2788_v9 = vpop.f32.mrb[1].mxu1  ;;  %2822 = vmatmul.mubr.f32.vlgmr.msra.gmra.mrb[2].mxu1 %v2460_v6 }
 0x75f   : > { %v2546_v0 = vpop.f32.mrb[2].mxu1 }
 0x760   : > { %2551 = vst.msk [vmem:[%s354_s9] sm:$0xf] %vm2550_vm2, %v2546_v0  ;;  %v2823_v46 = vpop.f32.mrb[3].mxu1 }
 0x761   : > { %3361 = shalt.err (!%p3358_p8)
}
 0x762   : > { %s3362_s16 = scalar_lea.hbm %s5131_s11, 64  ;;  %s3366_s10 = scalar_lea.hbm %s5186_s6, 128 }
 0x763   : > { %p3363_p3 = scmp.ne.s32.totalorder %s5131_s11, %s3362_s16  ;;  %p3367_p0 = scmp.lt.u32.totalorder %s5131_s11, %s5186_s6 }
 0x764   : > { %p3368_p11 = scmp.lt.u32.totalorder %s3366_s10, %s3362_s16  ;;  %p3370_p6 = scmp.lt.u32.totalorder %s3362_s16, %s5131_s11 }
 0x765   : > { %p3364_p12 = pnand %p3363_p3, %p5533_p5 }
 0x766   : > { %p3369_p7 = por %p3368_p11, %p3367_p0 }
 0x767   : > { %p3365_p13 = pneg %p3364_p12 }
 0x768   : > { %p3371_p10 = por %p3370_p6, %p3369_p7 }
 0x76a   : > { %p3372_p1 = pnand %p3371_p10, %p3365_p13 }
 0x76c   : > { %3375 = shalt.err (!%p3372_p1)
}
 0x76d   : > { %2894 = dma.vmem_to_hbm [thread:$0]  (%p5533_p5), %s5133_s14, 64, %s5131_s11, %s2553_s19  }
 0x76e PF: > { %s2578_s9 = sand.u32 1, %s3422_s21   ;;  %p5534_p2 = scmp.ne.s32.totalorder %s5313_s17, 0 }
 0x76f   : > { %p5535_p4 = scmp.ge.s32.totalorder %s3442_s26, 2  ;;  %s2579_s8 = scalar_lea.sflag [#allocation7], %s2578_s9 }
 0x771   : > { %p2917_p9 = pnand %p5535_p4, %p5534_p2 }
 0x773   : > { %3417 = dma.done.wait (!%p2917_p9), %s2579_s8, 64  }
 0x774   : > { %3419 = vsyncadd (!%p2917_p9), %s2579_s8, 4294967232  ;;  %s25_s26 = sadd.s32 1, %s3442_s26   ;;  %s5536_s21 = smov %s3426_s22 }
 0x775   : > { %p22_p8 = scmp.ge.s32.totalorder %s25_s26, 4   ;;  %s5537_s22 = smov %s3430_s23 }
 0x776   : > { %s5538_s23 = smov %s3703_s15  ;;  %s5539_s24 = smov %s3438_s25 }
 0x777   : > { %s5540_s25 = smov %s5542_s18  ;;  %24 = sbr.rel (!%p22_p8) target bundleno = 11 (0xb), region = 117 }
 0x77e   :  { %2584 = vsyncpa [#allocation6], 1 }
 0x77f   :  { %2586 = vsyncpa [#allocation6 + $0x1], 1 }
 0x780   :  { %2587 = vsyncpa [#allocation9], 1 }
 0x781   :  { %2588 = vsyncpa [#allocation12], 1 }
 0x782   :  { %2589 = vsyncpa [#allocation15], 1 }
 0x783   :  { %2590 = vsyncpa [#allocation7], 1 }
 0x784   :  { %2592 = vsyncpa [#allocation7 + $0x1], 1 }

</bundles_post_ra>
